<compile_context>
chip_gen: v7x
topology: tpu7x:2x2x1
jax: 0.10.0
libtpu: 0.0.40
codegen_flags: <defaults>
</compile_context>

<pallas_src>
import functools

import jax
import jax.numpy as jnp
from jax.experimental import pallas as pl
from jax.experimental.pallas import tpu as pltpu

_LANES = 128  # output lane width (one vreg row)


def _round_up(x, m):
    return ((x + m - 1) // m) * m


def _vfe_kernel(feat_ref, inv_ref, sel_ref, out_ref, *, precision):
    # feat_ref: (tile_g, G*K)   packed point features, G voxels per row (orig dtype)
    # inv_ref : (tile_g, 128)   f32 1/num_points, repeated num_features times per voxel
    # sel_ref : (G*K, 128)      static 0/1 block-diagonal selection matrix (orig dtype)
    # out_ref : (tile_g, 128)   packed output: lane g*num_features + c (orig dtype)
    acc = jnp.dot(
        feat_ref[...],
        sel_ref[...],
        preferred_element_type=jnp.float32,
        precision=precision,
    )
    out_ref[...] = (acc * inv_ref[...]).astype(out_ref.dtype)


def hard_simple_vfe(features, num_points, coors, num_features=4, tile_g=None):
    """Pallas equivalent of HardSimpleVFE.forward.

    Args:
      features:   (N, M, C_in) float array, C_in >= num_features.
      num_points: (N,) number of valid points per voxel.
      coors:      (N, k) voxel coordinates - unused (kept for API parity).
      num_features: number of leading feature channels to average.
      tile_g:     packed group-rows per grid step (auto-sized if None).

    Returns:
      (N, num_features) array, mean of points inside each voxel.
    """
    del coors  # unused by the reference forward pass
    N, M, C_in = features.shape
    assert num_features <= C_in and num_features <= _LANES
    K = M * C_in
    orig_dtype = features.dtype
    feat_isz = jnp.dtype(orig_dtype).itemsize

    G = _LANES // num_features          # voxels packed per 128-lane output row
    used = G * num_features             # useful lanes per output row
    GK = G * K

    # Reciprocal of the point count (unguarded: 0 -> inf, matches reference).
    inv = 1.0 / num_points.astype(jnp.float32)                   # (N,)

    # Pack voxels into groups of G.  Free reshape when N % G == 0; otherwise
    # pad only the < G tail rows needed to make the packed view legal
    # (padded voxels get inv = 0, so no NaN/inf leaks into dead rows).
    n_pad = _round_up(N, G)
    if n_pad != N:
        feats = jnp.pad(features.reshape(N, K), ((0, n_pad - N), (0, 0)))
        inv = jnp.pad(inv, (0, n_pad - N))
    else:
        feats = features.reshape(N, K)
    n_g = n_pad // G
    feats = feats.reshape(n_g, GK)                                # free reshape

    # Lane-dense reciprocal: (n_g, 128), each voxel repeated num_features times.
    inv_dense = jnp.repeat(inv.reshape(n_g, G), num_features, axis=1)
    if used < _LANES:
        inv_dense = jnp.pad(inv_dense, ((0, 0), (0, _LANES - used)))

    # Static block-diagonal 0/1 selection matrix S[(g*K + m*C_in + c_in),
    # (g*num_features + c_out)] = 1  iff c_in == c_out (< num_features).
    r = jnp.arange(GK, dtype=jnp.int32)
    rg, rc = r // K, r % C_in
    l = jnp.arange(_LANES, dtype=jnp.int32)
    lg, lc = l // num_features, l % num_features
    sel = ((rg[:, None] == lg[None, :]) & (rc[:, None] == lc[None, :])).astype(
        orig_dtype
    )

    # Tile sizing: ~8 MiB per feature buffer => ~21 MiB total double-buffered,
    # safely under the 32 MiB scoped VMEM we request (fits v7x's 64 MiB TC).
    if tile_g is None:
        budget_bytes = 8 * 1024 * 1024
        tile_g = budget_bytes // (GK * feat_isz)
        tile_g = max(8, min(4096, (tile_g // 8) * 8))
    if n_g <= tile_g:
        tile_g = n_g                      # full-extent block (any size allowed)
    grid = (pl.cdiv(n_g, tile_g),)        # ragged last block handled by Pallas

    precision = (
        jax.lax.Precision.HIGHEST if orig_dtype == jnp.float32 else None
    )

    cost = pl.CostEstimate(
        flops=2 * n_g * GK * _LANES,
        transcendentals=0,
        bytes_accessed=(
            n_g * GK * feat_isz            # features (original dtype)
            + n_g * _LANES * 4             # lane-dense reciprocal
            + GK * _LANES * feat_isz       # selection matrix (fetched once)
            + n_g * _LANES * feat_isz      # packed output
        ),
    )

    out = pl.pallas_call(
        functools.partial(_vfe_kernel, precision=precision),
        out_shape=jax.ShapeDtypeStruct((n_g, _LANES), orig_dtype),
        grid_spec=pltpu.PrefetchScalarGridSpec(
            num_scalar_prefetch=0,
            grid=grid,
            in_specs=[
                pl.BlockSpec((tile_g, GK), lambda i: (i, 0)),       # packed features
                pl.BlockSpec((tile_g, _LANES), lambda i: (i, 0)),   # 1 / num_points
                pl.BlockSpec((GK, _LANES), lambda i: (0, 0)),       # selection matrix
            ],
            out_specs=pl.BlockSpec((tile_g, _LANES), lambda i: (i, 0)),
        ),
        compiler_params=pltpu.CompilerParams(
            dimension_semantics=("parallel",),
            vmem_limit_bytes=32 * 1024 * 1024,
        ),
        cost_estimate=cost,
    )(feats, inv_dense, sel)

    # Unpack: lane g*num_features + c -> (voxel, channel).  For num_features
    # dividing 128 this is a free reshape (no 128-wide slab slice/copy).
    out = out[:, :used].reshape(n_pad, num_features)
    return out[:N]


if __name__ == "__main__":
    key = jax.random.PRNGKey(0)
    k_feat, k_npts = jax.random.split(key, 2)

    N, M, C_in = 64, 8, 4          # voxels, max points per voxel, point features
    num_features = 4

    features = jax.random.normal(k_feat, (N, M, C_in), dtype=jnp.float32)
    num_points = jax.random.randint(k_npts, (N,), 1, M + 1, dtype=jnp.int32)
    coors = jnp.zeros((N, 3), dtype=jnp.int32)

    out = hard_simple_vfe(features, num_points, coors, num_features=num_features)
    out = jax.block_until_ready(out)

    # Reference check in plain JAX (mirrors the PyTorch forward).
    ref = jnp.sum(features[:, :, :num_features], axis=1) / num_points.astype(
        jnp.float32
    ).reshape(-1, 1)
    assert out.shape == (N, num_features)
    assert jnp.allclose(out, ref, atol=1e-5, rtol=1e-5)

    # Ragged N (exercises the tail-only padding path, N % 32 != 0).
    N2 = 37
    out2 = jax.block_until_ready(
        hard_simple_vfe(
            features[:N2], num_points[:N2], coors[:N2], num_features=num_features
        )
    )
    assert out2.shape == (N2, num_features)
    assert jnp.allclose(out2, ref[:N2], atol=1e-5, rtol=1e-5)

    print("KERNEL_OK")
</pallas_src>

<mosaic_0001>
module attributes {stable_mosaic.version = 11 : i64} {
  func.func @_vfe_kernel(%arg0: i32, %arg1: memref<2x1024xf32, #tpu.memory_space<vmem>>, %arg2: memref<2x128xf32, #tpu.memory_space<vmem>>, %arg3: memref<1024x128xf32, #tpu.memory_space<vmem>>, %arg4: memref<2x128xf32, #tpu.memory_space<vmem>>) attributes {dimension_semantics = [#tpu.dimension_semantics<parallel>], iteration_bounds = array<i64: 1>, scalar_prefetch = 0 : i64, scratch_operands = 0 : i64, tpu.core_type = #tpu.core_type<tc>, window_params = [{transform_indices = @transform_0, window_bounds = array<i64: 2, 1024>}, {transform_indices = @transform_1, window_bounds = array<i64: 2, 128>}, {pipeline_mode = #tpu.pipeline_mode<synchronous>, transform_indices = @transform_2, window_bounds = array<i64: 1024, 128>}, {transform_indices = @transform_3, window_bounds = array<i64: 2, 128>}]} {
    %c0 = arith.constant 0 : index
    %c0_0 = arith.constant 0 : index
    %0 = vector.load %arg1[%c0, %c0_0] : memref<2x1024xf32, #tpu.memory_space<vmem>>, vector<2x1024xf32>
    %c0_1 = arith.constant 0 : index
    %c0_2 = arith.constant 0 : index
    %1 = vector.load %arg3[%c0_1, %c0_2] : memref<1024x128xf32, #tpu.memory_space<vmem>>, vector<1024x128xf32>
    %cst = arith.constant dense<0.000000e+00> : vector<2x128xf32>
    %2 = tpu.matmul %0, %1, %cst {dimension_numbers = #tpu.dot_dimension_numbers<[1], [0], [0], [1], [0, 0, 1, 1], [], []>, precision = #tpu.contract_precision<fp32>} : vector<2x1024xf32>, vector<1024x128xf32>, vector<2x128xf32> -> vector<2x128xf32>
    %c0_3 = arith.constant 0 : index
    %c0_4 = arith.constant 0 : index
    %3 = vector.load %arg2[%c0_3, %c0_4] : memref<2x128xf32, #tpu.memory_space<vmem>>, vector<2x128xf32>
    %4 = arith.mulf %2, %3 : vector<2x128xf32>
    %c0_5 = arith.constant 0 : index
    %c0_6 = arith.constant 0 : index
    %5 = vector.load %arg4[%c0_5, %c0_6] : memref<2x128xf32, #tpu.memory_space<vmem>>, vector<2x128xf32>
    tpu.vector_store %arg4[%c0_5, %c0_6], %4 {strides = array<i32>} : memref<2x128xf32, #tpu.memory_space<vmem>>, vector<2x128xf32>,
    return
  }
  func.func @transform_0(%arg0: i32) -> (i32, i32) {
    %c0_i32 = arith.constant 0 : i32
    %c0_i32_0 = arith.constant 0 : i32
    return %arg0, %c0_i32 : i32, i32
  }
  func.func @transform_1(%arg0: i32) -> (i32, i32) {
    %c0_i32 = arith.constant 0 : i32
    %c0_i32_0 = arith.constant 0 : i32
    return %arg0, %c0_i32 : i32, i32
  }
  func.func @transform_2(%arg0: i32) -> (i32, i32) {
    %c0_i32 = arith.constant 0 : i32
    %c0_i32_0 = arith.constant 0 : i32
    %c0_i32_1 = arith.constant 0 : i32
    return %c0_i32, %c0_i32_0 : i32, i32
  }
  func.func @transform_3(%arg0: i32) -> (i32, i32) {
    %c0_i32 = arith.constant 0 : i32
    %c0_i32_0 = arith.constant 0 : i32
    return %arg0, %c0_i32 : i32, i32
  }
}

</mosaic_0001>

<bundles_post_ra>
// kernel: tpu_custom_call.1
= control target key start
LH: loop header
LB: loop body
LE: loop exit
PB: predicated region body
PF: predicated region fallthrough
CT: control target
= control target key end

     0   :  { %8 = vsyncpa [#allocation3], 0  ;;  %s8052_s0 = inlined_call_operand.hbm [shape: f32[2,1024], index: 0, kind: input, shape index: {}]   ;;  %s8053_s1 = inlined_call_operand.vmem [shape: f32[2,128], index: 1, kind: input, shape index: {}]   ;;  %s8054_s2 = inlined_call_operand.hbm [shape: f32[1024,128], index: 2, kind: input, shape index: {}]   ;;  %s8055_s3 = inlined_call_operand.hbm [shape: f32[2,128], index: 3, kind: output, shape index: {}]  }
   0x1   :  { %9 = vsyncpa [#allocation6], 0 }
   0x2   :  { %10 = vsyncpa [#allocation4], 0  ;;  %s5370_s12 = smov [#allocation2]   ;;  %s5371_s14 = smov [#allocation5]  }
   0x3   :  { %s17_s13 = sshll.u32 %s5370_s12, 4  ;;  %s28_s15 = sshll.u32 %s5371_s14, 4  ;;  %s18_s13 = int_to_ptr.vmem [resolvable:$true] %s17_s13  ;;  %s5396_s15 = int_to_ptr.vmem [resolvable:$true] %s28_s15 }
   0x4   :  { %s5298_s18 = scalar_lea.hbm %s8052_s0, 256 }
   0x5   :  { %p5299_p0 = scmp.ne.s32.totalorder %s8052_s0, %s5298_s18  ;;  %p5302_p1 = scmp.lt.u32.totalorder %s5298_s18, %s8052_s0 }
   0x7   :  { %p5304_p2 = pnand %p5302_p1, %p5299_p0 }
   0x9   :  { %5307 = shalt.err (!%p5304_p2)
}
   0xa   :  { %s5308_s23 = scalar_lea.vmem %s18_s13, 256  ;;  %p5313_p4 = scmp.lt.s32.totalorder %s18_s13, %s18_s13 }
   0xb   :  { %p5309_p3 = scmp.ne.s32.totalorder %s18_s13, %s5308_s23  ;;  %p5314_p5 = scmp.lt.s32.totalorder %s5308_s23, %s5308_s23 }
   0xd   :  { %p5315_p6 = por %p5314_p5, %p5313_p4 }
   0xf   :  { %p5316_p7 = pnand %p5315_p6, %p5309_p3 }
  0x11   :  { %5319 = shalt.err (!%p5316_p7)
}
  0x12   :  { %20 = dma.hbm_to_vmem [thread:$0]  %s8052_s0, 256, %s18_s13, [#allocation3]  }
  0x13   :  { %s5320_s28 = scalar_lea.hbm %s8054_s2, 16384 }
  0x14   :  { %p5321_p8 = scmp.ne.s32.totalorder %s8054_s2, %s5320_s28  ;;  %p5324_p9 = scmp.lt.u32.totalorder %s5320_s28, %s8054_s2 }
  0x16   :  { %p5326_p10 = pnand %p5324_p9, %p5321_p8 }
  0x18   :  { %5329 = shalt.err (!%p5326_p10)
}
  0x19   :  { %s5330_s6 = scalar_lea.vmem %s5396_s15, 16384  ;;  %p5335_p12 = scmp.lt.s32.totalorder %s5396_s15, %s5396_s15 }
  0x1a   :  { %p5331_p11 = scmp.ne.s32.totalorder %s5396_s15, %s5330_s6  ;;  %p5336_p13 = scmp.lt.s32.totalorder %s5330_s6, %s5330_s6 }
  0x1c   :  { %p5337_p0 = por %p5336_p13, %p5335_p12 }
  0x1e   :  { %p5338_p1 = pnand %p5337_p0, %p5331_p11 }
  0x20   :  { %5341 = shalt.err (!%p5338_p1)
}
  0x21   :  { %s5372_s0 = smov 128   ;;  %s5373_s7 = smov 8  }
  0x22   :  { %34 = dma.hbm_to_vmem [thread:$0]  %s8054_s2, 16384, %s5396_s15, [#allocation6], %s5372_s0, %s5372_s0, %s5373_s7  }
  0x23   :  { %5364 = dma.done.wait [#allocation3], 256  }
  0x24   :  { %5365 = vsyncadd [#allocation3], 4294967040 }
  0x25   :  { %5366 = dma.done.wait [#allocation6], 16384  }
  0x26   :  { %5367 = vsyncadd [#allocation6], 4294950912  ;;  %v177_v0 = vlaneseq  ;;  %v5374_v1 = vmov 1983009808   ;;  %v59_v3 = vld [vmem:[#allocation5 + $0x80] sm:$0xff]  ;;  %v60_v4 = vld [vmem:[#allocation5 + $0x88] sm:$0xff] }
  0x27   :  { %v175_v2 = vunpack.c.l.s4 %v5374_v1  ;;  %v43_v5 = vld [vmem:[#allocation5] sm:$0xff]  ;;  %v264_v7 = vand.u32 4294901760, %v59_v3  ;;  %v267_v8 = vand.u32 4294901760, %v60_v4  ;;  %v44_v9 = vld [vmem:[#allocation5 + $0x8] sm:$0xff]  ;;  %v61_v11 = vld [vmem:[#allocation5 + $0x90] sm:$0xff]  ;;  %s5375_s11 = smov [#allocation7]  }
  0x28   :  { %v178_v6 = vshrl.u32 %v177_v0, 7  ;;  %v216_v10 = vand.u32 4294901760, %v43_v5  ;;  %v62_v12 = vld [vmem:[#allocation5 + $0x98] sm:$0xff]  ;;  %v219_v14 = vand.u32 4294901760, %v44_v9  ;;  %v270_v15 = vand.u32 4294901760, %v61_v11  ;;  %v45_v17 = vld [vmem:[#allocation5 + $0x10] sm:$0xff] }
  0x29   :  { %v176_v13 = vunpack.c.0.s8 %v175_v2  ;;  %v273_v16 = vand.u32 4294901760, %v62_v12  ;;  %v46_v18 = vld [vmem:[#allocation5 + $0x18] sm:$0xff]  ;;  %v5427_v19 = vpack.c.bf16 %v267_v8, %v264_v7  ;;  %v222_v21 = vand.u32 4294901760, %v45_v17  ;;  %v63_v23 = vld [vmem:[#allocation5 + $0xa0] sm:$0xff]  ;;  %v64_v24 = vld [vmem:[#allocation5 + $0xa8] sm:$0xff]  ;;  %s3672_s12 = sshll.u32 %s5375_s11, 4  ;;  %s3673_s12 = int_to_ptr.vmem [resolvable:$true] %s3672_s12 }
  0x2a   :  { %v5429_v20 = vsub.f32 %v43_v5, %v216_v10  ;;  %v225_v22 = vand.u32 4294901760, %v46_v18  ;;  %v5431_v25 = vpack.c.bf16 %v219_v14, %v216_v10  ;;  %v5433_v26 = vsub.f32 %v44_v9, %v219_v14  ;;  %v47_v28 = vld [vmem:[#allocation5 + $0x20] sm:$0xff]  ;;  %v48_v29 = vld [vmem:[#allocation5 + $0x28] sm:$0xff]  ;;  %v65_v42 = vld [vmem:[#allocation5 + $0xb0] sm:$0xff]  ;;  %s5342_s13 = scalar_lea.vmem %s3673_s12, 32  ;;  %p5347_p3 = scmp.lt.s32.totalorder %s3673_s12, %s3673_s12 }
  0x2b   :  { %v5435_v27 = vpack.c.bf16 %v273_v16, %v270_v15  ;;  %4523 = vmatprep.subr.bf16.mxu0 %v5427_v19  ;;  %v5438_v30 = vsub.f32 %v61_v11, %v270_v15  ;;  %v5440_v31 = vsub.f32 %v62_v12, %v273_v16  ;;  %v5444_v33 = vsub.s32 %v176_v13, %v178_v6  ;;  %v66_v47 = vld [vmem:[#allocation5 + $0xb8] sm:$0xff]  ;;  %v49_v60 = vld [vmem:[#allocation5 + $0x30] sm:$0xff]  ;;  %v67_v10 = vld [vmem:[#allocation5 + $0xc0] sm:$0xff]  ;;  %p5343_p2 = scmp.ne.s32.totalorder %s3673_s12, %s5342_s13  ;;  %p5348_p4 = scmp.lt.s32.totalorder %s5342_s13, %s5342_s13 }
  0x2c   :  { %v5442_v32 = vpack.c.bf16 %v225_v22, %v222_v21  ;;  %4525 = vmatpush3.bf16.msra.mxu0 %v5431_v25  ;;  %v276_v34 = vand.u32 4294901760, %v63_v23  ;;  %v279_v35 = vand.u32 4294901760, %v64_v24  ;;  %v5447_v36 = vsub.f32 %v59_v3, %v264_v7  ;;  %v50_v61 = vld [vmem:[#allocation5 + $0x38] sm:$0xff]  ;;  %v68_v11 = vld [vmem:[#allocation5 + $0xc8] sm:$0xff]  ;;  %v51_v16 = vld [vmem:[#allocation5 + $0x40] sm:$0xff] }
  0x2d   :  { %8317 = vst [vmem:[#allocation11_spill] sm:$0xff] %v5444_v33  ;;  %v5449_v37 = vsub.f32 %v60_v4, %v267_v8  ;;  %4527 = vmatprep.subr.bf16.mxu0 %v5435_v27  ;;  %v228_v38 = vand.u32 4294901760, %v47_v28  ;;  %v231_v39 = vand.u32 4294901760, %v48_v29  ;;  %v8070_v40 = vand.u32 4294901760, %v5429_v20  ;;  %p5349_p5 = por %p5348_p4, %p5347_p3 }
  0x2e   :  { %v8068_v41 = vand.u32 4294901760, %v5433_v26  ;;  %v5454_v43 = vsub.f32 %v45_v17, %v222_v21  ;;  %v5456_v44 = vsub.f32 %v46_v18, %v225_v22  ;;  %v5458_v45 = vpack.c.bf16 %v279_v35, %v276_v34 }
  0x2f   :  { %v8073_v46 = vand.u32 4294901760, %v5447_v36  ;;  %v5461_v48 = vsub.f32 %v63_v23, %v276_v34  ;;  %v5463_v49 = vsub.f32 %v64_v24, %v279_v35  ;;  %v8072_v50 = vand.u32 4294901760, %v5449_v37  ;;  %v52_v34 = vld [vmem:[#allocation5 + $0x48] sm:$0xff]  ;;  %p5350_p6 = pnand %p5349_p5, %p5343_p2 }
  0x30   :  { %v5466_v51 = vpack.c.bf16 %v231_v39, %v228_v38  ;;  %4529 = vmatpush3.bf16.msra.mxu0 %v5442_v32  ;;  %v331_v53 = vsub.f32 %v5429_v20, %v8070_v40  ;;  %v338_v54 = vsub.f32 %v5433_v26, %v8068_v41  ;;  %v282_v55 = vand.u32 4294901760, %v65_v42  ;;  %v74_v41 = vld [vmem:[#allocation5 + $0xf8] sm:$0xff] }
  0x31   :  { %v443_v52 = vsub.f32 %v5447_v36, %v8073_v46  ;;  %4531 = vmatprep.subr.bf16.mxu0 %v5458_v45  ;;  %v450_v56 = vsub.f32 %v5449_v37, %v8072_v50  ;;  %v285_v57 = vand.u32 4294901760, %v66_v47  ;;  %v8067_v58 = vand.u32 4294901760, %v5438_v30 }
  0x32   :  { %v8065_v59 = vand.u32 4294901760, %v5440_v31  ;;  %v5484_v63 = vsub.f32 %v47_v28, %v228_v38  ;;  %v332_v0 = vand.u32 4294901760, %v331_v53  ;;  %v339_v1 = vand.u32 4294901760, %v338_v54 }
  0x33   :  { %v444_v62 = vand.u32 4294901760, %v443_v52  ;;  %v451_v2 = vand.u32 4294901760, %v450_v56  ;;  %v5486_v3 = vsub.f32 %v48_v29, %v231_v39  ;;  %v5488_v4 = vpack.c.bf16 %v285_v57, %v282_v55 }
  0x34   :  { %v457_v5 = vsub.f32 %v5438_v30, %v8067_v58  ;;  %4533 = vmatpush3.bf16.msra.mxu0 %v5466_v51  ;;  %v4556_v6 = vpack.c.bf16 %v339_v1, %v332_v0  ;;  %v464_v7 = vsub.f32 %v5440_v31, %v8065_v59  ;;  %v234_v8 = vand.u32 4294901760, %v49_v60  ;;  %v69_v0 = vld [vmem:[#allocation5 + $0xd0] sm:$0xff]  ;;  %v70_v1 = vld [vmem:[#allocation5 + $0xd8] sm:$0xff] }
  0x35   :  { %v237_v9 = vand.u32 4294901760, %v50_v61  ;;  %v4554_v12 = vpack.c.bf16 %v451_v2, %v444_v62  ;;  %4535 = vmatprep.subr.bf16.mxu0 %v5488_v4  ;;  %v8063_v14 = vand.u32 4294901760, %v5454_v43  ;;  %v8062_v15 = vand.u32 4294901760, %v5456_v44  ;;  %v73_v58 = vld [vmem:[#allocation5 + $0xf0] sm:$0xff] }
  0x36   :  { %v458_v13 = vand.u32 4294901760, %v457_v5  ;;  %v5500_v17 = vsub.f32 %v65_v42, %v282_v55  ;;  %v5502_v18 = vsub.f32 %v66_v47, %v285_v57  ;;  %v465_v21 = vand.u32 4294901760, %v464_v7 }
  0x37   :  { %v5504_v22 = vpack.c.bf16 %v237_v9, %v234_v8  ;;  %4555 = vmatprep.subr.bf16.mxu1 %v4554_v12  ;;  %v345_v23 = vsub.f32 %v5454_v43, %v8063_v14  ;;  %v352_v24 = vsub.f32 %v5456_v44, %v8062_v15  ;;  %v288_v28 = vand.u32 4294901760, %v67_v10 }
  0x38   :  { %v291_v29 = vand.u32 4294901760, %v68_v11  ;;  %4557 = vmatpush3.bf16.msra.mxu1 %v4556_v6  ;;  %v4558_v35 = vpack.c.bf16 %v465_v21, %v458_v13  ;;  %v8060_v38 = vand.u32 4294901760, %v5461_v48  ;;  %v8058_v39 = vand.u32 4294901760, %v5463_v49  ;;  %v53_v6 = vld [vmem:[#allocation5 + $0x50] sm:$0xff] }
  0x39   :  { %4537 = vmatpush3.bf16.msra.mxu0 %v5504_v22  ;;  %v240_v42 = vand.u32 4294901760, %v51_v16  ;;  %v5515_v47 = vsub.f32 %v49_v60, %v234_v8  ;;  %v346_v52 = vand.u32 4294901760, %v345_v23  ;;  %v353_v53 = vand.u32 4294901760, %v352_v24  ;;  %v54_v24 = vld [vmem:[#allocation5 + $0x58] sm:$0xff] }
  0x3a   :  { %v5517_v54 = vpack.c.bf16 %v291_v29, %v288_v28  ;;  %4559 = vmatprep.subr.bf16.mxu1 %v4558_v35  ;;  %v5519_v55 = vsub.f32 %v50_v61, %v237_v9  ;;  %v471_v56 = vsub.f32 %v5461_v48, %v8060_v38  ;;  %v478_v57 = vsub.f32 %v5463_v49, %v8058_v39  ;;  %v72_v39 = vld [vmem:[#allocation5 + $0xe8] sm:$0xff] }
  0x3b   :  { %v243_v62 = vand.u32 4294901760, %v52_v34  ;;  %v4560_v60 = vpack.c.bf16 %v353_v53, %v346_v52  ;;  %v5528_v2 = vsub.f32 %v67_v10, %v288_v28  ;;  %v8057_v5 = vand.u32 4294901760, %v5484_v63 }
  0x3c   :  { %4539 = vmatprep.subr.bf16.mxu0 %v5517_v54  ;;  %v8056_v61 = vand.u32 4294901760, %v5486_v3  ;;  %v5532_v7 = vsub.f32 %v68_v11, %v291_v29  ;;  %v472_v8 = vand.u32 4294901760, %v471_v56  ;;  %v479_v9 = vand.u32 4294901760, %v478_v57 }
  0x3d   :  { %v5534_v12 = vpack.c.bf16 %v243_v62, %v240_v42  ;;  %4561 = vmatpush3.bf16.msra.mxu1 %v4560_v60  ;;  %v359_v13 = vsub.f32 %v5484_v63, %v8057_v5  ;;  %v294_v21 = vand.u32 4294901760, %v69_v0  ;;  %v297_v23 = vand.u32 4294901760, %v70_v1  ;;  %v71_v5 = vld [vmem:[#allocation5 + $0xe0] sm:$0xff] }
  0x3e   :  { %v366_v10 = vsub.f32 %v5486_v3, %v8056_v61  ;;  %v4562_v28 = vpack.c.bf16 %v479_v9, %v472_v8  ;;  %v8059_v11 = vand.u32 4294901760, %v5500_v17  ;;  %v8061_v29 = vand.u32 4294901760, %v5502_v18 }
  0x3f   :  { %4541 = vmatpush3.bf16.msra.mxu0 %v5534_v12  ;;  %v246_v35 = vand.u32 4294901760, %v53_v6  ;;  %v5545_v52 = vsub.f32 %v51_v16, %v240_v42  ;;  %v360_v53 = vand.u32 4294901760, %v359_v13  ;;  %v5547_v57 = vpack.c.bf16 %v297_v23, %v294_v21 }
  0x40   :  { %v367_v56 = vand.u32 4294901760, %v366_v10  ;;  %4563 = vmatprep.subr.bf16.mxu1 %v4562_v28  ;;  %v5549_v60 = vsub.f32 %v52_v34, %v243_v62  ;;  %v485_v8 = vsub.f32 %v5500_v17, %v8059_v11  ;;  %v492_v9 = vsub.f32 %v5502_v18, %v8061_v29  ;;  %v55_v62 = vld [vmem:[#allocation5 + $0x60] sm:$0xff]  ;;  %v56_v29 = vld [vmem:[#allocation5 + $0x68] sm:$0xff] }
  0x41   :  { %8318 = vst [vmem:[#allocation12_spill] sm:$0xff] %v5547_v57  ;;  %v249_v61 = vand.u32 4294901760, %v54_v24  ;;  %4543 = vmatprep.subr.bf16.mxu0 %v5547_v57  ;;  %v5558_v42 = vsub.f32 %v69_v0, %v294_v21  ;;  %v8064_v13 = vand.u32 4294901760, %v5515_v47  ;;  %v8066_v34 = vand.u32 4294901760, %v5519_v55 }
  0x42   :  { %v4564_v16 = vpack.c.bf16 %v367_v56, %v360_v53  ;;  %v5562_v10 = vsub.f32 %v70_v1, %v297_v23  ;;  %v486_v28 = vand.u32 4294901760, %v485_v8  ;;  %v493_v11 = vand.u32 4294901760, %v492_v9 }
  0x43   :  { %v5564_v38 = vpack.c.bf16 %v249_v61, %v246_v35  ;;  %v373_v53 = vsub.f32 %v5515_v47, %v8064_v13  ;;  %v380_v0 = vsub.f32 %v5519_v55, %v8066_v34  ;;  %v300_v21 = vand.u32 4294901760, %v71_v5 }
  0x44   :  { %4565 = vmatpush3.bf16.msra.mxu1 %v4564_v16  ;;  %v303_v56 = vand.u32 4294901760, %v72_v39  ;;  %v4566_v15 = vpack.c.bf16 %v493_v11, %v486_v28  ;;  %v8069_v1 = vand.u32 4294901760, %v5528_v2  ;;  %v8071_v23 = vand.u32 4294901760, %v5532_v7 }
  0x45   :  { %8319 = vst [vmem:[#allocation13_spill] sm:$0xff] %v5564_v38  ;;  %4545 = vmatpush3.bf16.msra.mxu0 %v5564_v38  ;;  %v252_v8 = vand.u32 4294901760, %v55_v62  ;;  %v5575_v9 = vsub.f32 %v53_v6, %v246_v35  ;;  %v374_v16 = vand.u32 4294901760, %v373_v53  ;;  %v381_v14 = vand.u32 4294901760, %v380_v0 }
  0x46   :  { %v5577_v13 = vpack.c.bf16 %v303_v56, %v300_v21  ;;  %4567 = vmatprep.subr.bf16.mxu1 %v4566_v15  ;;  %v5579_v59 = vsub.f32 %v54_v24, %v249_v61  ;;  %v499_v11 = vsub.f32 %v5528_v2, %v8069_v1  ;;  %v506_v28 = vsub.f32 %v5532_v7, %v8071_v23  ;;  %v57_v24 = vld [vmem:[#allocation5 + $0x70] sm:$0xff]  ;;  %v58_v23 = vld [vmem:[#allocation5 + $0x78] sm:$0xff] }
  0x47   :  { %v255_v34 = vand.u32 4294901760, %v56_v29  ;;  %v4568_v6 = vpack.c.bf16 %v381_v14, %v374_v16  ;;  %v5588_v35 = vsub.f32 %v71_v5, %v300_v21  ;;  %v8074_v15 = vand.u32 4294901760, %v5545_v52 }
  0x48   :  { %8320 = vst [vmem:[#allocation14_spill] sm:$0xff] %v5577_v13  ;;  %4547 = vmatprep.subr.bf16.mxu0 %v5577_v13  ;;  %v8077_v61 = vand.u32 4294901760, %v5549_v60  ;;  %v5592_v53 = vsub.f32 %v72_v39, %v303_v56  ;;  %v500_v0 = vand.u32 4294901760, %v499_v11  ;;  %v507_v1 = vand.u32 4294901760, %v506_v28 }
  0x49   :  { %v5594_v40 = vpack.c.bf16 %v255_v34, %v252_v8  ;;  %4569 = vmatpush3.bf16.msra.mxu1 %v4568_v6  ;;  %v387_v14 = vsub.f32 %v5545_v52, %v8074_v15  ;;  %v306_v21 = vand.u32 4294901760, %v73_v58  ;;  %v309_v16 = vand.u32 4294901760, %v74_v41 }
  0x4a   :  { %v394_v5 = vsub.f32 %v5549_v60, %v8077_v61  ;;  %v4570_v50 = vpack.c.bf16 %v507_v1, %v500_v0  ;;  %v8080_v39 = vand.u32 4294901760, %v5558_v42  ;;  %v8081_v56 = vand.u32 4294901760, %v5562_v10 }
  0x4b   :  { %8321 = vst [vmem:[#allocation15_spill] sm:$0xff] %v5594_v40  ;;  %4549 = vmatpush3.bf16.msra.mxu0 %v5594_v40  ;;  %v258_v11 = vand.u32 4294901760, %v57_v24  ;;  %v5605_v28 = vsub.f32 %v55_v62, %v252_v8  ;;  %v388_v6 = vand.u32 4294901760, %v387_v14  ;;  %v5607_v15 = vpack.c.bf16 %v309_v16, %v306_v21  ;;  %v5617_v40 = vld [vmem:[#allocation2] sm:$0xff] }
  0x4c   :  { %v395_v46 = vand.u32 4294901760, %v394_v5  ;;  %4571 = vmatprep.subr.bf16.mxu1 %v4570_v50  ;;  %v5609_v13 = vsub.f32 %v56_v29, %v255_v34  ;;  %v513_v1 = vsub.f32 %v5558_v42, %v8080_v39  ;;  %v520_v0 = vsub.f32 %v5562_v10, %v8081_v56  ;;  %8323 = vst [vmem:[#allocation17_spill] sm:$0xff] %v5617_v40 }
  0x4d   :  { %8322 = vst [vmem:[#allocation16_spill] sm:$0xff] %v5607_v15  ;;  %v261_v61 = vand.u32 4294901760, %v58_v23  ;;  %4551 = vmatprep.subr.bf16.mxu0 %v5607_v15  ;;  %v5620_v8 = vsub.f32 %v73_v58, %v306_v21  ;;  %v8083_v50 = vand.u32 4294901760, %v5575_v9  ;;  %v8082_v29 = vand.u32 4294901760, %v5579_v59 }
  0x4e   :  { %v4572_v62 = vpack.c.bf16 %v395_v46, %v388_v6  ;;  %v5624_v34 = vsub.f32 %v74_v41, %v309_v16  ;;  %v514_v14 = vand.u32 4294901760, %v513_v1  ;;  %v521_v5 = vand.u32 4294901760, %v520_v0 }
  0x4f   :  { %v5626_v39 = vpack.c.bf16 %v261_v61, %v258_v11  ;;  %v5628_v56 = vsub.f32 %v57_v24, %v258_v11  ;;  %v401_v46 = vsub.f32 %v5575_v9, %v8083_v50  ;;  %v408_v58 = vsub.f32 %v5579_v59, %v8082_v29 }
  0x50   :  { %8324 = vst [vmem:[#allocation18_spill] sm:$0xff] %v5624_v34  ;;  %4573 = vmatpush3.bf16.msra.mxu1 %v4572_v62  ;;  %v180_v21 = vrot.slane %v5617_v40, %v5444_v33  ;;  %v4574_v41 = vpack.c.bf16 %v521_v5, %v514_v14  ;;  %v8090_v16 = vand.u32 4294901760, %v5588_v35  ;;  %v8093_v6 = vand.u32 4294901760, %v5592_v53 }
  0x51   :  { %8325 = vst [vmem:[#allocation19_spill] sm:$0xff] %v5626_v39  ;;  %4553 = vmatpush3.bf16.msra.mxu0 %v5626_v39  ;;  %v4586_v24 = vpack.c.bf16 %v5449_v37, %v5447_v36  ;;  %v402_v11 = vand.u32 4294901760, %v401_v46  ;;  %v409_v1 = vand.u32 4294901760, %v408_v58  ;;  %v8091_v5 = vand.u32 4294901760, %v5605_v28 }
  0x52   :  { %v188_v0 = vcombine.high %v180_v21, %v180_v21  ;;  %v5643_v62 = vand.u32 4294901760, %v180_v21  ;;  %4575 = vmatprep.subr.bf16.mxu1 %v4574_v41  ;;  %v527_v29 = vsub.f32 %v5588_v35, %v8090_v16  ;;  %v534_v14 = vsub.f32 %v5592_v53, %v8093_v6 }
  0x53   :  { %4587 = vmatprep.subr.bf16.mxu0 %v4586_v24  ;;  %v8092_v50 = vand.u32 4294901760, %v5609_v13  ;;  %v5653_v33 = vsub.f32 %v58_v23, %v261_v61  ;;  %v4576_v46 = vpack.c.bf16 %v409_v1, %v402_v11  ;;  %v415_v16 = vsub.f32 %v5605_v28, %v8091_v5 }
  0x54   :  { %v5655_v58 = vand.u32 4294901760, %v188_v0  ;;  %v5658_v41 = vsub.f32 %v180_v21, %v5643_v62  ;;  %v528_v39 = vand.u32 4294901760, %v527_v29  ;;  %v535_v15 = vand.u32 4294901760, %v534_v14 }
  0x55   :  { %v422_v24 = vsub.f32 %v5609_v13, %v8092_v50  ;;  %4577 = vmatpush3.bf16.msra.mxu1 %v4576_v46  ;;  %v540_v11 = vand.u32 4294901760, %v5620_v8  ;;  %v547_v21 = vand.u32 4294901760, %v5624_v34  ;;  %v416_v1 = vand.u32 4294901760, %v415_v16 }
  0x56   :  { %8326 = vst [vmem:[#allocation20_spill] sm:$0xff] %v5655_v58  ;;  %8327 = vst [vmem:[#allocation21_spill] sm:$0xff] %v5658_v41  ;;  %v5667_v23 = vsub.f32 %v188_v0, %v5655_v58  ;;  %v8100_v61 = vand.u32 4294901760, %v5658_v41  ;;  %552 = vmatprep.mubr.f32.mxu1 %v5655_v58  ;;  %v4578_v29 = vpack.c.bf16 %v535_v15, %v528_v39  ;;  %v428_v40 = vand.u32 4294901760, %v5628_v56 }
  0x57   :  { %v423_v14 = vand.u32 4294901760, %v422_v24  ;;  %v541_v0 = vsub.f32 %v5620_v8, %v540_v11  ;;  %v548_v50 = vsub.f32 %v5624_v34, %v547_v21  ;;  %v435_v38 = vand.u32 4294901760, %v5653_v33 }
  0x58   :  { %v313_v5 = vand.u32 4294901760, %v5667_v23  ;;  %v320_v46 = vsub.f32 %v5658_v41, %v8100_v61  ;;  %4579 = vmatprep.subr.bf16.mxu1 %v4578_v29  ;;  %v429_v58 = vsub.f32 %v5628_v56, %v428_v40  ;;  %v4588_v57 = vpack.c.bf16 %v5433_v26, %v5429_v20 }
  0x59   :  { %v4580_v6 = vpack.c.bf16 %v423_v14, %v416_v1  ;;  %v542_v39 = vand.u32 4294901760, %v541_v0  ;;  %v549_v16 = vand.u32 4294901760, %v548_v50  ;;  %v436_v61 = vsub.f32 %v5653_v33, %v435_v38 }
  0x5a   :  { %v314_v15 = vsub.f32 %v5667_v23, %v313_v5  ;;  %v321_v24 = vand.u32 4294901760, %v320_v46  ;;  %v4590_v1 = vpack.c.bf16 %v5440_v31, %v5438_v30  ;;  %v430_v14 = vand.u32 4294901760, %v429_v58 }
  0x5b   :  { %4581 = vmatpush3.bf16.msra.mxu1 %v4580_v6  ;;  %v4582_v29 = vpack.c.bf16 %v549_v16, %v542_v39  ;;  %v437_v34 = vand.u32 4294901760, %v436_v61  ;;  %v4592_v6 = vpack.c.bf16 %v5456_v44, %v5454_v43  ;;  %v4594_v46 = vpack.c.bf16 %v5463_v49, %v5461_v48 }
  0x5c   :  { %v315_v41 = vand.u32 4294901760, %v314_v15  ;;  %v8328_v0 = vand.u32 4294901760, %v5447_v36  ;;  %v8329_v15 = vand.u32 4294901760, %v5449_v37  ;;  %v8330_v58 = vand.u32 4294901760, %v5429_v20 }
  0x5d   :  { %4583 = vmatprep.subr.bf16.mxu1 %v4582_v29  ;;  %v4584_v50 = vpack.c.bf16 %v437_v34, %v430_v14  ;;  %v8332_v61 = vand.u32 4294901760, %v5438_v30  ;;  %v8333_v16 = vand.u32 4294901760, %v5440_v31  ;;  %v8334_v36 = vand.u32 4294901760, %v5454_v43 }
  0x5e   :  { %316 = vmatprep.mubr.f32.mxu0 %v315_v41  ;;  %v5697_v39 = vpack.c.bf16 %v8329_v15, %v8328_v0  ;;  %v8331_v41 = vand.u32 4294901760, %v5433_v26  ;;  %v8335_v37 = vand.u32 4294901760, %v5456_v44  ;;  %v8336_v20 = vand.u32 4294901760, %v5461_v48 }
  0x5f   :  { %322 = vmatmul.mubr.f32.vlgmr.msra.gmra.mrb[0].mxu0 %v321_v24  ;;  %v5709_v24 = vpack.c.bf16 %v8333_v16, %v8332_v61  ;;  %4585 = vmatpush3.bf16.msra.mxu1 %v4584_v50  ;;  %v8337_v26 = vand.u32 4294901760, %v5463_v49  ;;  %v8338_v30 = vand.u32 4294901760, %v5484_v63  ;;  %v8339_v31 = vand.u32 4294901760, %v5486_v3 }
  0x60   :  { %4589 = vmatpush3.bf16.msra.mxu0 %v4588_v57  ;;  %689 = vmatprep.mubr.f32.mxu0 %v5667_v23  ;;  %v5703_v34 = vpack.c.bf16 %v8331_v41, %v8330_v58  ;;  %v5715_v57 = vpack.c.bf16 %v8335_v37, %v8334_v36  ;;  %v8340_v43 = vand.u32 4294901760, %v5500_v17  ;;  %v8341_v44 = vand.u32 4294901760, %v5502_v18 }
  0x61   :  { %4591 = vmatprep.subr.bf16.mxu0 %v4590_v1  ;;  %v5721_v23 = vpack.c.bf16 %v8337_v26, %v8336_v20  ;;  %v5727_v29 = vpack.c.bf16 %v8339_v31, %v8338_v30  ;;  %4619 = vmatprep.subr.bf16.mxu1 %v5427_v19  ;;  %v8342_v48 = vand.u32 4294901760, %v5515_v47  ;;  %v8343_v49 = vand.u32 4294901760, %v5519_v55 }
  0x62   :  { %v5734_v1 = vpack.c.bf16 %v8341_v44, %v8340_v43  ;;  %v8344_v50 = vand.u32 4294901760, %v5528_v2  ;;  %v8345_v0 = vand.u32 4294901760, %v5532_v7  ;;  %v8346_v58 = vand.u32 4294901760, %v5545_v52  ;;  %554 = vmatmul.mubr.f32.vlgmr.msra.gmra.mrb[0].mxu1 %v5643_v62 }
  0x63   :  { %v5740_v14 = vpack.c.bf16 %v8343_v49, %v8342_v48  ;;  %v8347_v41 = vand.u32 4294901760, %v5549_v60  ;;  %v8348_v16 = vand.u32 4294901760, %v5558_v42  ;;  %v8349_v36 = vand.u32 4294901760, %v5562_v10  ;;  %4621 = vmatpush3.bf16.msra.mxu1 %v5431_v25  ;;  %796 = vmatprep.mubr.f32.mxu1 %v313_v5  ;;  %v94_v5 = vld [vmem:[#allocation5 + $0x198] sm:$0xff] }
  0x64   :  { %v5746_v15 = vpack.c.bf16 %v8345_v0, %v8344_v50  ;;  %v8350_v20 = vand.u32 4294901760, %v5575_v9  ;;  %v8351_v26 = vand.u32 4294901760, %v5579_v59  ;;  %v8352_v31 = vand.u32 4294901760, %v5588_v35  ;;  %4593 = vmatpush3.bf16.msra.mxu0 %v4592_v6  ;;  %4623 = vmatprep.subr.bf16.mxu1 %v5435_v27 }
  0x65   :  { %v5752_v61 = vpack.c.bf16 %v8347_v41, %v8346_v58  ;;  %v5758_v37 = vpack.c.bf16 %v8349_v36, %v8348_v16  ;;  %v8353_v43 = vand.u32 4294901760, %v5592_v53  ;;  %v8354_v48 = vand.u32 4294901760, %v5605_v28  ;;  %4595 = vmatprep.subr.bf16.mxu0 %v4594_v46 }
  0x66   :  { %v5764_v30 = vpack.c.bf16 %v8351_v26, %v8350_v20  ;;  %v8355_v49 = vand.u32 4294901760, %v5609_v13  ;;  %v4596_v0 = vpack.c.bf16 %v5486_v3, %v5484_v63  ;;  %v5781_v58 = vpack.c.bf16 %v547_v21, %v540_v11  ;;  %v8359_v11 = vld [vmem:[#allocation14_spill] sm:$0xff] }
  0x67   :  { %v5770_v44 = vpack.c.bf16 %v8353_v43, %v8352_v31  ;;  %v5783_v41 = vpack.c.bf16 %v435_v38, %v428_v40  ;;  %v4598_v16 = vpack.c.bf16 %v5502_v18, %v5500_v17  ;;  %v4600_v6 = vpack.c.bf16 %v5519_v55, %v5515_v47  ;;  %4625 = vmatpush3.bf16.msra.mxu1 %v5442_v32  ;;  %v91_v18 = vld [vmem:[#allocation5 + $0x180] sm:$0xff]  ;;  %v92_v38 = vld [vmem:[#allocation5 + $0x188] sm:$0xff]  ;;  %v5823_v31 = vld [vmem:[#allocation5 + $0x110] sm:$0xff] }
  0x68   :  { %v5776_v50 = vpack.c.bf16 %v8355_v49, %v8354_v48  ;;  %4597 = vmatpush3.bf16.msra.mxu0 %v4596_v0  ;;  %v4602_v40 = vpack.c.bf16 %v5532_v7, %v5528_v2  ;;  %4627 = vmatprep.subr.bf16.mxu1 %v5458_v45  ;;  %v4604_v63 = vpack.c.bf16 %v5549_v60, %v5545_v52  ;;  %v1126_v55 = vand.u32 4294901760, %v91_v18  ;;  %v8357_v60 = vld [vmem:[#allocation12_spill] sm:$0xff]  ;;  %v5829_v43 = vld [vmem:[#allocation5 + $0x1a0] sm:$0xff]  ;;  %v8362_v48 = vld [vmem:[#allocation17_spill] sm:$0xff] }
  0x69   :  { %4599 = vmatprep.subr.bf16.mxu0 %v4598_v16  ;;  %v4606_v3 = vpack.c.bf16 %v5562_v10, %v5558_v42  ;;  %v4608_v17 = vpack.c.bf16 %v5579_v59, %v5575_v9  ;;  %v4610_v47 = vpack.c.bf16 %v5592_v53, %v5588_v35  ;;  %v1129_v2 = vand.u32 4294901760, %v92_v38  ;;  %v8356_v59 = vld [vmem:[#allocation18_spill] sm:$0xff]  ;;  %v76_v35 = vld [vmem:[#allocation5 + $0x108] sm:$0xff] }
  0x6a   :  { %v4612_v7 = vpack.c.bf16 %v5609_v13, %v5605_v28  ;;  %v4614_v52 = vpack.c.bf16 %v8356_v59, %v5620_v8  ;;  %v5813_v42 = vsub.f32 %v91_v18, %v1126_v55  ;;  %v75_v9 = vld [vmem:[#allocation5 + $0x100] sm:$0xff]  ;;  %v4616_v53 = vpack.c.bf16 %v5653_v33, %v5628_v56  ;;  %v8358_v13 = vld [vmem:[#allocation13_spill] sm:$0xff]  ;;  %8361 = vst [vmem:[#allocation18_spill] sm:$0xff] %v5829_v43  ;;  %v8363_v0 = vld [vmem:[#allocation16_spill] sm:$0xff] }
  0x6b   :  { %4629 = vmatpush3.bf16.msra.mxu1 %v5466_v51  ;;  %v5815_v10 = vsub.f32 %v92_v38, %v1129_v2  ;;  %v93_v28 = vld [vmem:[#allocation5 + $0x190] sm:$0xff]  ;;  %v1078_v8 = vand.u32 4294901760, %v75_v9  ;;  %v1081_v21 = vand.u32 4294901760, %v76_v35  ;;  %v1135_v26 = vand.u32 4294901760, %v94_v5  ;;  %v8360_v33 = vld [vmem:[#allocation15_spill] sm:$0xff]  ;;  %v5827_v56 = vld [vmem:[#allocation5 + $0x118] sm:$0xff] }
  0x6c   :  { %4601 = vmatpush3.bf16.msra.mxu0 %v4600_v6  ;;  %4631 = vmatprep.subr.bf16.mxu1 %v5488_v4  ;;  %v8107_v46 = vand.u32 4294901760, %v5813_v42  ;;  %v1132_v20 = vand.u32 4294901760, %v93_v28  ;;  %v8108_v18 = vand.u32 4294901760, %v5823_v31  ;;  %v8370_v59 = vld [vmem:[#allocation20_spill] sm:$0xff] }
  0x6d   :  { %4603 = vmatprep.subr.bf16.mxu0 %v4602_v40  ;;  %v8106_v36 = vand.u32 4294901760, %v5815_v10  ;;  %v5834_v16 = vsub.f32 %v75_v9, %v1078_v8  ;;  %v5836_v6 = vsub.f32 %v76_v35, %v1081_v21  ;;  %v5838_v40 = vld [vmem:[#allocation5 + $0x1a8] sm:$0xff]  ;;  %v5864_v35 = vld [vmem:[#allocation5 + $0x1b8] sm:$0xff] }
  0x6e   :  { %8364 = vst [vmem:[#allocation12_spill] sm:$0xff] %v5838_v40  ;;  %v1305_v38 = vsub.f32 %v5813_v42, %v8107_v46  ;;  %8371 = vst [vmem:[#allocation16_spill] sm:$0xff] %v5864_v35  ;;  %v8115_v46 = vand.u32 4294901760, %v5864_v35 }
  0x6f   :  { %4633 = vmatpush3.bf16.msra.mxu1 %v5504_v22  ;;  %v8111_v49 = vand.u32 4294901760, %v5834_v16  ;;  %v8112_v9 = vand.u32 4294901760, %v5836_v6 }
  0x70   :  { %4605 = vmatpush3.bf16.msra.mxu0 %v4604_v63  ;;  %4635 = vmatprep.subr.bf16.mxu1 %v5517_v54  ;;  %v5840_v63 = vld [vmem:[#allocation5 + $0x120] sm:$0xff] }
  0x71   :  { %4607 = vmatprep.subr.bf16.mxu0 %v4606_v3  ;;  %8365 = vst [vmem:[#allocation13_spill] sm:$0xff] %v5840_v63  ;;  %v8367_v3 = vld [vmem:[#allocation21_spill] sm:$0xff] }
  0x73   :  { %4637 = vmatpush3.bf16.msra.mxu1 %v5534_v12 }
  0x74   :  { %4609 = vmatpush3.bf16.msra.mxu0 %v4608_v17  ;;  %4639 = vmatprep.subr.bf16.mxu1 %v8357_v60  ;;  %v5845_v17 = vpack.c.bf16 %v1129_v2, %v1126_v55  ;;  %v5860_v55 = vsub.f32 %v94_v5, %v1135_v26  ;;  %v8109_v2 = vand.u32 4294901760, %v5827_v56  ;;  %v5874_v5 = vpack.c.bf16 %v1135_v26, %v1132_v20 }
  0x75   :  { %4611 = vmatprep.subr.bf16.mxu0 %v4610_v47  ;;  %v1312_v47 = vsub.f32 %v5815_v10, %v8106_v36  ;;  %v5868_v36 = vpack.c.bf16 %v1081_v21, %v1078_v8  ;;  %v5882_v8 = vsub.f32 %v5823_v31, %v8108_v18  ;;  %v1306_v21 = vand.u32 4294901760, %v1305_v38  ;;  %v5900_v18 = vld [vmem:[#allocation5 + $0x130] sm:$0xff] }
  0x76   :  { %8368 = vst [vmem:[#allocation15_spill] sm:$0xff] %v5845_v17  ;;  %8374 = vst [vmem:[#allocation20_spill] sm:$0xff] %v5874_v5  ;;  %v8376_v26 = vand.u32 4294901760, %v5829_v43 }
  0x77   :  { %4641 = vmatpush3.bf16.msra.mxu1 %v8358_v13  ;;  %8373 = vst [vmem:[#allocation21_spill] sm:$0xff] %v5868_v36  ;;  %v8400_v38 = vand.u32 4294901760, %v5882_v8 }
  0x78   :  { %4613 = vmatpush3.bf16.msra.mxu0 %v4612_v7  ;;  %4643 = vmatprep.subr.bf16.mxu1 %v8359_v11  ;;  %v5854_v7 = vld [vmem:[#allocation5 + $0x1b0] sm:$0xff] }
  0x79   :  { %4615 = vmatprep.subr.bf16.mxu0 %v4614_v52  ;;  %8369 = vst [vmem:[#allocation17_spill] sm:$0xff] %v5854_v7  ;;  %v5858_v52 = vsub.f32 %v93_v28, %v1132_v20  ;;  %v5891_v20 = vsub.f32 %v5827_v56, %v8109_v2 }
  0x7b   :  { %4645 = vmatpush3.bf16.msra.mxu1 %v8360_v33 }
  0x7c   :  { %4617 = vmatpush3.bf16.msra.mxu0 %v4616_v53  ;;  %4647 = vmatprep.subr.bf16.mxu1 %v8363_v0  ;;  %v8372_v53 = vld [vmem:[#allocation19_spill] sm:$0xff] }
  0x7d   :  { %4651 = vmatprep.subr.bf16.mxu0 %v5697_v39  ;;  %v5842_v39 = vld [vmem:[#allocation5 + $0x128] sm:$0xff]  ;;  %8377 = vst [vmem:[#allocation19_spill] sm:$0xff] %v5900_v18 }
  0x7e   :  { %8366 = vst [vmem:[#allocation14_spill] sm:$0xff] %v5842_v39  ;;  %v8110_v28 = vand.u32 4294901760, %v5842_v39 }
  0x7f   :  { %692 = vmatmul.mubr.f32.vlgmr.msra.gmra.mrb[2].mxu0 %v8367_v3  ;;  %4649 = vmatpush3.bf16.msra.mxu1 %v8372_v53 }
  0x80   :  { %4653 = vmatpush3.bf16.msra.mxu0 %v5703_v34  ;;  %966 = vmatprep.mubr.f32.mxu0 %v8370_v59  ;;  %v1313_v34 = vand.u32 4294901760, %v1312_v47  ;;  %v5919_v47 = vsub.f32 %v5842_v39, %v8110_v28  ;;  %v5938_v28 = vld [vmem:[#allocation5 + $0x1c0] sm:$0xff] }
  0x81   :  { %4655 = vmatprep.subr.bf16.mxu0 %v5709_v24  ;;  %4683 = vmatprep.subr.bf16.mxu1 %v5427_v19  ;;  %v8375_v19 = vand.u32 4294901760, %v8367_v3  ;;  %v5896_v24 = vsub.f32 %v5829_v43, %v8376_v26  ;;  %v8379_v3 = vand.u32 4294901760, %v5838_v40  ;;  %v8380_v26 = vand.u32 4294901760, %v5840_v63  ;;  %8385 = vst [vmem:[#allocation26_spill] sm:$0xff] %v5938_v28  ;;  %v5951_v39 = vld [vmem:[#allocation5 + $0x140] sm:$0xff] }
  0x82   :  { %8388 = vst [vmem:[#allocation29_spill] sm:$0xff] %v5951_v39 }
  0x83   :  { %800 = vmatmul.mubr.f32.vlgmr.msra.gmra.mrb[2].mxu1 %v8375_v19  ;;  %v5909_v19 = vsub.f32 %v5838_v40, %v8379_v3  ;;  %v5914_v2 = vsub.f32 %v5840_v63, %v8380_v26  ;;  %v8383_v3 = vand.u32 4294901760, %v5854_v7 }
  0x84   :  { %4657 = vmatpush3.bf16.msra.mxu0 %v5715_v57  ;;  %v5902_v57 = vld [vmem:[#allocation5 + $0x138] sm:$0xff]  ;;  %4685 = vmatpush3.bf16.msra.mxu1 %v5431_v25  ;;  %v5926_v25 = vsub.f32 %v5834_v16, %v8111_v49  ;;  %v5947_v49 = vsub.f32 %v5864_v35, %v8115_v46  ;;  %v5966_v35 = vld [vmem:[#allocation5 + $0x148] sm:$0xff]  ;;  %v8396_v46 = vcombine.high %v8362_v48, %v8362_v48 }
  0x85   :  { %8378 = vst [vmem:[#allocation22_spill] sm:$0xff] %v5902_v57  ;;  %4659 = vmatprep.subr.bf16.mxu0 %v5721_v23  ;;  %4687 = vmatprep.subr.bf16.mxu1 %v5435_v27  ;;  %v5931_v23 = vsub.f32 %v5836_v6, %v8112_v9  ;;  %v5936_v26 = vsub.f32 %v5854_v7, %v8383_v3  ;;  %v5940_v27 = vld [vmem:[#allocation5 + $0x1c8] sm:$0xff]  ;;  %v8389_v3 = vand.u32 4294901760, %v5858_v52  ;;  %8393 = vst [vmem:[#allocation32_spill] sm:$0xff] %v5966_v35  ;;  %v5968_v9 = vld [vmem:[#allocation5 + $0x1d0] sm:$0xff] }
  0x86   :  { %1070 = vmatprep.mubr.f32.mxu1 %v8370_v59  ;;  %8381 = vst [vmem:[#allocation23_spill] sm:$0xff] %v5926_v25  ;;  %8386 = vst [vmem:[#allocation27_spill] sm:$0xff] %v5940_v27  ;;  %v5942_v59 = vpack.c.bf16 %v1313_v34, %v1306_v21  ;;  %v8391_v34 = vand.u32 4294901760, %v5860_v55  ;;  %v8399_v40 = vand.u32 4294901760, %v5902_v57  ;;  %v8403_v48 = vand.u32 4294901760, %v5940_v27  ;;  %v6074_v25 = vld [vmem:[#allocation5 + $0x170] sm:$0xff] }
  0x87   :  { %8382 = vst [vmem:[#allocation24_spill] sm:$0xff] %v5931_v23  ;;  %8384 = vst [vmem:[#allocation25_spill] sm:$0xff] %v5936_v26  ;;  %v5957_v7 = vsub.f32 %v5858_v52, %v8389_v3  ;;  %v8398_v3 = vand.u32 4294901760, %v5900_v18  ;;  %v6072_v23 = vld [vmem:[#allocation5 + $0x1f8] sm:$0xff] }
  0x88   :  { %8387 = vst [vmem:[#allocation28_spill] sm:$0xff] %v5942_v59  ;;  %4661 = vmatpush3.bf16.msra.mxu0 %v5727_v29  ;;  %v5962_v21 = vsub.f32 %v5860_v55, %v8391_v34  ;;  %8394 = vst [vmem:[#allocation33_spill] sm:$0xff] %v5968_v9  ;;  %4689 = vmatpush3.bf16.msra.mxu1 %v5442_v32  ;;  %v8395_v34 = vld [vmem:[#allocation11_spill] sm:$0xff]  ;;  %v6003_v29 = vsub.f32 %v5882_v8, %v8400_v38 }
  0x89   :  { %8390 = vst [vmem:[#allocation30_spill] sm:$0xff] %v5957_v7  ;;  %4663 = vmatprep.subr.bf16.mxu0 %v5734_v1  ;;  %v5979_v59 = vrot.slane %v8396_v46, %v8395_v34  ;;  %4691 = vmatprep.subr.bf16.mxu1 %v5458_v45  ;;  %v5989_v63 = vsub.f32 %v5900_v18, %v8398_v3  ;;  %v8401_v3 = vand.u32 4294901760, %v5891_v20  ;;  %v8402_v1 = vand.u32 4294901760, %v5938_v28  ;;  %v6052_v18 = vld [vmem:[#allocation5 + $0x160] sm:$0xff] }
  0x8a   :  { %8392 = vst [vmem:[#allocation31_spill] sm:$0xff] %v5962_v21  ;;  %v5994_v46 = vsub.f32 %v5902_v57, %v8399_v40  ;;  %v6010_v40 = vld [vmem:[#allocation5 + $0x1d8] sm:$0xff]  ;;  %v8404_v34 = vand.u32 4294901760, %v5896_v24  ;;  %v6050_v57 = vld [vmem:[#allocation5 + $0x1e8] sm:$0xff]  ;;  %8410 = vst [vmem:[#allocation38_spill] sm:$0xff] %v6052_v18 }
  0x8b   :  { %8397 = vst [vmem:[#allocation34_spill] sm:$0xff] %v5979_v59  ;;  %v6008_v32 = vsub.f32 %v5891_v20, %v8401_v3  ;;  %v189_v45 = vcombine.high %v5979_v59, %v5979_v59  ;;  %v6020_v38 = vsub.f32 %v5938_v28, %v8402_v1  ;;  %v6025_v3 = vsub.f32 %v5940_v27, %v8403_v48  ;;  %v6054_v21 = vld [vmem:[#allocation5 + $0x168] sm:$0xff] }
  0x8c   :  { %4665 = vmatpush3.bf16.msra.mxu0 %v5740_v14  ;;  %4693 = vmatpush3.bf16.msra.mxu1 %v5466_v51  ;;  %v6030_v59 = vsub.f32 %v5896_v24, %v8404_v34  ;;  %v6034_v51 = vld [vmem:[#allocation5 + $0x158] sm:$0xff]  ;;  %v6036_v14 = vld [vmem:[#allocation5 + $0x1e0] sm:$0xff]  ;;  %v8406_v1 = vand.u32 4294901760, %v5909_v19  ;;  %v8408_v48 = vand.u32 4294901760, %v5951_v39  ;;  %8409 = vst [vmem:[#allocation37_spill] sm:$0xff] %v6050_v57  ;;  %8411 = vst [vmem:[#allocation39_spill] sm:$0xff] %v6054_v21 }
  0x8d   :  { %4667 = vmatprep.subr.bf16.mxu0 %v5746_v15  ;;  %v6032_v15 = vld [vmem:[#allocation5 + $0x150] sm:$0xff]  ;;  %4695 = vmatprep.subr.bf16.mxu1 %v5488_v4  ;;  %v6056_v7 = vand.u32 4294901760, %v189_v45  ;;  %v8413_v4 = vand.u32 4294901760, %v5966_v35  ;;  %8417 = vst [vmem:[#allocation43_spill] sm:$0xff] %v6072_v23  ;;  %8418 = vst [vmem:[#allocation44_spill] sm:$0xff] %v6074_v25 }
  0x8e   :  { %8405 = vst [vmem:[#allocation35_spill] sm:$0xff] %v6030_v59  ;;  %v6042_v28 = vsub.f32 %v5909_v19, %v8406_v1  ;;  %v6047_v27 = vsub.f32 %v5951_v39, %v8408_v48  ;;  %v8415_v39 = vand.u32 4294901760, %v5968_v9  ;;  %v6070_v59 = vld [vmem:[#allocation5 + $0x1f0] sm:$0xff] }
  0x8f   :  { %8412 = vst [vmem:[#allocation40_spill] sm:$0xff] %v6056_v7  ;;  %v6061_v1 = vsub.f32 %v5966_v35, %v8413_v4  ;;  %8416 = vst [vmem:[#allocation42_spill] sm:$0xff] %v6070_v59  ;;  %v6081_v48 = vsub.f32 %v189_v45, %v6056_v7  ;;  %v6089_v4 = vld [vmem:[#allocation5 + $0x178] sm:$0xff] }
  0x90   :  { %8407 = vst [vmem:[#allocation36_spill] sm:$0xff] %v6042_v28  ;;  %v6068_v34 = vsub.f32 %v5968_v9, %v8415_v39  ;;  %4669 = vmatpush3.bf16.msra.mxu0 %v5752_v61  ;;  %4697 = vmatpush3.bf16.msra.mxu1 %v5504_v22  ;;  %v8420_v39 = vand.u32 4294901760, %v6010_v40  ;;  %v8422_v22 = vand.u32 4294901760, %v6034_v51 }
  0x91   :  { %8414 = vst [vmem:[#allocation41_spill] sm:$0xff] %v6061_v1  ;;  %8419 = vst [vmem:[#allocation45_spill] sm:$0xff] %v6081_v48  ;;  %4671 = vmatprep.subr.bf16.mxu0 %v5758_v37  ;;  %4699 = vmatprep.subr.bf16.mxu1 %v5517_v54  ;;  %v8421_v54 = vand.u32 4294901760, %v6032_v15 }
  0x92   :  { %v6099_v9 = vsub.f32 %v6010_v40, %v8420_v39  ;;  %v6113_v37 = vsub.f32 %v6034_v51, %v8422_v22  ;;  %v8423_v39 = vand.u32 4294901760, %v6036_v14  ;;  %v8425_v22 = vand.u32 4294901760, %v6052_v18 }
  0x93   :  { %v6108_v45 = vsub.f32 %v6032_v15, %v8421_v54 }
  0x94   :  { %4673 = vmatpush3.bf16.msra.mxu0 %v5764_v30  ;;  %v6118_v43 = vsub.f32 %v6036_v14, %v8423_v39  ;;  %4701 = vmatpush3.bf16.msra.mxu1 %v5534_v12  ;;  %v8424_v30 = vand.u32 4294901760, %v6050_v57  ;;  %v6132_v28 = vsub.f32 %v6052_v18, %v8425_v22  ;;  %v8426_v39 = vand.u32 4294901760, %v6054_v21 }
  0x95   :  { %4675 = vmatprep.subr.bf16.mxu0 %v5770_v44  ;;  %4703 = vmatprep.subr.bf16.mxu1 %v8357_v60  ;;  %v8427_v12 = vand.u32 4294901760, %v6070_v59  ;;  %v8429_v22 = vand.u32 4294901760, %v6074_v25 }
  0x96   :  { %v6126_v54 = vsub.f32 %v6050_v57, %v8424_v30  ;;  %v6137_v61 = vsub.f32 %v6054_v21, %v8426_v39  ;;  %v8428_v30 = vand.u32 4294901760, %v6072_v23  ;;  %v8431_v39 = vand.u32 4294901760, %v6081_v48 }
  0x97   :  { %v6143_v44 = vsub.f32 %v6070_v59, %v8427_v12  ;;  %v6153_v18 = vsub.f32 %v6074_v25, %v8429_v22  ;;  %v8437_v59 = vand.u32 4294901760, %v5834_v16  ;;  %v8444_v25 = vand.u32 4294901760, %v5891_v20 }
  0x98   :  { %v6148_v35 = vsub.f32 %v6072_v23, %v8428_v30  ;;  %v1176_v21 = vsub.f32 %v6081_v48, %v8431_v39  ;;  %4677 = vmatpush3.bf16.msra.mxu0 %v5776_v50  ;;  %v8432_v23 = vand.u32 4294901760, %v6089_v4  ;;  %4705 = vmatpush3.bf16.msra.mxu1 %v8358_v13  ;;  %v8435_v13 = vand.u32 4294901760, %v5815_v10 }
  0x99   :  { %8430 = vst [vmem:[#allocation46_spill] sm:$0xff] %v6153_v18  ;;  %4679 = vmatprep.subr.bf16.mxu0 %v5781_v58  ;;  %4707 = vmatprep.subr.bf16.mxu1 %v8359_v11  ;;  %v8434_v58 = vand.u32 4294901760, %v5813_v42  ;;  %v8438_v50 = vand.u32 4294901760, %v5836_v6  ;;  %v8440_v11 = vand.u32 4294901760, %v5858_v52  ;;  %v8443_v39 = vand.u32 4294901760, %v5882_v8 }
  0x9a   :  { %v6167_v22 = vsub.f32 %v6089_v4, %v8432_v23  ;;  %v1177_v23 = vand.u32 4294901760, %v1176_v21  ;;  %v8441_v21 = vand.u32 4294901760, %v5860_v55 }
  0x9b   :  { %v6185_v12 = vpack.c.bf16 %v8435_v13, %v8434_v58  ;;  %v6191_v30 = vpack.c.bf16 %v8438_v50, %v8437_v59  ;;  %v6203_v60 = vpack.c.bf16 %v8444_v25, %v8443_v39  ;;  %v8446_v58 = vand.u32 4294901760, %v5896_v24 }
  0x9c   :  { %8433 = vst [vmem:[#allocation47_spill] sm:$0xff] %v6167_v22  ;;  %v6197_v57 = vpack.c.bf16 %v8441_v21, %v8440_v11  ;;  %4681 = vmatpush3.bf16.msra.mxu0 %v5783_v41  ;;  %v8447_v13 = vand.u32 4294901760, %v5909_v19  ;;  %v8449_v50 = vand.u32 4294901760, %v5914_v2  ;;  %v8452_v21 = vand.u32 4294901760, %v5936_v26  ;;  %4709 = vmatpush3.bf16.msra.mxu1 %v8360_v33 }
  0x9d   :  { %8436 = vst [vmem:[#allocation48_spill] sm:$0xff] %v6185_v12  ;;  %8439 = vst [vmem:[#allocation49_spill] sm:$0xff] %v6191_v30  ;;  %v8450_v30 = vand.u32 4294901760, %v5919_v47  ;;  %v8455_v41 = vand.u32 4294901760, %v5989_v63  ;;  %v8456_v39 = vand.u32 4294901760, %v5994_v46  ;;  %4715 = vmatprep.subr.bf16.mxu0 %v5845_v17  ;;  %4711 = vmatprep.subr.bf16.mxu1 %v8363_v0  ;;  %v8467_v33 = vand.u32 4294901760, %v6108_v45 }
  0x9e   :  { %8442 = vst [vmem:[#allocation50_spill] sm:$0xff] %v6197_v57  ;;  %8445 = vst [vmem:[#allocation51_spill] sm:$0xff] %v6203_v60  ;;  %v6210_v59 = vpack.c.bf16 %v8447_v13, %v8446_v58  ;;  %v8453_v57 = vand.u32 4294901760, %v5947_v49  ;;  %v8459_v13 = vand.u32 4294901760, %v6025_v3  ;;  %v8468_v58 = vand.u32 4294901760, %v6113_v37  ;;  %v8497_v12 = vld [vmem:[#allocation36_spill] sm:$0xff] }
  0x9f   :  { %v6216_v11 = vpack.c.bf16 %v8450_v30, %v8449_v50  ;;  %v6228_v60 = vpack.c.bf16 %v8456_v39, %v8455_v41  ;;  %v8458_v30 = vand.u32 4294901760, %v6020_v38  ;;  %v8464_v41 = vand.u32 4294901760, %v6068_v34  ;;  %968 = vmatmul.mubr.f32.vlgmr.msra.gmra.mrb[4].mxu0 %v5643_v62 }
  0xa0   :  { %8448 = vst [vmem:[#allocation52_spill] sm:$0xff] %v6210_v59  ;;  %v6222_v25 = vpack.c.bf16 %v8453_v57, %v8452_v21  ;;  %v8461_v57 = vand.u32 4294901760, %v6047_v27  ;;  %v8462_v21 = vand.u32 4294901760, %v6061_v1  ;;  %v8465_v39 = vand.u32 4294901760, %v6099_v9  ;;  %4717 = vmatpush3.bf16.msra.mxu0 %v5868_v36  ;;  %1178 = vmatprep.mubr.f32.mxu0 %v1177_v23  ;;  %v8498_v23 = vld [vmem:[#allocation28_spill] sm:$0xff] }
  0xa1   :  { %8451 = vst [vmem:[#allocation53_spill] sm:$0xff] %v6216_v11  ;;  %8457 = vst [vmem:[#allocation55_spill] sm:$0xff] %v6228_v60  ;;  %v6237_v50 = vpack.c.bf16 %v8459_v13, %v8458_v30  ;;  %v6256_v30 = vpack.c.bf16 %v8468_v58, %v8467_v33  ;;  %v8470_v13 = vand.u32 4294901760, %v6118_v43  ;;  %v8476_v0 = vand.u32 4294901760, %v6143_v44  ;;  %4719 = vmatprep.subr.bf16.mxu0 %v5874_v5  ;;  %v8496_v11 = vld [vmem:[#allocation35_spill] sm:$0xff]  ;;  %v8499_v5 = vld [vmem:[#allocation30_spill] sm:$0xff] }
  0xa2   :  { %8454 = vst [vmem:[#allocation54_spill] sm:$0xff] %v6222_v25  ;;  %v6243_v25 = vpack.c.bf16 %v8462_v21, %v8461_v57  ;;  %v6249_v60 = vpack.c.bf16 %v8465_v39, %v8464_v41  ;;  %v8473_v21 = vand.u32 4294901760, %v6132_v28  ;;  %v8477_v39 = vand.u32 4294901760, %v6148_v35  ;;  %4713 = vmatpush3.bf16.msra.mxu1 %v8372_v53  ;;  %v8501_v53 = vld [vmem:[#allocation31_spill] sm:$0xff] }
  0xa3   :  { %8460 = vst [vmem:[#allocation56_spill] sm:$0xff] %v6237_v50  ;;  %8469 = vst [vmem:[#allocation59_spill] sm:$0xff] %v6256_v30  ;;  %v8471_v50 = vand.u32 4294901760, %v6126_v54  ;;  %v8479_v58 = vand.u32 4294901760, %v5823_v31  ;;  %v8480_v33 = vand.u32 4294901760, %v5827_v56  ;;  %v8486_v56 = vand.u32 4294901760, %v5919_v47  ;;  %4747 = vmatprep.subr.bf16.mxu1 %v8498_v23 }
  0xa4   :  { %8463 = vst [vmem:[#allocation57_spill] sm:$0xff] %v6243_v25  ;;  %8466 = vst [vmem:[#allocation58_spill] sm:$0xff] %v6249_v60  ;;  %v8474_v25 = vand.u32 4294901760, %v6137_v61  ;;  %v6274_v60 = vpack.c.bf16 %v8477_v39, %v8476_v0  ;;  %v1215_v0 = vand.u32 4294901760, %v6008_v32  ;;  %v8485_v39 = vand.u32 4294901760, %v5914_v2  ;;  %v8492_v32 = vld [vmem:[#allocation23_spill] sm:$0xff] }
  0xa5   :  { %v6262_v57 = vpack.c.bf16 %v8471_v50, %v8470_v13  ;;  %v6281_v50 = vpack.c.bf16 %v8480_v33, %v8479_v58  ;;  %v8482_v13 = vand.u32 4294901760, %v6153_v18  ;;  %v1228_v58 = vsub.f32 %v5919_v47, %v8486_v56  ;;  %1072 = vmatmul.mubr.f32.vlgmr.msra.gmra.mrb[4].mxu1 %v5643_v62 }
  0xa6   :  { %v6268_v41 = vpack.c.bf16 %v8474_v25, %v8473_v21  ;;  %8478 = vst [vmem:[#allocation62_spill] sm:$0xff] %v6274_v60  ;;  %v1208_v21 = vand.u32 4294901760, %v6003_v29  ;;  %v1221_v31 = vsub.f32 %v5914_v2, %v8485_v39  ;;  %v8493_v60 = vand.u32 4294901760, %v8492_v32  ;;  %1414 = vmatprep.mubr.f32.mxu1 %v6056_v7 }
  0xa7   :  { %8472 = vst [vmem:[#allocation60_spill] sm:$0xff] %v6262_v57  ;;  %8481 = vst [vmem:[#allocation63_spill] sm:$0xff] %v6281_v50  ;;  %v8483_v57 = vand.u32 4294901760, %v6167_v22  ;;  %v1334_v59 = vand.u32 4294901760, %v8496_v11  ;;  %v1341_v56 = vand.u32 4294901760, %v8497_v12  ;;  %v8500_v36 = vand.u32 4294901760, %v8499_v5  ;;  %4721 = vmatpush3.bf16.msra.mxu0 %v6281_v50 }
  0xa8   :  { %8475 = vst [vmem:[#allocation61_spill] sm:$0xff] %v6268_v41  ;;  %v8494_v41 = vld [vmem:[#allocation24_spill] sm:$0xff]  ;;  %v8502_v17 = vand.u32 4294901760, %v8501_v53  ;;  %v8507_v11 = vld [vmem:[#allocation14_spill] sm:$0xff]  ;;  %v8510_v5 = vld [vmem:[#allocation17_spill] sm:$0xff]  ;;  %v1222_v48 = vand.u32 4294901760, %v1221_v31 }
  0xa9   :  { %v6287_v25 = vpack.c.bf16 %v8483_v57, %v8482_v13  ;;  %v8487_v57 = vld [vmem:[#allocation18_spill] sm:$0xff]  ;;  %v8489_v13 = vld [vmem:[#allocation12_spill] sm:$0xff]  ;;  %v8495_v30 = vand.u32 4294901760, %v8494_v41  ;;  %v8508_v32 = vand.u32 4294901760, %v8507_v11  ;;  %v8516_v11 = vand.u32 4294901760, %v5994_v46 }
  0xaa   :  { %v8488_v33 = vand.u32 4294901760, %v8487_v57  ;;  %v4750_v57 = vpack.c.bf16 %v8502_v17, %v8500_v36  ;;  %v8511_v36 = vand.u32 4294901760, %v8510_v5  ;;  %v8512_v17 = vld [vmem:[#allocation16_spill] sm:$0xff]  ;;  %v8528_v7 = vand.u32 4294901760, %v6061_v1 }
  0xab   :  { %8484 = vst [vmem:[#allocation64_spill] sm:$0xff] %v6287_v25  ;;  %v8490_v25 = vand.u32 4294901760, %v8489_v13  ;;  %v4748_v39 = vpack.c.bf16 %v8495_v30, %v8493_v60  ;;  %v8503_v13 = vand.u32 4294901760, %v5936_v26  ;;  %v8505_v60 = vld [vmem:[#allocation13_spill] sm:$0xff]  ;;  %v8513_v23 = vand.u32 4294901760, %v8512_v17  ;;  %v8535_v50 = vld [vmem:[#allocation32_spill] sm:$0xff] }
  0xac   :  { %v8506_v30 = vand.u32 4294901760, %v8505_v60  ;;  %v8515_v60 = vand.u32 4294901760, %v5989_v63  ;;  %v1242_v62 = vsub.f32 %v5994_v46, %v8516_v11 }
  0xad   :  { %v6304_v29 = vpack.c.bf16 %v8490_v25, %v8488_v33  ;;  %v1347_v25 = vsub.f32 %v5936_v26, %v8503_v13  ;;  %v8504_v33 = vand.u32 4294901760, %v5947_v49  ;;  %v6335_v53 = vpack.c.bf16 %v8513_v23, %v8511_v36  ;;  %4749 = vmatpush3.bf16.msra.mxu1 %v4748_v39  ;;  %v8521_v39 = vld [vmem:[#allocation22_spill] sm:$0xff] }
  0xae   :  { %v6327_v12 = vpack.c.bf16 %v8508_v32, %v8506_v30  ;;  %v4752_v13 = vpack.c.bf16 %v1215_v0, %v1208_v21  ;;  %v1229_v26 = vand.u32 4294901760, %v1228_v58  ;;  %v1235_v30 = vsub.f32 %v5989_v63, %v8515_v60  ;;  %4751 = vmatprep.subr.bf16.mxu1 %v4750_v57  ;;  %v8526_v60 = vld [vmem:[#allocation27_spill] sm:$0xff] }
  0xaf   :  { %8491 = vst [vmem:[#allocation18_spill] sm:$0xff] %v6304_v29  ;;  %v1354_v41 = vsub.f32 %v5947_v49, %v8504_v33  ;;  %8514 = vst [vmem:[#allocation23_spill] sm:$0xff] %v6335_v53  ;;  %4723 = vmatprep.subr.bf16.mxu0 %v6304_v29  ;;  %v4754_v33 = vpack.c.bf16 %v1341_v56, %v1334_v59  ;;  %v1348_v32 = vand.u32 4294901760, %v1347_v25  ;;  %v8517_v36 = vand.u32 4294901760, %v6020_v38  ;;  %v8519_v59 = vld [vmem:[#allocation19_spill] sm:$0xff] }
  0xb0   :  { %8509 = vst [vmem:[#allocation12_spill] sm:$0xff] %v6327_v12  ;;  %v8518_v0 = vand.u32 4294901760, %v6025_v3  ;;  %v8520_v58 = vand.u32 4294901760, %v8519_v59  ;;  %v8522_v56 = vand.u32 4294901760, %v8521_v39  ;;  %v8523_v57 = vand.u32 4294901760, %v6047_v27  ;;  %4725 = vmatpush3.bf16.msra.mxu0 %v6327_v12  ;;  %v8529_v39 = vld [vmem:[#allocation34_spill] sm:$0xff] }
  0xb1   :  { %v1355_v5 = vand.u32 4294901760, %v1354_v41  ;;  %v1361_v21 = vsub.f32 %v6020_v38, %v8517_v36  ;;  %v8524_v41 = vld [vmem:[#allocation26_spill] sm:$0xff]  ;;  %v8527_v11 = vand.u32 4294901760, %v8526_v60  ;;  %v1256_v59 = vsub.f32 %v6061_v1, %v8528_v7  ;;  %4727 = vmatprep.subr.bf16.mxu0 %v6335_v53  ;;  %4753 = vmatpush3.bf16.msra.mxu1 %v4752_v13 }
  0xb2   :  { %v1368_v31 = vsub.f32 %v6025_v3, %v8518_v0  ;;  %v6355_v17 = vpack.c.bf16 %v8522_v56, %v8520_v58  ;;  %v1249_v25 = vsub.f32 %v6047_v27, %v8523_v57  ;;  %v8525_v23 = vand.u32 4294901760, %v8524_v41  ;;  %4755 = vmatprep.subr.bf16.mxu1 %v4754_v33 }
  0xb3   :  { %v4756_v0 = vpack.c.bf16 %v1229_v26, %v1222_v48  ;;  %v6371_v58 = vand.u32 4294901760, %v8529_v39  ;;  %v1236_v56 = vand.u32 4294901760, %v1235_v30  ;;  %v1243_v57 = vand.u32 4294901760, %v1242_v62 }
  0xb4   :  { %v6365_v36 = vpack.c.bf16 %v8527_v11, %v8525_v23  ;;  %v8531_v12 = vand.u32 4294901760, %v6068_v34  ;;  %v8532_v23 = vand.u32 4294901760, %v6099_v9  ;;  %v4758_v48 = vpack.c.bf16 %v1355_v5, %v1348_v32  ;;  %v8533_v11 = vld [vmem:[#allocation29_spill] sm:$0xff]  ;;  %4729 = vmatpush3.bf16.msra.mxu0 %v6355_v17 }
  0xb5   :  { %8530 = vst [vmem:[#allocation24_spill] sm:$0xff] %v6371_v58  ;;  %v1362_v60 = vand.u32 4294901760, %v1361_v21  ;;  %v1369_v7 = vand.u32 4294901760, %v1368_v31  ;;  %v8534_v29 = vand.u32 4294901760, %v8533_v11  ;;  %v8536_v1 = vand.u32 4294901760, %v8535_v50  ;;  %4757 = vmatpush3.bf16.msra.mxu1 %v4756_v0 }
  0xb6   :  { %v1375_v41 = vsub.f32 %v6068_v34, %v8531_v12  ;;  %v1382_v26 = vsub.f32 %v6099_v9, %v8532_v23  ;;  %v1250_v13 = vand.u32 4294901760, %v1249_v25  ;;  %v1257_v30 = vand.u32 4294901760, %v1256_v59  ;;  %4731 = vmatprep.subr.bf16.mxu0 %v6365_v36  ;;  %4759 = vmatprep.subr.bf16.mxu1 %v4758_v48 }
  0xb7   :  { %v6384_v53 = vpack.c.bf16 %v8536_v1, %v8534_v29  ;;  %v8537_v12 = vand.u32 4294901760, %v6108_v45  ;;  %v8538_v23 = vand.u32 4294901760, %v6113_v37  ;;  %v6395_v32 = vsub.f32 %v8529_v39, %v6371_v58  ;;  %v8540_v1 = vld [vmem:[#allocation33_spill] sm:$0xff] }
  0xb8   :  { %v8541_v50 = vand.u32 4294901760, %v8540_v1  ;;  %v8542_v29 = vand.u32 4294901760, %v6010_v40  ;;  %v4760_v21 = vpack.c.bf16 %v1243_v57, %v1236_v56  ;;  %v1376_v31 = vand.u32 4294901760, %v1375_v41  ;;  %v8548_v57 = vld [vmem:[#allocation37_spill] sm:$0xff] }
  0xb9   :  { %v1263_v62 = vsub.f32 %v6108_v45, %v8537_v12  ;;  %v1270_v33 = vsub.f32 %v6113_v37, %v8538_v23  ;;  %8539 = vst [vmem:[#allocation35_spill] sm:$0xff] %v6395_v32  ;;  %v1383_v25 = vand.u32 4294901760, %v1382_v26  ;;  %v4762_v59 = vpack.c.bf16 %v1369_v7, %v1362_v60  ;;  %4733 = vmatpush3.bf16.msra.mxu0 %v6384_v53 }
  0xba   :  { %v6402_v5 = vpack.c.bf16 %v8542_v29, %v8541_v50  ;;  %v8543_v11 = vand.u32 4294901760, %v6118_v43  ;;  %v8544_v39 = vand.u32 4294901760, %v6126_v54  ;;  %v8545_v0 = vand.u32 4294901760, %v6032_v15  ;;  %4761 = vmatpush3.bf16.msra.mxu1 %v4760_v21  ;;  %v8554_v21 = vld [vmem:[#allocation38_spill] sm:$0xff] }
  0xbb   :  { %v8546_v1 = vand.u32 4294901760, %v6034_v51  ;;  %v8547_v56 = vand.u32 4294901760, %v6036_v14  ;;  %v8549_v41 = vand.u32 4294901760, %v8548_v57  ;;  %v4764_v48 = vpack.c.bf16 %v1257_v30, %v1250_v13  ;;  %4763 = vmatprep.subr.bf16.mxu1 %v4762_v59  ;;  %v8559_v57 = vld [vmem:[#allocation42_spill] sm:$0xff] }
  0xbc   :  { %v1389_v12 = vsub.f32 %v6118_v43, %v8543_v11  ;;  %v1396_v23 = vsub.f32 %v6126_v54, %v8544_v39  ;;  %v1264_v60 = vand.u32 4294901760, %v1263_v62  ;;  %v1271_v7 = vand.u32 4294901760, %v1270_v33  ;;  %4735 = vmatprep.subr.bf16.mxu0 %v6402_v5 }
  0xbd   :  { %v6414_v40 = vpack.c.bf16 %v8546_v1, %v8545_v0  ;;  %v6420_v26 = vpack.c.bf16 %v8549_v41, %v8547_v56  ;;  %v8161_v50 = vand.u32 4294901760, %v6395_v32  ;;  %v4766_v15 = vpack.c.bf16 %v1383_v25, %v1376_v31  ;;  %v8556_v25 = vld [vmem:[#allocation39_spill] sm:$0xff] }
  0xbe   :  { %v8550_v51 = vand.u32 4294901760, %v6132_v28  ;;  %v8551_v14 = vand.u32 4294901760, %v6137_v61  ;;  %v1390_v39 = vand.u32 4294901760, %v1389_v12  ;;  %v1397_v0 = vand.u32 4294901760, %v1396_v23  ;;  %v8561_v12 = vld [vmem:[#allocation43_spill] sm:$0xff]  ;;  %4765 = vmatpush3.bf16.msra.mxu1 %v4764_v48 }
  0xbf   :  { %v8552_v13 = vand.u32 4294901760, %v6143_v44  ;;  %v8553_v62 = vand.u32 4294901760, %v6148_v35  ;;  %4737 = vmatpush3.bf16.msra.mxu0 %v6414_v40  ;;  %v8555_v31 = vand.u32 4294901760, %v8554_v21  ;;  %v8557_v1 = vand.u32 4294901760, %v8556_v25  ;;  %4767 = vmatprep.subr.bf16.mxu1 %v4766_v15 }
  0xc0   :  { %v1277_v29 = vsub.f32 %v6132_v28, %v8550_v51  ;;  %v1284_v11 = vsub.f32 %v6137_v61, %v8551_v14  ;;  %v8560_v59 = vand.u32 4294901760, %v8559_v57  ;;  %v8562_v23 = vand.u32 4294901760, %v8561_v12  ;;  %4739 = vmatprep.subr.bf16.mxu0 %v6420_v26 }
  0xc1   :  { %v1403_v30 = vsub.f32 %v6143_v44, %v8552_v13  ;;  %v1410_v33 = vsub.f32 %v6148_v35, %v8553_v62  ;;  %v6442_v56 = vpack.c.bf16 %v8557_v1, %v8555_v31  ;;  %v4768_v51 = vpack.c.bf16 %v1271_v7, %v1264_v60 }
  0xc2   :  { %v6448_v41 = vpack.c.bf16 %v8562_v23, %v8560_v59  ;;  %v1182_v14 = vsub.f32 %v6395_v32, %v8161_v50  ;;  %v1278_v13 = vand.u32 4294901760, %v1277_v29  ;;  %v1285_v62 = vand.u32 4294901760, %v1284_v11  ;;  %v8566_v59 = vld [vmem:[#allocation44_spill] sm:$0xff]  ;;  %v6508_v50 = vld [vmem:[#allocation5 + $0x218] sm:$0xff] }
  0xc3   :  { %8558 = vst [vmem:[#allocation36_spill] sm:$0xff] %v6442_v56  ;;  %v8564_v21 = vand.u32 4294901760, %v6153_v18  ;;  %v8565_v25 = vand.u32 4294901760, %v6167_v22  ;;  %v4770_v57 = vpack.c.bf16 %v1397_v0, %v1390_v39  ;;  %v1404_v60 = vand.u32 4294901760, %v1403_v30  ;;  %4741 = vmatpush3.bf16.msra.mxu0 %v6442_v56  ;;  %v6473_v39 = vld [vmem:[#allocation5 + $0x280] sm:$0xff]  ;;  %4769 = vmatpush3.bf16.msra.mxu1 %v4768_v51  ;;  %v6490_v51 = vld [vmem:[#allocation5 + $0x298] sm:$0xff] }
  0xc4   :  { %8563 = vst [vmem:[#allocation28_spill] sm:$0xff] %v6448_v41  ;;  %v1411_v7 = vand.u32 4294901760, %v1410_v33  ;;  %v8567_v12 = vand.u32 4294901760, %v8566_v59  ;;  %v8568_v48 = vand.u32 4294901760, %v6089_v4  ;;  %v4778_v11 = vpack.c.bf16 %v5815_v10, %v5813_v42  ;;  %8570 = vst [vmem:[#allocation31_spill] sm:$0xff] %v6473_v39  ;;  %4743 = vmatprep.subr.bf16.mxu0 %v6448_v41  ;;  %v6535_v10 = vld [vmem:[#allocation5 + $0x228] sm:$0xff] }
  0xc5   :  { %v1291_v31 = vsub.f32 %v6153_v18, %v8564_v21  ;;  %v1298_v1 = vsub.f32 %v6167_v22, %v8565_v25  ;;  %v4780_v23 = vpack.c.bf16 %v5836_v6, %v5834_v16  ;;  %v4782_v15 = vpack.c.bf16 %v5860_v55, %v5858_v52  ;;  %v6476_v21 = vld [vmem:[#allocation5 + $0x288] sm:$0xff]  ;;  %v6478_v25 = vld [vmem:[#allocation5 + $0x200] sm:$0xff]  ;;  %4771 = vmatprep.subr.bf16.mxu1 %v4770_v57  ;;  %v6488_v55 = vld [vmem:[#allocation5 + $0x290] sm:$0xff] }
  0xc6   :  { %v6465_v29 = vpack.c.bf16 %v8568_v48, %v8567_v12  ;;  %v1183_v0 = vand.u32 4294901760, %v1182_v14  ;;  %v4772_v30 = vpack.c.bf16 %v1285_v62, %v1278_v13  ;;  %8571 = vst [vmem:[#allocation13_spill] sm:$0xff] %v6476_v21  ;;  %8572 = vst [vmem:[#allocation14_spill] sm:$0xff] %v6478_v25  ;;  %v4774_v42 = vpack.c.bf16 %v1411_v7, %v1404_v60  ;;  %v6486_v52 = vld [vmem:[#allocation5 + $0x208] sm:$0xff]  ;;  %v8576_v14 = vld [vmem:[#allocation25_spill] sm:$0xff] }
  0xc7   :  { %v1292_v33 = vand.u32 4294901760, %v1291_v31  ;;  %v1299_v4 = vand.u32 4294901760, %v1298_v1  ;;  %8573 = vst [vmem:[#allocation17_spill] sm:$0xff] %v6486_v52  ;;  %8574 = vst [vmem:[#allocation16_spill] sm:$0xff] %v6488_v55  ;;  %v8162_v1 = vand.u32 4294901760, %v6473_v39  ;;  %v6499_v57 = vld [vmem:[#allocation5 + $0x210] sm:$0xff] }
  0xc8   :  { %8569 = vst [vmem:[#allocation30_spill] sm:$0xff] %v6465_v29  ;;  %8575 = vst [vmem:[#allocation19_spill] sm:$0xff] %v6490_v51  ;;  %4745 = vmatpush3.bf16.msra.mxu0 %v6465_v29  ;;  %v8578_v60 = vld [vmem:[#allocation41_spill] sm:$0xff]  ;;  %v8163_v12 = vand.u32 4294901760, %v6476_v21  ;;  %v8164_v48 = vand.u32 4294901760, %v6478_v25  ;;  %v6510_v62 = vld [vmem:[#allocation5 + $0x2a0] sm:$0xff]  ;;  %4773 = vmatpush3.bf16.msra.mxu1 %v4772_v30  ;;  %v8606_v29 = vpack.c.bf16 %v5909_v19, %v5896_v24 }
  0xc9   :  { %8577 = vst [vmem:[#allocation22_spill] sm:$0xff] %v6499_v57  ;;  %8579 = vst [vmem:[#allocation26_spill] sm:$0xff] %v6508_v50  ;;  %4779 = vmatprep.subr.bf16.mxu0 %v4778_v11  ;;  %v4776_v31 = vpack.c.bf16 %v1299_v4, %v1292_v33  ;;  %v8166_v13 = vand.u32 4294901760, %v6486_v52  ;;  %v8168_v6 = vand.u32 4294901760, %v6488_v55  ;;  %v6515_v16 = vld [vmem:[#allocation5 + $0x2a8] sm:$0xff]  ;;  %4775 = vmatprep.subr.bf16.mxu1 %v4774_v42  ;;  %v6533_v7 = vld [vmem:[#allocation5 + $0x220] sm:$0xff] }
  0xca   :  { %8580 = vst [vmem:[#allocation27_spill] sm:$0xff] %v6510_v62  ;;  %8581 = vst [vmem:[#allocation34_spill] sm:$0xff] %v6515_v16  ;;  %v6529_v4 = vsub.f32 %v6473_v39, %v8162_v1  ;;  %v6537_v11 = vld [vmem:[#allocation5 + $0x2b0] sm:$0xff]  ;;  %v6545_v1 = vsub.f32 %v6476_v21, %v8163_v12  ;;  %v6550_v59 = vsub.f32 %v6478_v25, %v8164_v48  ;;  %v6553_v30 = vld [vmem:[#allocation5 + $0x2b8] sm:$0xff]  ;;  %v8611_v19 = vand.u32 4294901760, %v6535_v10 }
  0xcb   :  { %1184 = vmatmul.mubr.f32.vlgmr.msra.gmra.mrb[6].mxu0 %v1183_v0  ;;  %8582 = vst [vmem:[#allocation29_spill] sm:$0xff] %v6533_v7  ;;  %8583 = vst [vmem:[#allocation32_spill] sm:$0xff] %v6535_v10  ;;  %v8585_v33 = vld [vmem:[#allocation45_spill] sm:$0xff]  ;;  %v6563_v12 = vsub.f32 %v6488_v55, %v8168_v6  ;;  %v8589_v0 = vand.u32 4294901760, %v6490_v51  ;;  %v6583_v21 = vld [vmem:[#allocation5 + $0x2c0] sm:$0xff]  ;;  %v8603_v55 = vpack.c.bf16 %v5891_v20, %v5882_v8 }
  0xcc   :  { %8584 = vst [vmem:[#allocation33_spill] sm:$0xff] %v6537_v11  ;;  %4781 = vmatpush3.bf16.msra.mxu0 %v4780_v23  ;;  %1551 = vmatprep.mubr.f32.mxu0 %v8585_v33  ;;  %8586 = vst [vmem:[#allocation37_spill] sm:$0xff] %v6553_v30  ;;  %v6558_v23 = vsub.f32 %v6486_v52, %v8166_v13  ;;  %v6570_v42 = vld [vmem:[#allocation5 + $0x230] sm:$0xff]  ;;  %v6572_v25 = vld [vmem:[#allocation5 + $0x238] sm:$0xff]  ;;  %v8609_v52 = vand.u32 4294901760, %v8585_v33  ;;  %v8613_v33 = vand.u32 4294901760, %v6553_v30 }
  0xcd   :  { %4783 = vmatprep.subr.bf16.mxu0 %v4782_v15  ;;  %4777 = vmatpush3.bf16.msra.mxu1 %v4776_v31  ;;  %8588 = vst [vmem:[#allocation39_spill] sm:$0xff] %v6563_v12  ;;  %v6568_v48 = vsub.f32 %v6490_v51, %v8589_v0  ;;  %8591 = vst [vmem:[#allocation43_spill] sm:$0xff] %v6570_v42  ;;  %v8593_v15 = vld [vmem:[#allocation15_spill] sm:$0xff]  ;;  %v8594_v31 = vand.u32 4294901760, %v6499_v57  ;;  %v8598_v51 = vand.u32 4294901760, %v6508_v50  ;;  %v8607_v8 = vld [vmem:[#allocation21_spill] sm:$0xff] }
  0xce   :  { %8587 = vst [vmem:[#allocation38_spill] sm:$0xff] %v6558_v23  ;;  %8592 = vst [vmem:[#allocation44_spill] sm:$0xff] %v6572_v25  ;;  %4811 = vmatprep.subr.bf16.mxu1 %v8593_v15  ;;  %v6585_v0 = vld [vmem:[#allocation5 + $0x2c8] sm:$0xff]  ;;  %v8600_v15 = vand.u32 4294901760, %v6510_v62  ;;  %v6712_v32 = vld [vmem:[#allocation5 + $0x278] sm:$0xff] }
  0xcf   :  { %8590 = vst [vmem:[#allocation42_spill] sm:$0xff] %v6568_v48  ;;  %v6578_v13 = vsub.f32 %v6499_v57, %v8594_v31  ;;  %8596 = vst [vmem:[#allocation41_spill] sm:$0xff] %v6583_v21  ;;  %v6590_v39 = vsub.f32 %v6508_v50, %v8598_v51  ;;  %v6599_v57 = vld [vmem:[#allocation5 + $0x240] sm:$0xff]  ;;  %v8604_v51 = vand.u32 4294901760, %v6515_v16  ;;  %v6613_v6 = vld [vmem:[#allocation5 + $0x248] sm:$0xff] }
  0xd0   :  { %8597 = vst [vmem:[#allocation45_spill] sm:$0xff] %v6585_v0  ;;  %v6595_v31 = vsub.f32 %v6510_v62, %v8600_v15  ;;  %8602 = vst [vmem:[#allocation67_spill] sm:$0xff] %v6599_v57  ;;  %4785 = vmatpush3.bf16.msra.mxu0 %v8603_v55  ;;  %1416 = vmatmul.mubr.f32.vlgmr.msra.gmra.mrb[6].mxu1 %v6371_v58  ;;  %v8610_v62 = vand.u32 4294901760, %v6533_v7  ;;  %v8612_v55 = vand.u32 4294901760, %v6537_v11  ;;  %v6654_v58 = vld [vmem:[#allocation5 + $0x250] sm:$0xff]  ;;  %v8616_v15 = vand.u32 4294901760, %v6570_v42 }
  0xd1   :  { %8595 = vst [vmem:[#allocation25_spill] sm:$0xff] %v6578_v13  ;;  %8599 = vst [vmem:[#allocation65_spill] sm:$0xff] %v6590_v39  ;;  %v6608_v50 = vsub.f32 %v6515_v16, %v8604_v51  ;;  %4787 = vmatprep.subr.bf16.mxu0 %v8606_v29  ;;  %4813 = vmatpush3.bf16.msra.mxu1 %v8607_v8  ;;  %v8608_v16 = vld [vmem:[#allocation20_spill] sm:$0xff]  ;;  %v6634_v29 = vsub.f32 %v6535_v10, %v8611_v19  ;;  %v6652_v10 = vld [vmem:[#allocation5 + $0x2d8] sm:$0xff]  ;;  %v8629_v41 = vand.u32 4294901760, %v6613_v6 }
  0xd2   :  { %8601 = vst [vmem:[#allocation66_spill] sm:$0xff] %v6595_v31  ;;  %4815 = vmatprep.subr.bf16.mxu1 %v8608_v16  ;;  %1658 = vmatprep.mubr.f32.mxu1 %v8609_v52  ;;  %v6629_v24 = vsub.f32 %v6533_v7, %v8610_v62  ;;  %v6639_v20 = vsub.f32 %v6537_v11, %v8612_v55  ;;  %v6650_v19 = vld [vmem:[#allocation5 + $0x2d0] sm:$0xff]  ;;  %8614 = vst [vmem:[#allocation69_spill] sm:$0xff] %v6654_v58  ;;  %v8617_v62 = vand.u32 4294901760, %v6572_v25  ;;  %v6671_v11 = vld [vmem:[#allocation5 + $0x258] sm:$0xff] }
  0xd3   :  { %8605 = vst [vmem:[#allocation68_spill] sm:$0xff] %v6608_v50  ;;  %v6645_v52 = vsub.f32 %v6553_v30, %v8613_v33  ;;  %v8615_v55 = vpack.c.bf16 %v5919_v47, %v5914_v2  ;;  %v6662_v33 = vsub.f32 %v6570_v42, %v8616_v15  ;;  %8618 = vst [vmem:[#allocation70_spill] sm:$0xff] %v6671_v11  ;;  %v6673_v16 = vld [vmem:[#allocation5 + $0x2e0] sm:$0xff]  ;;  %v6675_v2 = vld [vmem:[#allocation5 + $0x2e8] sm:$0xff]  ;;  %v8622_v7 = vand.u32 4294901760, %v6585_v0 }
  0xd4   :  { %v6667_v51 = vsub.f32 %v6572_v25, %v8617_v62  ;;  %v8619_v47 = vpack.c.bf16 %v5947_v49, %v8576_v14  ;;  %v8620_v15 = vld [vmem:[#allocation63_spill] sm:$0xff]  ;;  %v6697_v14 = vld [vmem:[#allocation5 + $0x2f0] sm:$0xff]  ;;  %v6708_v42 = vld [vmem:[#allocation5 + $0x2f8] sm:$0xff]  ;;  %v8630_v25 = vpack.c.bf16 %v5994_v46, %v5989_v63  ;;  %v8634_v18 = vand.u32 4294901760, %v6650_v19 }
  0xd5   :  { %4789 = vmatpush3.bf16.msra.mxu0 %v8615_v55  ;;  %4817 = vmatpush3.bf16.msra.mxu1 %v8620_v15  ;;  %v8621_v55 = vand.u32 4294901760, %v6583_v21  ;;  %v6689_v30 = vsub.f32 %v6585_v0, %v8622_v7  ;;  %v6693_v8 = vld [vmem:[#allocation5 + $0x260] sm:$0xff]  ;;  %v6695_v49 = vld [vmem:[#allocation5 + $0x268] sm:$0xff]  ;;  %8624 = vst [vmem:[#allocation72_spill] sm:$0xff] %v6697_v14  ;;  %8627 = vst [vmem:[#allocation73_spill] sm:$0xff] %v6708_v42  ;;  %v8637_v63 = vand.u32 4294901760, %v6654_v58 }
  0xd6   :  { %4791 = vmatprep.subr.bf16.mxu0 %v8619_v47  ;;  %8623 = vst [vmem:[#allocation71_spill] sm:$0xff] %v6695_v49  ;;  %v8625_v47 = vld [vmem:[#allocation18_spill] sm:$0xff]  ;;  %v6710_v15 = vld [vmem:[#allocation5 + $0x270] sm:$0xff]  ;;  %v6741_v22 = vsub.f32 %v6650_v19, %v8634_v18  ;;  %v8639_v0 = vand.u32 4294901760, %v6673_v16  ;;  %v8640_v7 = vpack.c.bf16 %v8578_v60, %v6047_v27  ;;  %v8643_v18 = vand.u32 4294901760, %v6695_v49 }
  0xd7   :  { %v6684_v62 = vsub.f32 %v6583_v21, %v8621_v55  ;;  %4819 = vmatprep.subr.bf16.mxu1 %v8625_v47  ;;  %v8626_v55 = vand.u32 4294901760, %v6599_v57  ;;  %8628 = vst [vmem:[#allocation74_spill] sm:$0xff] %v6710_v15  ;;  %v6717_v47 = vsub.f32 %v6613_v6, %v8629_v41  ;;  %v8631_v41 = vpack.c.bf16 %v6025_v3, %v6020_v38 }
  0xd8   :  { %v8636_v38 = vand.u32 4294901760, %v6652_v10  ;;  %v6753_v46 = vsub.f32 %v6654_v58, %v8637_v63  ;;  %v8642_v58 = vand.u32 4294901760, %v6693_v8  ;;  %v8646_v60 = vpack.c.bf16 %v6099_v9, %v6068_v34 }
  0xd9   :  { %v6703_v21 = vsub.f32 %v6599_v57, %v8626_v55  ;;  %4793 = vmatpush3.bf16.msra.mxu0 %v8630_v25  ;;  %v8632_v55 = vld [vmem:[#allocation12_spill] sm:$0xff]  ;;  %v8633_v25 = vld [vmem:[#allocation23_spill] sm:$0xff]  ;;  %v8638_v57 = vand.u32 4294901760, %v6671_v11  ;;  %v8665_v34 = vand.u32 4294901760, %v6590_v39 }
  0xda   :  { %4795 = vmatprep.subr.bf16.mxu0 %v8631_v41  ;;  %4821 = vmatpush3.bf16.msra.mxu1 %v8632_v55  ;;  %8635 = vst [vmem:[#allocation12_spill] sm:$0xff] %v6741_v22  ;;  %v6746_v3 = vsub.f32 %v6652_v10, %v8636_v38  ;;  %v6764_v38 = vsub.f32 %v6673_v16, %v8639_v0  ;;  %v8641_v41 = vand.u32 4294901760, %v6675_v2  ;;  %v8644_v0 = vand.u32 4294901760, %v6697_v14 }
  0xdb   :  { %4823 = vmatprep.subr.bf16.mxu1 %v8633_v25  ;;  %v6758_v56 = vsub.f32 %v6671_v11, %v8638_v57  ;;  %v6777_v57 = vsub.f32 %v6693_v8, %v8642_v58  ;;  %v6782_v11 = vsub.f32 %v6695_v49, %v8643_v18  ;;  %v8647_v58 = vand.u32 4294901760, %v6708_v42 }
  0xdc   :  { %v6772_v63 = vsub.f32 %v6675_v2, %v8641_v41  ;;  %v6787_v27 = vsub.f32 %v6697_v14, %v8644_v0  ;;  %v8649_v18 = vand.u32 4294901760, %v6710_v15  ;;  %v8651_v0 = vand.u32 4294901760, %v6712_v32 }
  0xdd   :  { %4797 = vmatpush3.bf16.msra.mxu0 %v8640_v7  ;;  %v6797_v41 = vsub.f32 %v6708_v42, %v8647_v58  ;;  %v8654_v7 = vpack.c.bf16 %v6126_v54, %v6118_v43  ;;  %v8656_v58 = vand.u32 4294901760, %v6545_v1  ;;  %v8658_v43 = vand.u32 4294901760, %v6550_v59 }
  0xde   :  { %8645 = vst [vmem:[#allocation23_spill] sm:$0xff] %v6787_v27  ;;  %4799 = vmatprep.subr.bf16.mxu0 %v8646_v60  ;;  %4825 = vmatpush3.bf16.msra.mxu1 %v6355_v17  ;;  %v6802_v49 = vsub.f32 %v6710_v15, %v8649_v18  ;;  %v6807_v14 = vsub.f32 %v6712_v32, %v8651_v0  ;;  %v8659_v54 = vand.u32 4294901760, %v6558_v23  ;;  %v8661_v15 = vand.u32 4294901760, %v6563_v12 }
  0xdf   :  { %8648 = vst [vmem:[#allocation75_spill] sm:$0xff] %v6797_v41  ;;  %4827 = vmatprep.subr.bf16.mxu1 %v6365_v36  ;;  %v8653_v0 = vpack.c.bf16 %v6113_v37, %v6108_v45  ;;  %v8662_v45 = vand.u32 4294901760, %v6568_v48  ;;  %v8664_v37 = vand.u32 4294901760, %v6578_v13 }
  0xe0   :  { %8650 = vst [vmem:[#allocation76_spill] sm:$0xff] %v6802_v49  ;;  %8652 = vst [vmem:[#allocation77_spill] sm:$0xff] %v6807_v14 }
  0xe1   :  { %4801 = vmatpush3.bf16.msra.mxu0 %v8653_v0  ;;  %v8655_v0 = vand.u32 4294901760, %v6529_v4  ;;  %v6850_v42 = vpack.c.bf16 %v8662_v45, %v8661_v15  ;;  %v6856_v9 = vpack.c.bf16 %v8665_v34, %v8664_v37  ;;  %v8673_v15 = vand.u32 4294901760, %v6639_v20 }
  0xe2   :  { %4803 = vmatprep.subr.bf16.mxu0 %v8654_v7  ;;  %4829 = vmatpush3.bf16.msra.mxu1 %v6384_v53  ;;  %v6844_v7 = vpack.c.bf16 %v8659_v54, %v8658_v43  ;;  %v8670_v43 = vand.u32 4294901760, %v6629_v24  ;;  %v8671_v54 = vand.u32 4294901760, %v6634_v29  ;;  %v8674_v45 = vand.u32 4294901760, %v6645_v52 }
  0xe3   :  { %4831 = vmatprep.subr.bf16.mxu1 %v6402_v5  ;;  %v6838_v60 = vpack.c.bf16 %v8656_v58, %v8655_v0  ;;  %8663 = vst [vmem:[#allocation80_spill] sm:$0xff] %v6850_v42  ;;  %8666 = vst [vmem:[#allocation81_spill] sm:$0xff] %v6856_v9  ;;  %v8667_v58 = vand.u32 4294901760, %v6595_v31  ;;  %v8668_v0 = vand.u32 4294901760, %v6608_v50  ;;  %v8676_v34 = vand.u32 4294901760, %v6662_v33 }
  0xe4   :  { %8660 = vst [vmem:[#allocation79_spill] sm:$0xff] %v6844_v7  ;;  %v6868_v7 = vpack.c.bf16 %v8671_v54, %v8670_v43  ;;  %v6874_v42 = vpack.c.bf16 %v8674_v45, %v8673_v15  ;;  %v8677_v37 = vand.u32 4294901760, %v6667_v51  ;;  %v8681_v43 = vand.u32 4294901760, %v6689_v30 }
  0xe5   :  { %8657 = vst [vmem:[#allocation78_spill] sm:$0xff] %v6838_v60  ;;  %v6862_v18 = vpack.c.bf16 %v8668_v0, %v8667_v58  ;;  %v8679_v58 = vpack.c.bf16 %v6137_v61, %v6132_v28  ;;  %v8680_v0 = vand.u32 4294901760, %v6684_v62  ;;  %v8684_v15 = vand.u32 4294901760, %v6717_v47  ;;  %v8755_v60 = vld [vmem:[#allocation17_spill] sm:$0xff] }
  0xe6   :  { %8672 = vst [vmem:[#allocation83_spill] sm:$0xff] %v6868_v7  ;;  %8675 = vst [vmem:[#allocation84_spill] sm:$0xff] %v6874_v42  ;;  %v6880_v9 = vpack.c.bf16 %v8677_v37, %v8676_v34  ;;  %v8683_v7 = vand.u32 4294901760, %v6703_v21  ;;  %v8686_v42 = vand.u32 4294901760, %v6741_v22  ;;  %v8687_v34 = vand.u32 4294901760, %v6746_v3  ;;  %4833 = vmatpush3.bf16.msra.mxu1 %v6414_v40 }
  0xe7   :  { %8669 = vst [vmem:[#allocation82_spill] sm:$0xff] %v6862_v18  ;;  %4805 = vmatpush3.bf16.msra.mxu0 %v8679_v58  ;;  %v6889_v54 = vpack.c.bf16 %v8681_v43, %v8680_v0  ;;  %v8689_v28 = vand.u32 4294901760, %v6753_v46  ;;  %v8690_v61 = vand.u32 4294901760, %v6758_v56  ;;  %v8692_v0 = vpack.c.bf16 %v6148_v35, %v6143_v44  ;;  %4835 = vmatprep.subr.bf16.mxu1 %v6420_v26  ;;  %v8728_v18 = vld [vmem:[#allocation55_spill] sm:$0xff] }
  0xe8   :  { %8678 = vst [vmem:[#allocation85_spill] sm:$0xff] %v6880_v9  ;;  %v6895_v45 = vpack.c.bf16 %v8684_v15, %v8683_v7  ;;  %v6901_v37 = vpack.c.bf16 %v8687_v34, %v8686_v42  ;;  %v8693_v7 = vand.u32 4294901760, %v6764_v38  ;;  %v8694_v43 = vand.u32 4294901760, %v6772_v63  ;;  %v8724_v9 = vld [vmem:[#allocation53_spill] sm:$0xff] }
  0xe9   :  { %8682 = vst [vmem:[#allocation86_spill] sm:$0xff] %v6889_v54  ;;  %v6907_v58 = vpack.c.bf16 %v8690_v61, %v8689_v28  ;;  %4807 = vmatprep.subr.bf16.mxu0 %v8692_v0  ;;  %v8696_v42 = vand.u32 4294901760, %v6777_v57  ;;  %v8697_v34 = vand.u32 4294901760, %v6782_v11  ;;  %v8699_v28 = vand.u32 4294901760, %v6787_v27  ;;  %v8722_v54 = vld [vmem:[#allocation21_spill] sm:$0xff] }
  0xea   :  { %8685 = vst [vmem:[#allocation87_spill] sm:$0xff] %v6895_v45  ;;  %8688 = vst [vmem:[#allocation88_spill] sm:$0xff] %v6901_v37  ;;  %v6917_v15 = vpack.c.bf16 %v8694_v43, %v8693_v7  ;;  %v8700_v61 = vand.u32 4294901760, %v6797_v41  ;;  %v8702_v44 = vand.u32 4294901760, %v6802_v49  ;;  %v8703_v0 = vand.u32 4294901760, %v6807_v14  ;;  %v8705_v43 = vld [vmem:[#allocation47_spill] sm:$0xff] }
  0xeb   :  { %8691 = vst [vmem:[#allocation89_spill] sm:$0xff] %v6907_v58  ;;  %v6923_v37 = vpack.c.bf16 %v8697_v34, %v8696_v42  ;;  %v8708_v42 = vld [vmem:[#allocation48_spill] sm:$0xff]  ;;  %v8714_v45 = vld [vmem:[#allocation50_spill] sm:$0xff] }
  0xec   :  { %8695 = vst [vmem:[#allocation90_spill] sm:$0xff] %v6917_v15  ;;  %v6929_v35 = vpack.c.bf16 %v8700_v61, %v8699_v28  ;;  %v6936_v7 = vpack.c.bf16 %v8703_v0, %v8702_v44  ;;  %v8706_v15 = vld [vmem:[#allocation46_spill] sm:$0xff]  ;;  %v8709_v34 = vld [vmem:[#allocation36_spill] sm:$0xff]  ;;  %v8711_v28 = vld [vmem:[#allocation35_spill] sm:$0xff] }
  0xed   :  { %8698 = vst [vmem:[#allocation91_spill] sm:$0xff] %v6923_v37  ;;  %v8707_v58 = vpack.c.bf16 %v8705_v43, %v8706_v15  ;;  %4837 = vmatpush3.bf16.msra.mxu1 %v8709_v34  ;;  %v8710_v37 = vld [vmem:[#allocation28_spill] sm:$0xff]  ;;  %v8712_v61 = vld [vmem:[#allocation49_spill] sm:$0xff]  ;;  %v8715_v44 = vld [vmem:[#allocation30_spill] sm:$0xff]  ;;  %v8719_v43 = vand.u32 4294901760, %v8711_v28 }
  0xee   :  { %8701 = vst [vmem:[#allocation92_spill] sm:$0xff] %v6929_v35  ;;  %8704 = vst [vmem:[#allocation93_spill] sm:$0xff] %v6936_v7  ;;  %4839 = vmatprep.subr.bf16.mxu1 %v8710_v37  ;;  %v8713_v35 = vld [vmem:[#allocation40_spill] sm:$0xff]  ;;  %v6949_v0 = vld [vmem:[#allocation2 + $0x8] sm:$0xff] }
  0xef   :  { %4809 = vmatpush3.bf16.msra.mxu0 %v8707_v58  ;;  %8716 = vst [vmem:[#allocation47_spill] sm:$0xff] %v6949_v0  ;;  %v8717_v15 = vld [vmem:[#allocation15_spill] sm:$0xff]  ;;  %v8764_v14 = vld [vmem:[#allocation24_spill] sm:$0xff] }
  0xf0   :  { %4843 = vmatprep.subr.bf16.mxu0 %v8708_v42  ;;  %v8718_v58 = vld [vmem:[#allocation51_spill] sm:$0xff] }
  0xf1   :  { %4841 = vmatpush3.bf16.msra.mxu1 %v8715_v44  ;;  %v8720_v42 = vld [vmem:[#allocation11_spill] sm:$0xff] }
  0xf2   :  { %1554 = vmatmul.mubr.f32.vlgmr.msra.gmra.mrb[8].mxu0 %v8711_v28  ;;  %4875 = vmatprep.subr.bf16.mxu1 %v8717_v15  ;;  %v6957_v7 = vrot.slane %v6949_v0, %v8720_v42  ;;  %v8726_v28 = vld [vmem:[#allocation63_spill] sm:$0xff]  ;;  %v8750_v42 = vand.u32 4294901760, %v6590_v39  ;;  %v8753_v0 = vld [vmem:[#allocation14_spill] sm:$0xff] }
  0xf3   :  { %4845 = vmatpush3.bf16.msra.mxu0 %v8712_v61  ;;  %1828 = vmatprep.mubr.f32.mxu0 %v8713_v35  ;;  %v8721_v61 = vld [vmem:[#allocation52_spill] sm:$0xff] }
  0xf4   :  { %4847 = vmatprep.subr.bf16.mxu0 %v8714_v45  ;;  %1662 = vmatmul.mubr.f32.vlgmr.msra.gmra.mrb[8].mxu1 %v8719_v43  ;;  %v8723_v45 = vld [vmem:[#allocation20_spill] sm:$0xff]  ;;  %v205_v15 = vcombine.high %v6957_v7, %v6957_v7  ;;  %v8727_v43 = vld [vmem:[#allocation18_spill] sm:$0xff] }
  0xf5   :  { %4877 = vmatpush3.bf16.msra.mxu1 %v8722_v54  ;;  %1932 = vmatprep.mubr.f32.mxu1 %v8713_v35  ;;  %v8730_v54 = vld [vmem:[#allocation56_spill] sm:$0xff] }
  0xf6   :  { %4879 = vmatprep.subr.bf16.mxu1 %v8723_v45  ;;  %v8733_v45 = vld [vmem:[#allocation58_spill] sm:$0xff] }
  0xf7   :  { %4849 = vmatpush3.bf16.msra.mxu0 %v8718_v58  ;;  %v8725_v58 = vld [vmem:[#allocation54_spill] sm:$0xff] }
  0xf8   :  { %4851 = vmatprep.subr.bf16.mxu0 %v8721_v61  ;;  %v6970_v61 = vand.u32 4294901760, %v205_v15 }
  0xf9   :  { %4881 = vmatpush3.bf16.msra.mxu1 %v8726_v28  ;;  %v8735_v28 = vld [vmem:[#allocation60_spill] sm:$0xff] }
  0xfa   :  { %4883 = vmatprep.subr.bf16.mxu1 %v8727_v43  ;;  %8729 = vst [vmem:[#allocation46_spill] sm:$0xff] %v6970_v61  ;;  %v6977_v35 = vsub.f32 %v205_v15, %v6970_v61  ;;  %v8737_v15 = vand.u32 4294901760, %v6545_v1  ;;  %v8738_v43 = vld [vmem:[#allocation61_spill] sm:$0xff] }
  0xfb   :  { %4853 = vmatpush3.bf16.msra.mxu0 %v8724_v9  ;;  %v8731_v9 = vld [vmem:[#allocation57_spill] sm:$0xff] }
  0xfc   :  { %4855 = vmatprep.subr.bf16.mxu0 %v8725_v58  ;;  %8732 = vst [vmem:[#allocation48_spill] sm:$0xff] %v6977_v35  ;;  %v8204_v58 = vand.u32 4294901760, %v6977_v35 }
  0xfd   :  { %4885 = vmatpush3.bf16.msra.mxu1 %v8632_v55  ;;  %v8736_v55 = vand.u32 4294901760, %v6529_v4 }
  0xfe   :  { %4887 = vmatprep.subr.bf16.mxu1 %v8633_v25 }
  0xff   :  { %4857 = vmatpush3.bf16.msra.mxu0 %v8728_v18  ;;  %v8734_v18 = vld [vmem:[#allocation59_spill] sm:$0xff]  ;;  %v2167_v25 = vsub.f32 %v6529_v4, %v8736_v55 }
 0x100   :  { %4859 = vmatprep.subr.bf16.mxu0 %v8730_v54  ;;  %v8739_v54 = vld [vmem:[#allocation62_spill] sm:$0xff] }
 0x101   :  { %4889 = vmatpush3.bf16.msra.mxu1 %v6355_v17  ;;  %v2174_v17 = vsub.f32 %v6545_v1, %v8737_v15  ;;  %v8746_v15 = vand.u32 4294901760, %v6558_v23 }
 0x102   :  { %4891 = vmatprep.subr.bf16.mxu1 %v6365_v36  ;;  %v2038_v36 = vsub.f32 %v6977_v35, %v8204_v58  ;;  %v2168_v58 = vand.u32 4294901760, %v2167_v25  ;;  %v8756_v35 = vand.u32 4294901760, %v8755_v60 }
 0x103   :  { %4861 = vmatpush3.bf16.msra.mxu0 %v8731_v9  ;;  %v8742_v9 = vld [vmem:[#allocation13_spill] sm:$0xff] }
 0x104   :  { %4863 = vmatprep.subr.bf16.mxu0 %v8733_v45  ;;  %v8743_v45 = vand.u32 4294901760, %v8742_v9  ;;  %v8748_v9 = vand.u32 4294901760, %v6568_v48 }
 0x105   :  { %4893 = vmatpush3.bf16.msra.mxu1 %v6384_v53  ;;  %v8740_v53 = vld [vmem:[#allocation31_spill] sm:$0xff] }
 0x106   :  { %4895 = vmatprep.subr.bf16.mxu1 %v6402_v5  ;;  %v8741_v5 = vand.u32 4294901760, %v8740_v53 }
 0x107   :  { %4865 = vmatpush3.bf16.msra.mxu0 %v8734_v18 }
 0x108   :  { %4867 = vmatprep.subr.bf16.mxu0 %v8735_v28  ;;  %v7003_v18 = vpack.c.bf16 %v8743_v45, %v8741_v5  ;;  %v8745_v28 = vand.u32 4294901760, %v6550_v59  ;;  %v2188_v5 = vsub.f32 %v6568_v48, %v8748_v9  ;;  %v8749_v45 = vand.u32 4294901760, %v6578_v13 }
 0x109   :  { %4897 = vmatpush3.bf16.msra.mxu1 %v6414_v40  ;;  %v8747_v40 = vand.u32 4294901760, %v6563_v12  ;;  %v8758_v9 = vand.u32 4294901760, %v6608_v50 }
 0x10a   :  { %8744 = vst [vmem:[#allocation36_spill] sm:$0xff] %v7003_v18  ;;  %v2055_v55 = vsub.f32 %v6550_v59, %v8745_v28  ;;  %4899 = vmatprep.subr.bf16.mxu1 %v6420_v26  ;;  %v2069_v28 = vsub.f32 %v6578_v13, %v8749_v45  ;;  %v8751_v26 = vand.u32 4294901760, %v6595_v31  ;;  %v2039_v13 = vand.u32 4294901760, %v2038_v36  ;;  %v8765_v36 = vld [vmem:[#allocation22_spill] sm:$0xff] }
 0x10b   :  { %4869 = vmatpush3.bf16.msra.mxu0 %v8738_v43  ;;  %v2062_v43 = vsub.f32 %v6558_v23, %v8746_v15  ;;  %v2181_v53 = vsub.f32 %v6563_v12, %v8747_v40  ;;  %v2076_v15 = vsub.f32 %v6590_v39, %v8750_v42  ;;  %v8754_v40 = vand.u32 4294901760, %v8753_v0  ;;  %v8759_v42 = vld [vmem:[#allocation16_spill] sm:$0xff] }
 0x10c   :  { %4871 = vmatprep.subr.bf16.mxu0 %v8739_v54  ;;  %v2175_v54 = vand.u32 4294901760, %v2174_v17  ;;  %v2195_v25 = vsub.f32 %v6595_v31, %v8751_v26  ;;  %v8752_v17 = vld [vmem:[#allocation64_spill] sm:$0xff]  ;;  %v2202_v45 = vsub.f32 %v6608_v50, %v8758_v9  ;;  %v8760_v39 = vand.u32 4294901760, %v8759_v42  ;;  %v8761_v26 = vld [vmem:[#allocation19_spill] sm:$0xff] }
 0x10d   :  { %v7032_v12 = vpack.c.bf16 %v8756_v35, %v8754_v40  ;;  %4901 = vmatpush3.bf16.msra.mxu1 %v8709_v34  ;;  %v8762_v31 = vand.u32 4294901760, %v8761_v26  ;;  %v2056_v0 = vand.u32 4294901760, %v2055_v55  ;;  %v2063_v48 = vand.u32 4294901760, %v2062_v43 }
 0x10e   :  { %4903 = vmatprep.subr.bf16.mxu1 %v8710_v37  ;;  %v4938_v60 = vpack.c.bf16 %v2175_v54, %v2168_v58  ;;  %v2182_v35 = vand.u32 4294901760, %v2181_v53  ;;  %v2189_v40 = vand.u32 4294901760, %v2188_v5  ;;  %v8766_v9 = vand.u32 4294901760, %v8765_v36  ;;  %v8774_v53 = vld [vmem:[#allocation34_spill] sm:$0xff] }
 0x10f   :  { %4873 = vmatpush3.bf16.msra.mxu0 %v8752_v17  ;;  %8757 = vst [vmem:[#allocation28_spill] sm:$0xff] %v7032_v12  ;;  %v7043_v17 = vpack.c.bf16 %v8762_v31, %v8760_v39  ;;  %v2070_v42 = vand.u32 4294901760, %v2069_v28  ;;  %v2077_v23 = vand.u32 4294901760, %v2076_v15  ;;  %v2196_v26 = vand.u32 4294901760, %v2195_v25 }
 0x110   :  { %4907 = vmatprep.subr.bf16.mxu0 %v7003_v18  ;;  %v8767_v18 = vld [vmem:[#allocation26_spill] sm:$0xff]  ;;  %v2203_v39 = vand.u32 4294901760, %v2202_v45  ;;  %v8769_v31 = vand.u32 4294901760, %v6629_v24  ;;  %v8770_v58 = vand.u32 4294901760, %v6634_v29  ;;  %v8771_v43 = vand.u32 4294901760, %v6639_v20 }
 0x111   :  { %8763 = vst [vmem:[#allocation35_spill] sm:$0xff] %v7043_v17  ;;  %v8768_v50 = vand.u32 4294901760, %v8767_v18  ;;  %4905 = vmatpush3.bf16.msra.mxu1 %v8715_v44  ;;  %v8775_v5 = vand.u32 4294901760, %v8774_v53  ;;  %v4940_v15 = vpack.c.bf16 %v2063_v48, %v2056_v0  ;;  %v8776_v25 = vand.u32 4294901760, %v6645_v52  ;;  %v8781_v44 = vld [vmem:[#allocation33_spill] sm:$0xff] }
 0x112   :  { %1830 = vmatmul.mubr.f32.vlgmr.msra.gmra.mrb[10].mxu0 %v8764_v14  ;;  %v2083_v37 = vsub.f32 %v6629_v24, %v8769_v31  ;;  %v2090_v55 = vsub.f32 %v6634_v29, %v8770_v58  ;;  %v2209_v18 = vsub.f32 %v6639_v20, %v8771_v43  ;;  %4939 = vmatprep.subr.bf16.mxu1 %v4938_v60 }
 0x113   :  { %v7051_v34 = vpack.c.bf16 %v8768_v50, %v8766_v9  ;;  %4909 = vmatpush3.bf16.msra.mxu0 %v7032_v12  ;;  %2040 = vmatprep.mubr.f32.mxu0 %v2039_v13  ;;  %v8772_v50 = vld [vmem:[#allocation27_spill] sm:$0xff]  ;;  %v2216_v45 = vsub.f32 %v6645_v52, %v8776_v25  ;;  %v4942_v36 = vpack.c.bf16 %v2189_v40, %v2182_v35  ;;  %v8777_v9 = vld [vmem:[#allocation29_spill] sm:$0xff]  ;;  %v8779_v13 = vld [vmem:[#allocation32_spill] sm:$0xff] }
 0x114   :  { %4911 = vmatprep.subr.bf16.mxu0 %v7043_v17  ;;  %v8773_v54 = vand.u32 4294901760, %v8772_v50  ;;  %v8778_v31 = vand.u32 4294901760, %v8777_v9  ;;  %v8780_v58 = vand.u32 4294901760, %v8779_v13  ;;  %v8782_v17 = vand.u32 4294901760, %v8781_v44  ;;  %v8783_v50 = vld [vmem:[#allocation37_spill] sm:$0xff]  ;;  %1934 = vmatmul.mubr.f32.vlgmr.msra.gmra.mrb[10].mxu1 %v8764_v14  ;;  %v8794_v9 = vld [vmem:[#allocation44_spill] sm:$0xff] }
 0x115   :  { %v8784_v12 = vand.u32 4294901760, %v8783_v50  ;;  %v4946_v48 = vpack.c.bf16 %v2203_v39, %v2196_v26  ;;  %v2084_v0 = vand.u32 4294901760, %v2083_v37  ;;  %v2091_v60 = vand.u32 4294901760, %v2090_v55  ;;  %4941 = vmatpush3.bf16.msra.mxu1 %v4940_v15  ;;  %2276 = vmatprep.mubr.f32.mxu1 %v6970_v61  ;;  %v8792_v15 = vld [vmem:[#allocation43_spill] sm:$0xff]  ;;  %v8798_v50 = vld [vmem:[#allocation45_spill] sm:$0xff] }
 0x116   :  { %v7069_v28 = vpack.c.bf16 %v8775_v5, %v8773_v54  ;;  %v7078_v43 = vpack.c.bf16 %v8780_v58, %v8778_v31  ;;  %v4944_v54 = vpack.c.bf16 %v2077_v23, %v2070_v42  ;;  %v2210_v35 = vand.u32 4294901760, %v2209_v18  ;;  %4943 = vmatprep.subr.bf16.mxu1 %v4942_v36  ;;  %v8796_v58 = vld [vmem:[#allocation41_spill] sm:$0xff] }
 0x117   :  { %v7084_v53 = vpack.c.bf16 %v8784_v12, %v8782_v17  ;;  %4913 = vmatpush3.bf16.msra.mxu0 %v7051_v34  ;;  %v2217_v40 = vand.u32 4294901760, %v2216_v45  ;;  %v8786_v5 = vand.u32 4294901760, %v6662_v33  ;;  %v8787_v12 = vand.u32 4294901760, %v6667_v51 }
 0x118   :  { %4915 = vmatprep.subr.bf16.mxu0 %v7069_v28  ;;  %v8788_v17 = vand.u32 4294901760, %v6684_v62  ;;  %v8789_v42 = vand.u32 4294901760, %v6689_v30  ;;  %v8790_v39 = vand.u32 4294901760, %v6703_v21  ;;  %v8791_v55 = vand.u32 4294901760, %v6717_v47 }
 0x119   :  { %8785 = vst [vmem:[#allocation49_spill] sm:$0xff] %v7084_v53  ;;  %v2097_v25 = vsub.f32 %v6662_v33, %v8786_v5  ;;  %v2104_v23 = vsub.f32 %v6667_v51, %v8787_v12  ;;  %v8793_v45 = vand.u32 4294901760, %v8792_v15  ;;  %v8795_v31 = vand.u32 4294901760, %v8794_v9  ;;  %4945 = vmatpush3.bf16.msra.mxu1 %v4944_v54 }
 0x11a   :  { %v2223_v14 = vsub.f32 %v6684_v62, %v8788_v17  ;;  %v2230_v26 = vsub.f32 %v6689_v30, %v8789_v42  ;;  %v2111_v37 = vsub.f32 %v6703_v21, %v8790_v39  ;;  %v2118_v18 = vsub.f32 %v6717_v47, %v8791_v55  ;;  %v8800_v17 = vld [vmem:[#allocation67_spill] sm:$0xff]  ;;  %4947 = vmatprep.subr.bf16.mxu1 %v4946_v48 }
 0x11b   :  { %v7112_v13 = vpack.c.bf16 %v8795_v31, %v8793_v45  ;;  %v7115_v36 = vand.u32 4294901760, %v6957_v7  ;;  %4917 = vmatpush3.bf16.msra.mxu0 %v7078_v43  ;;  %v8797_v44 = vand.u32 4294901760, %v8796_v58  ;;  %v8799_v5 = vand.u32 4294901760, %v8798_v50 }
 0x11c   :  { %v8801_v42 = vand.u32 4294901760, %v8800_v17  ;;  %v8802_v39 = vand.u32 4294901760, %v6613_v6  ;;  %v8804_v15 = vand.u32 4294901760, %v6741_v22  ;;  %v8805_v9 = vand.u32 4294901760, %v6746_v3  ;;  %4919 = vmatprep.subr.bf16.mxu0 %v7084_v53 }
 0x11d   :  { %v7122_v12 = vpack.c.bf16 %v8799_v5, %v8797_v44  ;;  %v4948_v58 = vpack.c.bf16 %v2091_v60, %v2084_v0  ;;  %v4950_v44 = vpack.c.bf16 %v2217_v40, %v2210_v35  ;;  %v2098_v50 = vand.u32 4294901760, %v2097_v25  ;;  %v8812_v60 = vld [vmem:[#allocation69_spill] sm:$0xff]  ;;  %v8814_v35 = vld [vmem:[#allocation70_spill] sm:$0xff] }
 0x11e   :  { %v7128_v55 = vpack.c.bf16 %v8802_v39, %v8801_v42  ;;  %v2237_v45 = vsub.f32 %v6741_v22, %v8804_v15  ;;  %v2244_v31 = vsub.f32 %v6746_v3, %v8805_v9  ;;  %v2105_v5 = vand.u32 4294901760, %v2104_v23 }
 0x11f   :  { %v2224_v17 = vand.u32 4294901760, %v2223_v14  ;;  %v2231_v6 = vand.u32 4294901760, %v2230_v26  ;;  %v2112_v42 = vand.u32 4294901760, %v2111_v37  ;;  %v2119_v39 = vand.u32 4294901760, %v2118_v18  ;;  %4921 = vmatpush3.bf16.msra.mxu0 %v7112_v13  ;;  %4949 = vmatpush3.bf16.msra.mxu1 %v4948_v58 }
 0x120   :  { %8803 = vst [vmem:[#allocation40_spill] sm:$0xff] %v7128_v55  ;;  %v8806_v61 = vand.u32 4294901760, %v6650_v19  ;;  %v8807_v15 = vand.u32 4294901760, %v6652_v10  ;;  %v8809_v9 = vand.u32 4294901760, %v6753_v46  ;;  %v8810_v54 = vand.u32 4294901760, %v6758_v56  ;;  %4923 = vmatprep.subr.bf16.mxu0 %v7122_v12  ;;  %4951 = vmatprep.subr.bf16.mxu1 %v4950_v44 }
 0x121   :  { %v7151_v48 = vsub.f32 %v6957_v7, %v7115_v36  ;;  %v8813_v19 = vand.u32 4294901760, %v8812_v60  ;;  %v8815_v10 = vand.u32 4294901760, %v8814_v35  ;;  %v2238_v40 = vand.u32 4294901760, %v2237_v45 }
 0x122   :  { %v7141_v22 = vpack.c.bf16 %v8807_v15, %v8806_v61  ;;  %v2125_v53 = vsub.f32 %v6753_v46, %v8809_v9  ;;  %v2132_v0 = vsub.f32 %v6758_v56, %v8810_v54  ;;  %v2245_v25 = vand.u32 4294901760, %v2244_v31  ;;  %v8822_v54 = vld [vmem:[#allocation71_spill] sm:$0xff] }
 0x123   :  { %8811 = vst [vmem:[#allocation30_spill] sm:$0xff] %v7151_v48  ;;  %v7158_v61 = vpack.c.bf16 %v8815_v10, %v8813_v19  ;;  %v8817_v23 = vand.u32 4294901760, %v6764_v38  ;;  %v4952_v26 = vpack.c.bf16 %v2105_v5, %v2098_v50  ;;  %v8818_v7 = vand.u32 4294901760, %v6673_v16  ;;  %v8824_v50 = vld [vmem:[#allocation72_spill] sm:$0xff]  ;;  %v8826_v16 = vld [vmem:[#allocation73_spill] sm:$0xff]  ;;  %4925 = vmatpush3.bf16.msra.mxu0 %v7128_v55 }
 0x124   :  { %8808 = vst [vmem:[#allocation50_spill] sm:$0xff] %v7141_v22  ;;  %v8819_v37 = vand.u32 4294901760, %v6675_v2  ;;  %v8820_v15 = vand.u32 4294901760, %v6772_v63  ;;  %v4954_v45 = vpack.c.bf16 %v2231_v6, %v2224_v17  ;;  %v8821_v31 = vand.u32 4294901760, %v6693_v8  ;;  %v7189_v8 = vld [vmem:[#allocation5 + $0x380] sm:$0xff]  ;;  %4927 = vmatprep.subr.bf16.mxu0 %v7141_v22  ;;  %v7254_v55 = vld [vmem:[#allocation5 + $0x3a8] sm:$0xff] }
 0x125   :  { %8816 = vst [vmem:[#allocation15_spill] sm:$0xff] %v7158_v61  ;;  %v2251_v14 = vsub.f32 %v6764_v38, %v8817_v23  ;;  %v8823_v60 = vand.u32 4294901760, %v8822_v54  ;;  %v4956_v58 = vpack.c.bf16 %v2119_v39, %v2112_v42  ;;  %v8825_v5 = vand.u32 4294901760, %v8824_v50  ;;  %8829 = vst [vmem:[#allocation51_spill] sm:$0xff] %v7189_v8  ;;  %v8830_v42 = vld [vmem:[#allocation74_spill] sm:$0xff]  ;;  %v7201_v54 = vld [vmem:[#allocation5 + $0x388] sm:$0xff]  ;;  %4953 = vmatpush3.bf16.msra.mxu1 %v4952_v26 }
 0x126   :  { %v7168_v18 = vpack.c.bf16 %v8819_v37, %v8818_v7  ;;  %v2258_v9 = vsub.f32 %v6772_v63, %v8820_v15  ;;  %v8827_v35 = vand.u32 4294901760, %v8826_v16  ;;  %v2126_v10 = vand.u32 4294901760, %v2125_v53  ;;  %8834 = vst [vmem:[#allocation52_spill] sm:$0xff] %v7201_v54  ;;  %v7213_v16 = vld [vmem:[#allocation5 + $0x300] sm:$0xff]  ;;  %4955 = vmatprep.subr.bf16.mxu1 %v4954_v45  ;;  %v7233_v26 = vld [vmem:[#allocation5 + $0x398] sm:$0xff]  ;;  %8850 = vst [vmem:[#allocation55_spill] sm:$0xff] %v7254_v55 }
 0x127   :  { %v7177_v19 = vpack.c.bf16 %v8823_v60, %v8821_v31  ;;  %v2133_v23 = vand.u32 4294901760, %v2132_v0  ;;  %v8235_v7 = vand.u32 4294901760, %v7151_v48  ;;  %v8828_v44 = vand.u32 4294901760, %v6777_v57  ;;  %8838 = vst [vmem:[#allocation21_spill] sm:$0xff] %v7213_v16  ;;  %8843 = vst [vmem:[#allocation53_spill] sm:$0xff] %v7233_v26  ;;  %4929 = vmatpush3.bf16.msra.mxu0 %v7158_v61  ;;  %v8844_v22 = vld [vmem:[#allocation39_spill] sm:$0xff] }
 0x128   :  { %v7183_v2 = vpack.c.bf16 %v8827_v35, %v8825_v5  ;;  %v4958_v6 = vpack.c.bf16 %v2245_v25, %v2238_v40  ;;  %v8831_v39 = vand.u32 4294901760, %v8830_v42  ;;  %v8832_v37 = vand.u32 4294901760, %v6712_v32  ;;  %v7215_v35 = vld [vmem:[#allocation5 + $0x308] sm:$0xff]  ;;  %v8841_v42 = vld [vmem:[#allocation77_spill] sm:$0xff]  ;;  %4931 = vmatprep.subr.bf16.mxu0 %v7168_v18  ;;  %v7245_v61 = vld [vmem:[#allocation5 + $0x3a0] sm:$0xff] }
 0x129   :  { %v2139_v17 = vsub.f32 %v6777_v57, %v8828_v44  ;;  %v2252_v31 = vand.u32 4294901760, %v2251_v14  ;;  %v8833_v53 = vand.u32 4294901760, %v6782_v11  ;;  %v2259_v60 = vand.u32 4294901760, %v2258_v9  ;;  %8839 = vst [vmem:[#allocation20_spill] sm:$0xff] %v7215_v35  ;;  %v8840_v9 = vld [vmem:[#allocation38_spill] sm:$0xff]  ;;  %4957 = vmatpush3.bf16.msra.mxu1 %v4956_v58  ;;  %8848 = vst [vmem:[#allocation18_spill] sm:$0xff] %v7245_v61 }
 0x12a   :  { %v7196_v15 = vpack.c.bf16 %v8832_v37, %v8831_v39  ;;  %v8835_v50 = vand.u32 4294901760, %v6787_v27  ;;  %v8836_v25 = vand.u32 4294901760, %v6797_v41  ;;  %v8837_v14 = vand.u32 4294901760, %v6802_v49  ;;  %4959 = vmatprep.subr.bf16.mxu1 %v4958_v6  ;;  %v7256_v58 = vld [vmem:[#allocation5 + $0x320] sm:$0xff] }
 0x12b   :  { %v2146_v0 = vsub.f32 %v6782_v11, %v8833_v53  ;;  %v8842_v39 = vand.u32 4294901760, %v8841_v42  ;;  %v7240_v53 = vld [vmem:[#allocation5 + $0x310] sm:$0xff]  ;;  %8851 = vst [vmem:[#allocation56_spill] sm:$0xff] %v7256_v58  ;;  %4933 = vmatpush3.bf16.msra.mxu0 %v7177_v19 }
 0x12c   :  { %v2265_v40 = vsub.f32 %v6787_v27, %v8835_v50  ;;  %v2272_v32 = vsub.f32 %v6797_v41, %v8836_v25  ;;  %v2153_v5 = vsub.f32 %v6802_v49, %v8837_v14  ;;  %v4960_v50 = vpack.c.bf16 %v2133_v23, %v2126_v10  ;;  %v7231_v49 = vld [vmem:[#allocation5 + $0x390] sm:$0xff]  ;;  %8846 = vst [vmem:[#allocation54_spill] sm:$0xff] %v7240_v53  ;;  %v7278_v23 = vld [vmem:[#allocation5 + $0x328] sm:$0xff] }
 0x12d   :  { %v2160_v37 = vsub.f32 %v8841_v42, %v8842_v39  ;;  %v7228_v25 = vsub.f32 %v7151_v48, %v8235_v7  ;;  %v2140_v14 = vand.u32 4294901760, %v2139_v17  ;;  %v2147_v44 = vand.u32 4294901760, %v2146_v0  ;;  %v8845_v39 = vld [vmem:[#allocation42_spill] sm:$0xff]  ;;  %8855 = vst [vmem:[#allocation57_spill] sm:$0xff] %v7278_v23  ;;  %4935 = vmatprep.subr.bf16.mxu0 %v7183_v2 }
 0x12e   :  { %v7242_v7 = vld [vmem:[#allocation5 + $0x318] sm:$0xff]  ;;  %v4962_v17 = vpack.c.bf16 %v2259_v60, %v2252_v31  ;;  %v2266_v45 = vand.u32 4294901760, %v2265_v40  ;;  %v2273_v48 = vand.u32 4294901760, %v2272_v32  ;;  %v2154_v41 = vand.u32 4294901760, %v2153_v5  ;;  %4961 = vmatpush3.bf16.msra.mxu1 %v4960_v50 }
 0x12f   :  { %8847 = vst [vmem:[#allocation63_spill] sm:$0xff] %v7242_v7  ;;  %v2161_v0 = vand.u32 4294901760, %v2160_v37  ;;  %v8849_v42 = vand.u32 4294901760, %v7189_v8  ;;  %v2045_v31 = vand.u32 4294901760, %v7228_v25  ;;  %v8852_v60 = vand.u32 4294901760, %v7201_v54  ;;  %v8856_v40 = vld [vmem:[#allocation25_spill] sm:$0xff]  ;;  %4937 = vmatpush3.bf16.msra.mxu0 %v7196_v15 }
 0x130   :  { %v4964_v5 = vpack.c.bf16 %v2147_v44, %v2140_v14  ;;  %v8854_v27 = vand.u32 4294901760, %v7215_v35  ;;  %v4966_v32 = vpack.c.bf16 %v2273_v48, %v2266_v45  ;;  %v8857_v44 = vld [vmem:[#allocation65_spill] sm:$0xff]  ;;  %4963 = vmatprep.subr.bf16.mxu1 %v4962_v17  ;;  %v8865_v50 = vand.u32 4294901760, %v7245_v61 }
 0x131   :  { %v7250_v10 = vsub.f32 %v7189_v8, %v8849_v42  ;;  %v7262_v6 = vsub.f32 %v7201_v54, %v8852_v60  ;;  %v8853_v42 = vand.u32 4294901760, %v7213_v16  ;;  %v4976_v14 = vpack.c.bf16 %v8857_v44, %v8856_v40  ;;  %v7298_v45 = vld [vmem:[#allocation5 + $0x3b8] sm:$0xff] }
 0x132   :  { %v7275_v25 = vsub.f32 %v7215_v35, %v8854_v27  ;;  %v4968_v27 = vpack.c.bf16 %v2161_v0, %v2154_v41  ;;  %v8859_v35 = vand.u32 4294901760, %v7231_v49  ;;  %v8860_v8 = vand.u32 4294901760, %v7233_v26  ;;  %8861 = vst [vmem:[#allocation59_spill] sm:$0xff] %v7298_v45  ;;  %4965 = vmatpush3.bf16.msra.mxu1 %v4964_v5  ;;  %2046 = vmatmul.mubr.f32.vlgmr.msra.gmra.mrb[12].mxu0 %v2045_v31 }
 0x133   :  { %v7270_v37 = vsub.f32 %v7213_v16, %v8853_v42  ;;  %v7285_v16 = vld [vmem:[#allocation5 + $0x3b0] sm:$0xff]  ;;  %v8862_v40 = vand.u32 4294901760, %v7240_v53  ;;  %v8863_v41 = vand.u32 4294901760, %v7242_v7  ;;  %v7318_v42 = vsub.f32 %v7245_v61, %v8865_v50  ;;  %4967 = vmatprep.subr.bf16.mxu1 %v4966_v32 }
 0x134   :  { %8858 = vst [vmem:[#allocation58_spill] sm:$0xff] %v7285_v16  ;;  %v7290_v60 = vsub.f32 %v7231_v49, %v8859_v35  ;;  %v7295_v48 = vsub.f32 %v7233_v26, %v8860_v8  ;;  %v7312_v8 = vld [vmem:[#allocation5 + $0x330] sm:$0xff]  ;;  %v8867_v0 = vpack.c.bf16 %v6545_v1, %v6529_v4  ;;  %v8868_v35 = vand.u32 4294901760, %v7254_v55  ;;  %v7366_v1 = vld [vmem:[#allocation5 + $0x340] sm:$0xff] }
 0x135   :  { %v7303_v44 = vsub.f32 %v7240_v53, %v8862_v40  ;;  %v7308_v17 = vsub.f32 %v7242_v7, %v8863_v41  ;;  %8864 = vst [vmem:[#allocation60_spill] sm:$0xff] %v7312_v8  ;;  %v7323_v7 = vld [vmem:[#allocation5 + $0x338] sm:$0xff]  ;;  %v8869_v50 = vand.u32 4294901760, %v7256_v58  ;;  %v8870_v41 = vand.u32 4294901760, %v7250_v10  ;;  %8879 = vst [vmem:[#allocation14_spill] sm:$0xff] %v7366_v1 }
 0x136   :  { %8866 = vst [vmem:[#allocation61_spill] sm:$0xff] %v7323_v7  ;;  %4971 = vmatprep.subr.bf16.mxu0 %v8867_v0  ;;  %v7331_v53 = vsub.f32 %v7254_v55, %v8868_v35  ;;  %v8871_v61 = vand.u32 4294901760, %v7262_v6  ;;  %v7348_v35 = vld [vmem:[#allocation5 + $0x3c0] sm:$0xff]  ;;  %v7350_v0 = vld [vmem:[#allocation5 + $0x3c8] sm:$0xff]  ;;  %v8876_v54 = vand.u32 4294901760, %v7275_v25  ;;  %v8886_v4 = vand.u32 4294901760, %v7290_v60  ;;  %4969 = vmatpush3.bf16.msra.mxu1 %v4968_v27 }
 0x137   :  { %v7336_v40 = vsub.f32 %v7256_v58, %v8869_v50  ;;  %8873 = vst [vmem:[#allocation31_spill] sm:$0xff] %v7348_v35  ;;  %8874 = vst [vmem:[#allocation13_spill] sm:$0xff] %v7350_v0  ;;  %v8875_v50 = vand.u32 4294901760, %v7270_v37  ;;  %v8887_v5 = vand.u32 4294901760, %v7295_v48  ;;  %v8256_v27 = vand.u32 4294901760, %v7318_v42 }
 0x138   :  { %v7343_v26 = vpack.c.bf16 %v8871_v61, %v8870_v41  ;;  %v8878_v61 = vand.u32 4294901760, %v7278_v23  ;;  %v7379_v41 = vld [vmem:[#allocation5 + $0x348] sm:$0xff] }
 0x139   :  { %v7356_v58 = vpack.c.bf16 %v8876_v54, %v8875_v50  ;;  %v8881_v54 = vld [vmem:[#allocation66_spill] sm:$0xff]  ;;  %v8882_v50 = vld [vmem:[#allocation68_spill] sm:$0xff]  ;;  %8885 = vst [vmem:[#allocation17_spill] sm:$0xff] %v7379_v41  ;;  %v7385_v55 = vpack.c.bf16 %v8887_v5, %v8886_v4  ;;  %2278 = vmatmul.mubr.f32.vlgmr.msra.gmra.mrb[12].mxu1 %v7115_v36 }
 0x13a   :  { %8872 = vst [vmem:[#allocation62_spill] sm:$0xff] %v7343_v26  ;;  %v7361_v32 = vsub.f32 %v7278_v23, %v8878_v61  ;;  %v8880_v26 = vpack.c.bf16 %v8840_v9, %v6550_v59  ;;  %v4978_v31 = vpack.c.bf16 %v8882_v50, %v8881_v54  ;;  %v8884_v61 = vand.u32 4294901760, %v7285_v16  ;;  %v8894_v5 = vld [vmem:[#allocation36_spill] sm:$0xff] }
 0x13b   :  { %8877 = vst [vmem:[#allocation64_spill] sm:$0xff] %v7356_v58  ;;  %v8883_v58 = vld [vmem:[#allocation48_spill] sm:$0xff]  ;;  %8888 = vst [vmem:[#allocation16_spill] sm:$0xff] %v7385_v55  ;;  %v8889_v59 = vpack.c.bf16 %v8845_v39, %v8844_v22  ;;  %5003 = vmatprep.subr.bf16.mxu1 %v8894_v5  ;;  %v8895_v22 = vand.u32 4294901760, %v7312_v8  ;;  %v8896_v50 = vand.u32 4294901760, %v7323_v7 }
 0x13c   :  { %4973 = vmatpush3.bf16.msra.mxu0 %v8880_v26  ;;  %2413 = vmatprep.mubr.f32.mxu0 %v8883_v58  ;;  %v7377_v23 = vsub.f32 %v7285_v16, %v8884_v61  ;;  %v8890_v26 = vand.u32 4294901760, %v7298_v45  ;;  %v8891_v61 = vand.u32 4294901760, %v7303_v44  ;;  %v8892_v16 = vand.u32 4294901760, %v7308_v17  ;;  %v7420_v55 = vld [vmem:[#allocation5 + $0x3d0] sm:$0xff] }
 0x13d   :  { %4975 = vmatprep.subr.bf16.mxu0 %v8889_v59  ;;  %v7407_v39 = vsub.f32 %v7312_v8, %v8895_v22  ;;  %v7415_v54 = vsub.f32 %v7323_v7, %v8896_v50  ;;  %8897 = vst [vmem:[#allocation24_spill] sm:$0xff] %v7420_v55  ;;  %v4980_v22 = vpack.c.bf16 %v6634_v29, %v6629_v24  ;;  %v7427_v59 = vld [vmem:[#allocation5 + $0x3d8] sm:$0xff]  ;;  %v8899_v50 = vand.u32 4294901760, %v7331_v53  ;;  %v7446_v29 = vld [vmem:[#allocation5 + $0x350] sm:$0xff] }
 0x13e   :  { %v7393_v9 = vsub.f32 %v7298_v45, %v8890_v26  ;;  %v7401_v4 = vpack.c.bf16 %v8892_v16, %v8891_v61  ;;  %v4982_v26 = vpack.c.bf16 %v6645_v52, %v6639_v20  ;;  %8898 = vst [vmem:[#allocation22_spill] sm:$0xff] %v7427_v59  ;;  %v8903_v24 = vand.u32 4294901760, %v7350_v0  ;;  %8905 = vst [vmem:[#allocation34_spill] sm:$0xff] %v7446_v29  ;;  %v7448_v52 = vld [vmem:[#allocation5 + $0x358] sm:$0xff]  ;;  %v7467_v45 = vld [vmem:[#allocation5 + $0x3e0] sm:$0xff] }
 0x13f   :  { %v7433_v16 = vpack.c.bf16 %v8899_v50, %v8256_v27  ;;  %8906 = vst [vmem:[#allocation29_spill] sm:$0xff] %v7448_v52  ;;  %v8907_v50 = vand.u32 4294901760, %v7336_v40  ;;  %8913 = vst [vmem:[#allocation33_spill] sm:$0xff] %v7467_v45  ;;  %v4984_v8 = vpack.c.bf16 %v6667_v51, %v6662_v33  ;;  %v7497_v33 = vld [vmem:[#allocation5 + $0x368] sm:$0xff]  ;;  %v7522_v51 = vld [vmem:[#allocation5 + $0x3f0] sm:$0xff] }
 0x140   :  { %8893 = vst [vmem:[#allocation19_spill] sm:$0xff] %v7401_v4  ;;  %4977 = vmatpush3.bf16.msra.mxu0 %v4976_v14  ;;  %v8901_v4 = vld [vmem:[#allocation28_spill] sm:$0xff]  ;;  %v8902_v14 = vand.u32 4294901760, %v7348_v35  ;;  %v7444_v20 = vsub.f32 %v7350_v0, %v8903_v24  ;;  %v7479_v0 = vld [vmem:[#allocation5 + $0x360] sm:$0xff]  ;;  %8920 = vst [vmem:[#allocation41_spill] sm:$0xff] %v7497_v33 }
 0x141   :  { %8900 = vst [vmem:[#allocation26_spill] sm:$0xff] %v7433_v16  ;;  %4979 = vmatprep.subr.bf16.mxu0 %v4978_v31  ;;  %5005 = vmatpush3.bf16.msra.mxu1 %v8901_v4  ;;  %v8908_v31 = vand.u32 4294901760, %v7361_v32  ;;  %v8910_v16 = vld [vmem:[#allocation35_spill] sm:$0xff]  ;;  %8916 = vst [vmem:[#allocation43_spill] sm:$0xff] %v7479_v0 }
 0x142   :  { %v7439_v61 = vsub.f32 %v7348_v35, %v8902_v14  ;;  %8904 = vst [vmem:[#allocation27_spill] sm:$0xff] %v7444_v20  ;;  %5007 = vmatprep.subr.bf16.mxu1 %v8910_v16  ;;  %v8911_v14 = vand.u32 4294901760, %v8883_v58  ;;  %v8912_v35 = vand.u32 4294901760, %v7366_v1  ;;  %v8918_v58 = vand.u32 4294901760, %v7393_v9  ;;  %8925 = vst [vmem:[#allocation67_spill] sm:$0xff] %v7522_v51 }
 0x143   :  { %v7454_v27 = vpack.c.bf16 %v8908_v31, %v8907_v50  ;;  %v8914_v50 = vand.u32 4294901760, %v7379_v41 }
 0x144   :  { %2520 = vmatprep.mubr.f32.mxu1 %v8911_v14  ;;  %v7462_v24 = vsub.f32 %v7366_v1, %v8912_v35  ;;  %v8264_v14 = vand.u32 4294901760, %v7407_v39  ;;  %4981 = vmatpush3.bf16.msra.mxu0 %v4980_v22  ;;  %v4986_v35 = vpack.c.bf16 %v6689_v30, %v6684_v62  ;;  %v4988_v22 = vpack.c.bf16 %v6717_v47, %v6703_v21 }
 0x145   :  { %8909 = vst [vmem:[#allocation32_spill] sm:$0xff] %v7454_v27  ;;  %v7472_v31 = vsub.f32 %v7379_v41, %v8914_v50  ;;  %v7477_v27 = vld [vmem:[#allocation5 + $0x3e8] sm:$0xff]  ;;  %v8917_v50 = vand.u32 4294901760, %v7377_v23  ;;  %4983 = vmatprep.subr.bf16.mxu0 %v4982_v26  ;;  %5009 = vmatpush3.bf16.msra.mxu1 %v7051_v34  ;;  %v8921_v1 = vand.u32 4294901760, %v7415_v54  ;;  %v8923_v62 = vand.u32 4294901760, %v7420_v55 }
 0x146   :  { %8915 = vst [vmem:[#allocation37_spill] sm:$0xff] %v7477_v27  ;;  %5011 = vmatprep.subr.bf16.mxu1 %v7069_v28  ;;  %v8926_v30 = vand.u32 4294901760, %v7446_v29  ;;  %v8932_v26 = vand.u32 4294901760, %v7439_v61 }
 0x147   :  { %v7489_v41 = vpack.c.bf16 %v8918_v58, %v8917_v50  ;;  %v7503_v7 = vpack.c.bf16 %v8921_v1, %v8264_v14  ;;  %v7513_v47 = vsub.f32 %v7420_v55, %v8923_v62  ;;  %v8924_v50 = vand.u32 4294901760, %v7427_v59  ;;  %v7537_v14 = vld [vmem:[#allocation5 + $0x370] sm:$0xff] }
 0x148   :  { %4985 = vmatpush3.bf16.msra.mxu0 %v4984_v8  ;;  %v7527_v21 = vsub.f32 %v7446_v29, %v8926_v30  ;;  %v8928_v62 = vand.u32 4294901760, %v7448_v52  ;;  %8931 = vst [vmem:[#allocation72_spill] sm:$0xff] %v7537_v14  ;;  %v8933_v8 = vand.u32 4294901760, %v7444_v20  ;;  %v8935_v30 = vld [vmem:[#allocation12_spill] sm:$0xff]  ;;  %v8940_v20 = vld [vmem:[#allocation49_spill] sm:$0xff] }
 0x149   :  { %8919 = vst [vmem:[#allocation44_spill] sm:$0xff] %v7489_v41  ;;  %8922 = vst [vmem:[#allocation45_spill] sm:$0xff] %v7503_v7  ;;  %v7518_v1 = vsub.f32 %v7427_v59, %v8924_v50  ;;  %v7535_v7 = vld [vmem:[#allocation5 + $0x3f8] sm:$0xff]  ;;  %4987 = vmatprep.subr.bf16.mxu0 %v4986_v35  ;;  %5013 = vmatpush3.bf16.msra.mxu1 %v7078_v43  ;;  %v4990_v29 = vpack.c.bf16 %v6746_v3, %v8935_v30  ;;  %v8938_v59 = vand.u32 4294901760, %v7472_v31 }
 0x14a   :  { %8927 = vst [vmem:[#allocation69_spill] sm:$0xff] %v7527_v21  ;;  %v7532_v58 = vsub.f32 %v7448_v52, %v8928_v62  ;;  %8930 = vst [vmem:[#allocation71_spill] sm:$0xff] %v7535_v7  ;;  %v7543_v41 = vpack.c.bf16 %v8933_v8, %v8932_v26  ;;  %v4992_v62 = vpack.c.bf16 %v6758_v56, %v6753_v46  ;;  %v7550_v50 = vld [vmem:[#allocation5 + $0x378] sm:$0xff]  ;;  %v8937_v52 = vand.u32 4294901760, %v7462_v24 }
 0x14b   :  { %8936 = vst [vmem:[#allocation74_spill] sm:$0xff] %v7550_v50  ;;  %5015 = vmatprep.subr.bf16.mxu1 %v8940_v20  ;;  %v8941_v35 = vand.u32 4294901760, %v7467_v45  ;;  %v8942_v3 = vand.u32 4294901760, %v7477_v27  ;;  %v8943_v56 = vand.u32 4294901760, %v7479_v0  ;;  %v8273_v30 = vand.u32 4294901760, %v7513_v47 }
 0x14c   :  { %8929 = vst [vmem:[#allocation70_spill] sm:$0xff] %v7532_v58  ;;  %8934 = vst [vmem:[#allocation73_spill] sm:$0xff] %v7543_v41  ;;  %v7556_v55 = vpack.c.bf16 %v8938_v59, %v8937_v52  ;;  %4989 = vmatpush3.bf16.msra.mxu0 %v4988_v22  ;;  %v8945_v41 = vand.u32 4294901760, %v7497_v33  ;;  %v8275_v59 = vand.u32 4294901760, %v7532_v58  ;;  %v4994_v52 = vpack.c.bf16 %v6772_v63, %v6764_v38 }
 0x14d   :  { %v7562_v26 = vsub.f32 %v7467_v45, %v8941_v35  ;;  %v7567_v8 = vsub.f32 %v7477_v27, %v8942_v3  ;;  %v7572_v46 = vsub.f32 %v7479_v0, %v8943_v56  ;;  %v8276_v56 = vand.u32 4294901760, %v7527_v21  ;;  %4991 = vmatprep.subr.bf16.mxu0 %v4990_v29  ;;  %5017 = vmatpush3.bf16.msra.mxu1 %v7112_v13  ;;  %v8960_v0 = vld [vmem:[#allocation77_spill] sm:$0xff] }
 0x14e   :  { %8939 = vst [vmem:[#allocation38_spill] sm:$0xff] %v7556_v55  ;;  %v8272_v55 = vand.u32 4294901760, %v7518_v1  ;;  %v7582_v3 = vsub.f32 %v7497_v33, %v8945_v41  ;;  %5019 = vmatprep.subr.bf16.mxu1 %v7122_v12  ;;  %v3714_v41 = vpop.f32.mrb[0].mxu0  ;;  %v4996_v27 = vpack.c.bf16 %v6782_v11, %v6777_v57  ;;  %v8947_v35 = vand.u32 4294901760, %v7522_v51 }
 0x14f   :  { %8944 = vst [vmem:[#allocation39_spill] sm:$0xff] %v7572_v46  ;;  %v7608_v38 = vpack.c.bf16 %v8275_v59, %v8276_v56  ;;  %v3715_v63 = vpop.f32.mrb[1].mxu0  ;;  %v8284_v57 = vand.u32 4294901760, %v7562_v26  ;;  %v8952_v59 = vand.u32 4294901760, %v7550_v50 }
 0x150   :  { %v7594_v22 = vpack.c.bf16 %v8272_v55, %v8273_v30  ;;  %v7602_v29 = vsub.f32 %v7522_v51, %v8947_v35  ;;  %v8950_v55 = vand.u32 4294901760, %v7535_v7  ;;  %v8283_v35 = vand.u32 4294901760, %v7567_v8  ;;  %4993 = vmatpush3.bf16.msra.mxu0 %v4992_v62 }
 0x151   :  { %8949 = vst [vmem:[#allocation65_spill] sm:$0xff] %v7608_v38  ;;  %v3716_v51 = vadd.f32 %v3715_v63, %v3714_v41  ;;  %v7625_v56 = vsub.f32 %v7550_v50, %v8952_v59  ;;  %v8290_v38 = vand.u32 4294901760, %v7572_v46  ;;  %4995 = vmatprep.subr.bf16.mxu0 %v4994_v52  ;;  %v8957_v41 = vld [vmem:[#allocation50_spill] sm:$0xff]  ;;  %v3749_v52 = vpop.f32.mrb[0].mxu1  ;;  %v8961_v46 = vld [vmem:[#allocation15_spill] sm:$0xff] }
 0x152   :  { %8946 = vst [vmem:[#allocation42_spill] sm:$0xff] %v7594_v22  ;;  %8948 = vst [vmem:[#allocation25_spill] sm:$0xff] %v7602_v29  ;;  %v7613_v30 = vsub.f32 %v7535_v7, %v8950_v55  ;;  %v8951_v22 = vand.u32 4294901760, %v7537_v14  ;;  %v8287_v55 = vand.u32 4294901760, %v7582_v3  ;;  %v8953_v7 = vld [vmem:[#allocation40_spill] sm:$0xff]  ;;  %v7636_v62 = vpack.c.bf16 %v8283_v35, %v8284_v57 }
 0x153   :  { %5021 = vmatpush3.bf16.msra.mxu1 %v8953_v7  ;;  %v8289_v63 = vand.u32 4294901760, %v7602_v29  ;;  %v8292_v57 = vand.u32 4294901760, %v7625_v56 }
 0x154   :  { %v7618_v11 = vsub.f32 %v7537_v14, %v8951_v22  ;;  %v8954_v22 = vld [vmem:[#allocation23_spill] sm:$0xff]  ;;  %8956 = vst [vmem:[#allocation66_spill] sm:$0xff] %v7636_v62  ;;  %5023 = vmatprep.subr.bf16.mxu1 %v8957_v41  ;;  %v7643_v59 = vpack.c.bf16 %v8287_v55, %v8290_v38  ;;  %v8288_v50 = vand.u32 4294901760, %v7613_v30  ;;  %4997 = vmatpush3.bf16.msra.mxu0 %v4996_v27  ;;  %v8969_v38 = vld [vmem:[#allocation80_spill] sm:$0xff] }
 0x155   :  { %v8955_v14 = vld [vmem:[#allocation75_spill] sm:$0xff] }
 0x156   :  { %v4998_v33 = vpack.c.bf16 %v8955_v14, %v8954_v22  ;;  %8958 = vst [vmem:[#allocation68_spill] sm:$0xff] %v7643_v59  ;;  %v3750_v14 = vpop.f32.mrb[1].mxu1  ;;  %v8959_v22 = vld [vmem:[#allocation76_spill] sm:$0xff]  ;;  %v8293_v35 = vand.u32 4294901760, %v7618_v11  ;;  %v7656_v55 = vpack.c.bf16 %v8288_v50, %v8289_v63  ;;  %v8968_v50 = vld [vmem:[#allocation47_spill] sm:$0xff] }
 0x157   :  { %v5000_v45 = vpack.c.bf16 %v8960_v0, %v8959_v22  ;;  %v3751_v62 = vadd.f32 %v3750_v14, %v3749_v52  ;;  %5025 = vmatpush3.bf16.msra.mxu1 %v8961_v46  ;;  %v8964_v52 = vld [vmem:[#allocation78_spill] sm:$0xff]  ;;  %v8966_v14 = vld [vmem:[#allocation79_spill] sm:$0xff]  ;;  %v190_v63 = vcombine.high %v8968_v50, %v8968_v50 }
 0x158   :  { %4999 = vmatprep.subr.bf16.mxu0 %v4998_v33  ;;  %8962 = vst [vmem:[#allocation48_spill] sm:$0xff] %v7656_v55  ;;  %5027 = vmatprep.subr.bf16.mxu1 %v7168_v18  ;;  %v7663_v0 = vpack.c.bf16 %v8292_v57, %v8293_v35  ;;  %v8965_v33 = vld [vmem:[#allocation30_spill] sm:$0xff]  ;;  %v8974_v50 = vld [vmem:[#allocation83_spill] sm:$0xff]  ;;  %v9013_v55 = vand.u32 4294901760, %v7336_v40 }
 0x159   :  { %v556_v27 = vadd.f32 %v3751_v62, %v3716_v51  ;;  %5001 = vmatpush3.bf16.msra.mxu0 %v5000_v45  ;;  %v8967_v22 = vld [vmem:[#allocation46_spill] sm:$0xff]  ;;  %v8970_v45 = vld [vmem:[#allocation81_spill] sm:$0xff]  ;;  %v8971_v51 = vand.u32 4294901760, %v8965_v33  ;;  %v8972_v62 = vld [vmem:[#allocation11_spill] sm:$0xff] }
 0x15a   :  { %8963 = vst [vmem:[#allocation36_spill] sm:$0xff] %v7663_v0  ;;  %5035 = vmatprep.subr.bf16.mxu0 %v8964_v52  ;;  %v7680_v52 = vrot.slane %v190_v63, %v8972_v62  ;;  %v8976_v63 = vld [vmem:[#allocation85_spill] sm:$0xff] }
 0x15b   :  { %5029 = vmatpush3.bf16.msra.mxu1 %v7177_v19  ;;  %v8981_v62 = vld [vmem:[#allocation89_spill] sm:$0xff] }
 0x15c   :  { %5031 = vmatprep.subr.bf16.mxu1 %v7183_v2  ;;  %2416 = vmatmul.mubr.f32.vlgmr.msra.gmra.mrb[14].mxu0 %v8965_v33 }
 0x15d   :  { %5037 = vmatpush3.bf16.msra.mxu0 %v8966_v14  ;;  %2690 = vmatprep.mubr.f32.mxu0 %v8967_v22  ;;  %v8973_v14 = vld [vmem:[#allocation82_spill] sm:$0xff] }
 0x15e   :  { %5039 = vmatprep.subr.bf16.mxu0 %v8969_v38  ;;  %v8975_v38 = vld [vmem:[#allocation84_spill] sm:$0xff] }
 0x15f   :  { %5033 = vmatpush3.bf16.msra.mxu1 %v7196_v15 }
 0x160   :  { %5067 = vmatprep.subr.bf16.mxu1 %v8894_v5  ;;  %v206_v5 = vcombine.high %v7680_v52, %v7680_v52 }
 0x161   :  { %5041 = vmatpush3.bf16.msra.mxu0 %v8970_v45  ;;  %v8980_v45 = vld [vmem:[#allocation88_spill] sm:$0xff] }
 0x162   :  { %2524 = vmatmul.mubr.f32.vlgmr.msra.gmra.mrb[14].mxu1 %v8971_v51  ;;  %5043 = vmatprep.subr.bf16.mxu0 %v8973_v14  ;;  %v7693_v33 = vand.u32 4294901760, %v206_v5  ;;  %v8982_v14 = vld [vmem:[#allocation90_spill] sm:$0xff] }
 0x163   :  { %5069 = vmatpush3.bf16.msra.mxu1 %v8901_v4  ;;  %2794 = vmatprep.mubr.f32.mxu1 %v8967_v22  ;;  %v8978_v4 = vld [vmem:[#allocation86_spill] sm:$0xff] }
 0x164   :  { %5071 = vmatprep.subr.bf16.mxu1 %v8910_v16  ;;  %8977 = vst [vmem:[#allocation28_spill] sm:$0xff] %v7693_v33  ;;  %v8979_v16 = vld [vmem:[#allocation87_spill] sm:$0xff]  ;;  %v7700_v22 = vsub.f32 %v206_v5, %v7693_v33  ;;  %v8984_v5 = vand.u32 4294901760, %v7262_v6 }
 0x165   :  { %5045 = vmatpush3.bf16.msra.mxu0 %v8974_v50  ;;  %v8983_v50 = vand.u32 4294901760, %v7250_v10 }
 0x166   :  { %5047 = vmatprep.subr.bf16.mxu0 %v8975_v38  ;;  %v3819_v38 = vpop.f32.mrb[2].mxu1 }
 0x167   :  { %5073 = vmatpush3.bf16.msra.mxu1 %v7051_v34  ;;  %v3784_v34 = vpop.f32.mrb[2].mxu0 }
 0x168   :  { %5075 = vmatprep.subr.bf16.mxu1 %v7069_v28  ;;  %v3785_v28 = vpop.f32.mrb[3].mxu0 }
 0x169   :  { %5049 = vmatpush3.bf16.msra.mxu0 %v8976_v63  ;;  %v3786_v51 = vadd.f32 %v3785_v28, %v3784_v34  ;;  %v8985_v63 = vld [vmem:[#allocation91_spill] sm:$0xff]  ;;  %v8988_v34 = vld [vmem:[#allocation52_spill] sm:$0xff] }
 0x16a   :  { %5051 = vmatprep.subr.bf16.mxu0 %v8978_v4  ;;  %v3820_v4 = vpop.f32.mrb[3].mxu1  ;;  %v8989_v28 = vand.u32 4294901760, %v8988_v34 }
 0x16b   :  { %5077 = vmatpush3.bf16.msra.mxu1 %v7078_v43  ;;  %v8291_v43 = vand.u32 4294901760, %v7700_v22 }
 0x16c   :  { %5079 = vmatprep.subr.bf16.mxu1 %v8940_v20  ;;  %v694_v20 = vadd.f32 %v3786_v51, %v556_v27  ;;  %v3821_v27 = vadd.f32 %v3820_v4, %v3819_v38  ;;  %v8990_v51 = vld [vmem:[#allocation92_spill] sm:$0xff]  ;;  %v8994_v4 = vand.u32 4294901760, %v7295_v48 }
 0x16d   :  { %5053 = vmatpush3.bf16.msra.mxu0 %v8979_v16  ;;  %v8986_v16 = vld [vmem:[#allocation51_spill] sm:$0xff] }
 0x16e   :  { %5055 = vmatprep.subr.bf16.mxu0 %v8980_v45  ;;  %v8987_v45 = vand.u32 4294901760, %v8986_v16  ;;  %v7741_v34 = vadd.f32 %v3821_v27, %v694_v20  ;;  %v9006_v20 = vand.u32 4294901760, %v7308_v17 }
 0x16f   :  { %5081 = vmatpush3.bf16.msra.mxu1 %v7112_v13  ;;  %v3029_v13 = vsub.f32 %v7250_v10, %v8983_v50  ;;  %v8992_v50 = vand.u32 4294901760, %v7275_v25 }
 0x170   :  { %5083 = vmatprep.subr.bf16.mxu1 %v7122_v12  ;;  %v3036_v12 = vsub.f32 %v7262_v6, %v8984_v5  ;;  %v2938_v27 = vsub.f32 %v7308_v17, %v9006_v20 }
 0x171   :  { %5057 = vmatpush3.bf16.msra.mxu0 %v8981_v62  ;;  %v8991_v62 = vand.u32 4294901760, %v7270_v37  ;;  %v2924_v5 = vsub.f32 %v7275_v25, %v8992_v50  ;;  %v9000_v50 = vld [vmem:[#allocation93_spill] sm:$0xff] }
 0x172   :  { %5059 = vmatprep.subr.bf16.mxu0 %v8982_v14  ;;  %v3037_v16 = vand.u32 4294901760, %v3036_v12  ;;  %v2939_v0 = vand.u32 4294901760, %v2938_v27 }
 0x173   :  { %5085 = vmatpush3.bf16.msra.mxu1 %v8953_v7  ;;  %v7721_v7 = vpack.c.bf16 %v8989_v28, %v8987_v45  ;;  %v2917_v14 = vsub.f32 %v7270_v37, %v8991_v62  ;;  %v8993_v45 = vand.u32 4294901760, %v7290_v60  ;;  %v8995_v28 = vld [vmem:[#allocation21_spill] sm:$0xff]  ;;  %v8997_v62 = vld [vmem:[#allocation20_spill] sm:$0xff] }
 0x174   :  { %5087 = vmatprep.subr.bf16.mxu1 %v8957_v41  ;;  %v2900_v41 = vsub.f32 %v7700_v22, %v8291_v43  ;;  %v8998_v43 = vand.u32 4294901760, %v8997_v62 }
 0x175   :  { %5061 = vmatpush3.bf16.msra.mxu0 %v8985_v63  ;;  %v3030_v63 = vand.u32 4294901760, %v3029_v13  ;;  %v3043_v38 = vsub.f32 %v7290_v60, %v8993_v45  ;;  %v9002_v13 = vld [vmem:[#allocation53_spill] sm:$0xff]  ;;  %v9005_v45 = vand.u32 4294901760, %v7303_v44 }
 0x176   :  { %5063 = vmatprep.subr.bf16.mxu0 %v8990_v51  ;;  %v8996_v51 = vand.u32 4294901760, %v8995_v28  ;;  %v9003_v12 = vand.u32 4294901760, %v9002_v13  ;;  %v2901_v28 = vand.u32 4294901760, %v2900_v41  ;;  %v9009_v41 = vld [vmem:[#allocation54_spill] sm:$0xff] }
 0x177   :  { %5089 = vmatpush3.bf16.msra.mxu1 %v8961_v46  ;;  %v3050_v46 = vsub.f32 %v7295_v48, %v8994_v4  ;;  %v2931_v4 = vsub.f32 %v7303_v44, %v9005_v45  ;;  %v5130_v13 = vpack.c.bf16 %v3037_v16, %v3030_v63  ;;  %v9010_v20 = vand.u32 4294901760, %v9009_v41  ;;  %v9015_v16 = vld [vmem:[#allocation18_spill] sm:$0xff] }
 0x178   :  { %5091 = vmatprep.subr.bf16.mxu1 %v7168_v18  ;;  %v7747_v57 = vpack.c.bf16 %v8998_v43, %v8996_v51  ;;  %v9001_v18 = vand.u32 4294901760, %v7231_v49  ;;  %v2918_v43 = vand.u32 4294901760, %v2917_v14  ;;  %v2925_v51 = vand.u32 4294901760, %v2924_v5 }
 0x179   :  { %5065 = vmatpush3.bf16.msra.mxu0 %v9000_v50  ;;  %v9007_v49 = vand.u32 4294901760, %v7318_v42  ;;  %v9008_v50 = vand.u32 4294901760, %v7331_v53  ;;  %v3051_v45 = vand.u32 4294901760, %v3050_v46  ;;  %v9017_v46 = vld [vmem:[#allocation55_spill] sm:$0xff] }
 0x17a   :  { %8999 = vst [vmem:[#allocation35_spill] sm:$0xff] %v7747_v57  ;;  %v7754_v35 = vpack.c.bf16 %v9003_v12, %v9001_v18  ;;  %5099 = vmatprep.subr.bf16.mxu0 %v7721_v7  ;;  %v3044_v12 = vand.u32 4294901760, %v3043_v38  ;;  %v9016_v38 = vand.u32 4294901760, %v9015_v16  ;;  %v9018_v41 = vand.u32 4294901760, %v9017_v46  ;;  %v9023_v16 = vld [vmem:[#allocation57_spill] sm:$0xff] }
 0x17b   :  { %5093 = vmatpush3.bf16.msra.mxu1 %v7177_v19  ;;  %v3057_v62 = vsub.f32 %v7318_v42, %v9007_v49  ;;  %v3064_v18 = vsub.f32 %v7331_v53, %v9008_v50  ;;  %v9011_v19 = vld [vmem:[#allocation63_spill] sm:$0xff]  ;;  %v2932_v49 = vand.u32 4294901760, %v2931_v4  ;;  %v2945_v50 = vsub.f32 %v7336_v40, %v9013_v55 }
 0x17c   :  { %9004 = vst [vmem:[#allocation12_spill] sm:$0xff] %v7754_v35  ;;  %5095 = vmatprep.subr.bf16.mxu1 %v7183_v2  ;;  %2692 = vmatmul.mubr.f32.vlgmr.msra.gmra.mrb[16].mxu0 %v7115_v36  ;;  %v9012_v14 = vand.u32 4294901760, %v9011_v19  ;;  %v9014_v2 = vand.u32 4294901760, %v7361_v32  ;;  %v5132_v4 = vpack.c.bf16 %v2925_v51, %v2918_v43  ;;  %v5134_v55 = vpack.c.bf16 %v3051_v45, %v3044_v12  ;;  %v9026_v43 = vld [vmem:[#allocation58_spill] sm:$0xff] }
 0x17d   :  { %5101 = vmatpush3.bf16.msra.mxu0 %v7747_v57  ;;  %2902 = vmatprep.mubr.f32.mxu0 %v2901_v28  ;;  %v3058_v27 = vand.u32 4294901760, %v3057_v62  ;;  %v3065_v19 = vand.u32 4294901760, %v3064_v18  ;;  %v9020_v28 = vand.u32 4294901760, %v7393_v9  ;;  %v9024_v57 = vand.u32 4294901760, %v9023_v16  ;;  %v9028_v62 = vld [vmem:[#allocation59_spill] sm:$0xff] }
 0x17e   :  { %v7776_v5 = vpack.c.bf16 %v9012_v14, %v9010_v20  ;;  %v2952_v63 = vsub.f32 %v7361_v32, %v9014_v2  ;;  %5103 = vmatprep.subr.bf16.mxu0 %v7754_v35  ;;  %v7791_v20 = vpack.c.bf16 %v9018_v41, %v9016_v38  ;;  %v9019_v14 = vand.u32 4294901760, %v7377_v23 }
 0x17f   :  { %5097 = vmatpush3.bf16.msra.mxu1 %v7196_v15  ;;  %v3078_v59 = vsub.f32 %v7393_v9, %v9020_v28  ;;  %v9021_v15 = vld [vmem:[#allocation56_spill] sm:$0xff]  ;;  %v9027_v51 = vand.u32 4294901760, %v9026_v43  ;;  %v9029_v18 = vand.u32 4294901760, %v9028_v62  ;;  %v5136_v12 = vpack.c.bf16 %v2939_v0, %v2932_v49  ;;  %v9034_v49 = vld [vmem:[#allocation27_spill] sm:$0xff] }
 0x180   :  { %5131 = vmatprep.subr.bf16.mxu1 %v5130_v13  ;;  %v3071_v2 = vsub.f32 %v7377_v23, %v9019_v14  ;;  %v9022_v35 = vand.u32 4294901760, %v9021_v15  ;;  %v2946_v45 = vand.u32 4294901760, %v2945_v50  ;;  %v2953_v38 = vand.u32 4294901760, %v2952_v63 }
 0x181   :  { %5105 = vmatpush3.bf16.msra.mxu0 %v7776_v5  ;;  %v7811_v13 = vpack.c.bf16 %v9029_v18, %v9027_v51  ;;  %v5138_v41 = vpack.c.bf16 %v3065_v19, %v3058_v27  ;;  %v9032_v14 = vand.u32 4294901760, %v7415_v54  ;;  %v3079_v15 = vand.u32 4294901760, %v3078_v59  ;;  %v9038_v19 = vld [vmem:[#allocation61_spill] sm:$0xff] }
 0x182   :  { %v7803_v46 = vpack.c.bf16 %v9024_v57, %v9022_v35  ;;  %2796 = vmatmul.mubr.f32.vlgmr.msra.gmra.mrb[16].mxu1 %v7115_v36  ;;  %5107 = vmatprep.subr.bf16.mxu0 %v7791_v20  ;;  %v9031_v57 = vand.u32 4294901760, %v7407_v39  ;;  %v3072_v28 = vand.u32 4294901760, %v3071_v2  ;;  %v9033_v16 = vand.u32 4294901760, %v7439_v61  ;;  %v9043_v2 = vld [vmem:[#allocation13_spill] sm:$0xff] }
 0x183   :  { %9030 = vst [vmem:[#allocation40_spill] sm:$0xff] %v7811_v13  ;;  %5133 = vmatpush3.bf16.msra.mxu1 %v5132_v4  ;;  %v2966_v36 = vsub.f32 %v7415_v54, %v9032_v14  ;;  %v9035_v50 = vand.u32 4294901760, %v9034_v49  ;;  %3138 = vmatprep.mubr.f32.mxu1 %v7693_v33  ;;  %v9036_v4 = vld [vmem:[#allocation60_spill] sm:$0xff]  ;;  %v9039_v43 = vand.u32 4294901760, %v9038_v19  ;;  %v9044_v62 = vand.u32 4294901760, %v9043_v2 }
 0x184   :  { %9025 = vst [vmem:[#allocation49_spill] sm:$0xff] %v7803_v46  ;;  %v2959_v35 = vsub.f32 %v7407_v39, %v9031_v57  ;;  %5135 = vmatprep.subr.bf16.mxu1 %v5134_v55  ;;  %v3085_v0 = vsub.f32 %v7439_v61, %v9033_v16  ;;  %v9037_v27 = vand.u32 4294901760, %v9036_v4  ;;  %v9041_v55 = vld [vmem:[#allocation31_spill] sm:$0xff]  ;;  %v5140_v57 = vpack.c.bf16 %v2953_v38, %v2946_v45 }
 0x185   :  { %v3092_v63 = vsub.f32 %v9034_v49, %v9035_v50  ;;  %5109 = vmatpush3.bf16.msra.mxu0 %v7803_v46  ;;  %v9042_v59 = vand.u32 4294901760, %v9041_v55  ;;  %v9046_v14 = vand.u32 4294901760, %v7462_v24  ;;  %v9047_v50 = vand.u32 4294901760, %v7472_v31 }
 0x186   :  { %v7831_v51 = vpack.c.bf16 %v9039_v43, %v9037_v27  ;;  %5111 = vmatprep.subr.bf16.mxu0 %v7811_v13  ;;  %v2960_v27 = vand.u32 4294901760, %v2959_v35  ;;  %v2967_v19 = vand.u32 4294901760, %v2966_v36  ;;  %v9048_v43 = vand.u32 4294901760, %v7513_v47 }
 0x187   :  { %v7838_v18 = vpack.c.bf16 %v9044_v62, %v9042_v59  ;;  %v2973_v16 = vsub.f32 %v7462_v24, %v9046_v14  ;;  %v2980_v4 = vsub.f32 %v7472_v31, %v9047_v50  ;;  %5137 = vmatpush3.bf16.msra.mxu1 %v5136_v12  ;;  %v9049_v59 = vand.u32 4294901760, %v7518_v1  ;;  %v9050_v14 = vld [vmem:[#allocation14_spill] sm:$0xff]  ;;  %v9052_v50 = vld [vmem:[#allocation17_spill] sm:$0xff] }
 0x188   :  { %9040 = vst [vmem:[#allocation23_spill] sm:$0xff] %v7831_v51  ;;  %v3099_v55 = vsub.f32 %v7513_v47, %v9048_v43  ;;  %5139 = vmatprep.subr.bf16.mxu1 %v5138_v41  ;;  %v5142_v38 = vpack.c.bf16 %v3079_v15, %v3072_v28  ;;  %v3086_v2 = vand.u32 4294901760, %v3085_v0  ;;  %v3093_v62 = vand.u32 4294901760, %v3092_v63  ;;  %v9059_v0 = vld [vmem:[#allocation22_spill] sm:$0xff] }
 0x189   :  { %9045 = vst [vmem:[#allocation75_spill] sm:$0xff] %v7838_v18  ;;  %v3106_v45 = vsub.f32 %v7518_v1, %v9049_v59  ;;  %v9051_v33 = vand.u32 4294901760, %v9050_v14  ;;  %v9053_v46 = vand.u32 4294901760, %v9052_v50  ;;  %v7860_v12 = vand.u32 4294901760, %v7680_v52  ;;  %5113 = vmatpush3.bf16.msra.mxu0 %v7831_v51 }
 0x18a   :  { %v2974_v35 = vand.u32 4294901760, %v2973_v16  ;;  %v2981_v36 = vand.u32 4294901760, %v2980_v4  ;;  %v9055_v43 = vand.u32 4294901760, %v7527_v21  ;;  %v9056_v28 = vand.u32 4294901760, %v7532_v58  ;;  %5115 = vmatprep.subr.bf16.mxu0 %v7838_v18 }
 0x18b   :  { %v7857_v13 = vpack.c.bf16 %v9053_v46, %v9051_v33  ;;  %5141 = vmatpush3.bf16.msra.mxu1 %v5140_v57  ;;  %v9057_v33 = vld [vmem:[#allocation24_spill] sm:$0xff]  ;;  %v9060_v63 = vand.u32 4294901760, %v9059_v0  ;;  %v5144_v14 = vpack.c.bf16 %v2967_v19, %v2960_v27  ;;  %v3100_v16 = vand.u32 4294901760, %v3099_v55  ;;  %v9064_v57 = vld [vmem:[#allocation34_spill] sm:$0xff]  ;;  %v9068_v19 = vld [vmem:[#allocation33_spill] sm:$0xff] }
 0x18c   :  { %v2987_v41 = vsub.f32 %v7527_v21, %v9055_v43  ;;  %v2994_v15 = vsub.f32 %v7532_v58, %v9056_v28  ;;  %v9058_v46 = vand.u32 4294901760, %v9057_v33  ;;  %v3107_v4 = vand.u32 4294901760, %v3106_v45  ;;  %5143 = vmatprep.subr.bf16.mxu1 %v5142_v38  ;;  %v9066_v33 = vld [vmem:[#allocation29_spill] sm:$0xff] }
 0x18d   :  { %9054 = vst [vmem:[#allocation50_spill] sm:$0xff] %v7857_v13  ;;  %v5146_v50 = vpack.c.bf16 %v3093_v62, %v3086_v2  ;;  %v9062_v43 = vand.u32 4294901760, %v7562_v26  ;;  %v9063_v28 = vand.u32 4294901760, %v7567_v8  ;;  %v9065_v58 = vand.u32 4294901760, %v9064_v57  ;;  %5117 = vmatpush3.bf16.msra.mxu0 %v7857_v13  ;;  %v9070_v45 = vld [vmem:[#allocation37_spill] sm:$0xff] }
 0x18e   :  { %v7874_v59 = vpack.c.bf16 %v9060_v63, %v9058_v46  ;;  %v9067_v21 = vand.u32 4294901760, %v9066_v33  ;;  %v7890_v27 = vsub.f32 %v7680_v52, %v7860_v12  ;;  %v9069_v55 = vand.u32 4294901760, %v9068_v19  ;;  %v3854_v33 = vpop.f32.mrb[4].mxu0 }
 0x18f   :  { %v3113_v51 = vsub.f32 %v7562_v26, %v9062_v43  ;;  %v3120_v18 = vsub.f32 %v7567_v8, %v9063_v28  ;;  %v9071_v38 = vand.u32 4294901760, %v9070_v45  ;;  %v5148_v62 = vpack.c.bf16 %v2981_v36, %v2974_v35  ;;  %5145 = vmatpush3.bf16.msra.mxu1 %v5144_v14  ;;  %v3855_v14 = vpop.f32.mrb[5].mxu0  ;;  %v9078_v45 = vld [vmem:[#allocation43_spill] sm:$0xff] }
 0x190   :  { %9061 = vst [vmem:[#allocation76_spill] sm:$0xff] %v7874_v59  ;;  %v7886_v0 = vpack.c.bf16 %v9067_v21, %v9065_v58  ;;  %v2988_v46 = vand.u32 4294901760, %v2987_v41  ;;  %v2995_v63 = vand.u32 4294901760, %v2994_v15  ;;  %5119 = vmatprep.subr.bf16.mxu0 %v7874_v59  ;;  %v5150_v58 = vpack.c.bf16 %v3107_v4, %v3100_v16  ;;  %v9073_v21 = vld [vmem:[#allocation39_spill] sm:$0xff]  ;;  %5147 = vmatprep.subr.bf16.mxu1 %v5146_v50 }
 0x191   :  { %v7897_v2 = vpack.c.bf16 %v9071_v38, %v9069_v55  ;;  %v9074_v43 = vand.u32 4294901760, %v9073_v21  ;;  %v9075_v28 = vand.u32 4294901760, %v7582_v3  ;;  %v3114_v19 = vand.u32 4294901760, %v3113_v51  ;;  %v9084_v59 = vld [vmem:[#allocation71_spill] sm:$0xff] }
 0x192   :  { %v3121_v55 = vand.u32 4294901760, %v3120_v18  ;;  %v9076_v35 = vand.u32 4294901760, %v7602_v29  ;;  %v9077_v41 = vand.u32 4294901760, %v7613_v30  ;;  %v2905_v16 = vand.u32 4294901760, %v7890_v27  ;;  %5121 = vmatpush3.bf16.msra.mxu0 %v7886_v0  ;;  %v9082_v18 = vld [vmem:[#allocation67_spill] sm:$0xff] }
 0x193   :  { %9072 = vst [vmem:[#allocation77_spill] sm:$0xff] %v7897_v2  ;;  %v3001_v52 = vsub.f32 %v9073_v21, %v9074_v43  ;;  %v3008_v57 = vsub.f32 %v7582_v3, %v9075_v28  ;;  %v3856_v4 = vadd.f32 %v3855_v14, %v3854_v33  ;;  %v9079_v38 = vand.u32 4294901760, %v9078_v45  ;;  %v9080_v43 = vld [vmem:[#allocation41_spill] sm:$0xff]  ;;  %5123 = vmatprep.subr.bf16.mxu0 %v7897_v2 }
 0x194   :  { %v3127_v36 = vsub.f32 %v7602_v29, %v9076_v35  ;;  %v3134_v15 = vsub.f32 %v7613_v30, %v9077_v41  ;;  %v9081_v50 = vand.u32 4294901760, %v9080_v43  ;;  %v9083_v28 = vand.u32 4294901760, %v9082_v18  ;;  %5149 = vmatpush3.bf16.msra.mxu1 %v5148_v62 }
 0x195   :  { %v9085_v35 = vand.u32 4294901760, %v9084_v59  ;;  %v5152_v13 = vpack.c.bf16 %v2995_v63, %v2988_v46  ;;  %v3002_v41 = vand.u32 4294901760, %v3001_v52  ;;  %v3009_v33 = vand.u32 4294901760, %v3008_v57  ;;  %5151 = vmatprep.subr.bf16.mxu1 %v5150_v58  ;;  %v3889_v46 = vpop.f32.mrb[4].mxu1  ;;  %v9088_v52 = vld [vmem:[#allocation72_spill] sm:$0xff] }
 0x196   :  { %v7918_v51 = vpack.c.bf16 %v9081_v50, %v9079_v38  ;;  %v9086_v14 = vand.u32 4294901760, %v7618_v11  ;;  %v9087_v43 = vand.u32 4294901760, %v7625_v56  ;;  %v970_v50 = vadd.f32 %v3856_v4, %v7741_v34  ;;  %v3890_v63 = vpop.f32.mrb[5].mxu1 }
 0x197   :  { %v7924_v29 = vpack.c.bf16 %v9085_v35, %v9083_v28  ;;  %v5154_v59 = vpack.c.bf16 %v3121_v55, %v3114_v19  ;;  %v3128_v18 = vand.u32 4294901760, %v3127_v36  ;;  %v3135_v28 = vand.u32 4294901760, %v3134_v15  ;;  %v9090_v35 = vld [vmem:[#allocation74_spill] sm:$0xff] }
 0x198   :  { %v3015_v45 = vsub.f32 %v7618_v11, %v9086_v14  ;;  %v3022_v38 = vsub.f32 %v7625_v56, %v9087_v43  ;;  %v2906_v62 = vsub.f32 %v7890_v27, %v2905_v16  ;;  %5125 = vmatpush3.bf16.msra.mxu0 %v7918_v51  ;;  %v9089_v57 = vand.u32 4294901760, %v9088_v52  ;;  %5153 = vmatpush3.bf16.msra.mxu1 %v5152_v13 }
 0x199   :  { %v9091_v14 = vand.u32 4294901760, %v9090_v35  ;;  %v5162_v34 = vpack.c.bf16 %v7262_v6, %v7250_v10  ;;  %v3891_v58 = vadd.f32 %v3890_v63, %v3889_v46  ;;  %5127 = vmatprep.subr.bf16.mxu0 %v7924_v29  ;;  %v5156_v19 = vpack.c.bf16 %v3009_v33, %v3002_v41  ;;  %5155 = vmatprep.subr.bf16.mxu1 %v5154_v59  ;;  %v9103_v59 = vld [vmem:[#allocation76_spill] sm:$0xff]  ;;  %v9105_v46 = vld [vmem:[#allocation62_spill] sm:$0xff] }
 0x19a   :  { %v3016_v55 = vand.u32 4294901760, %v3015_v45  ;;  %v3023_v36 = vand.u32 4294901760, %v3022_v38  ;;  %v5158_v15 = vpack.c.bf16 %v3135_v28, %v3128_v18  ;;  %v2907_v43 = vand.u32 4294901760, %v2906_v62  ;;  %v9102_v45 = vld [vmem:[#allocation25_spill] sm:$0xff]  ;;  %v9107_v62 = vld [vmem:[#allocation28_spill] sm:$0xff]  ;;  %v9110_v63 = vld [vmem:[#allocation26_spill] sm:$0xff] }
 0x19b   :  { %v7942_v2 = vpack.c.bf16 %v9091_v14, %v9089_v57  ;;  %v1074_v4 = vadd.f32 %v3891_v58, %v970_v50  ;;  %v5164_v52 = vpack.c.bf16 %v7275_v25, %v7270_v37  ;;  %v5166_v10 = vpack.c.bf16 %v7295_v48, %v7290_v60  ;;  %v9092_v25 = vld [vmem:[#allocation35_spill] sm:$0xff]  ;;  %v9093_v48 = vld [vmem:[#allocation12_spill] sm:$0xff]  ;;  %v9116_v14 = vld [vmem:[#allocation42_spill] sm:$0xff] }
 0x19c   :  { %5157 = vmatpush3.bf16.msra.mxu1 %v5156_v19  ;;  %v5160_v6 = vpack.c.bf16 %v3023_v36, %v3016_v55  ;;  %v5168_v13 = vpack.c.bf16 %v7308_v17, %v7303_v44  ;;  %v5170_v41 = vpack.c.bf16 %v7331_v53, %v7318_v42  ;;  %v5172_v37 = vpack.c.bf16 %v7361_v32, %v7336_v40  ;;  %v9095_v17 = vld [vmem:[#allocation49_spill] sm:$0xff]  ;;  %v9096_v32 = vld [vmem:[#allocation40_spill] sm:$0xff]  ;;  %v9118_v19 = vld [vmem:[#allocation66_spill] sm:$0xff] }
 0x19d   :  { %5129 = vmatpush3.bf16.msra.mxu0 %v7942_v2  ;;  %5159 = vmatprep.subr.bf16.mxu1 %v5158_v15  ;;  %v5174_v60 = vpack.c.bf16 %v7393_v9, %v7377_v23  ;;  %v9094_v44 = vand.u32 4294901760, %v7700_v22  ;;  %v5176_v53 = vpack.c.bf16 %v7415_v54, %v7407_v39  ;;  %v5178_v42 = vpack.c.bf16 %v9034_v49, %v7439_v61  ;;  %v9097_v9 = vld [vmem:[#allocation69_spill] sm:$0xff]  ;;  %v9098_v54 = vld [vmem:[#allocation70_spill] sm:$0xff]  ;;  %v9099_v61 = vld [vmem:[#allocation23_spill] sm:$0xff] }
 0x19e   :  { %5163 = vmatprep.subr.bf16.mxu0 %v5162_v34  ;;  %v5180_v23 = vpack.c.bf16 %v7472_v31, %v7462_v24  ;;  %v5182_v40 = vpack.c.bf16 %v7518_v1, %v7513_v47  ;;  %v5184_v39 = vpack.c.bf16 %v9098_v54, %v9097_v9  ;;  %v3924_v49 = vpop.f32.mrb[6].mxu0  ;;  %v9100_v24 = vld [vmem:[#allocation75_spill] sm:$0xff]  ;;  %v5188_v47 = vpack.c.bf16 %v7582_v3, %v9073_v21  ;;  %v9101_v1 = vld [vmem:[#allocation50_spill] sm:$0xff]  ;;  %v9104_v3 = vld [vmem:[#allocation77_spill] sm:$0xff] }
 0x19f   :  { %v3925_v31 = vpop.f32.mrb[7].mxu0  ;;  %v5190_v38 = vpack.c.bf16 %v7613_v30, %v9102_v45  ;;  %v9106_v30 = vld [vmem:[#allocation64_spill] sm:$0xff] }
 0x1a0   :  { %2908 = vmatmul.mubr.f32.vlgmr.msra.gmra.mrb[18].mxu0 %v2907_v43  ;;  %5161 = vmatpush3.bf16.msra.mxu1 %v5160_v6  ;;  %v3926_v33 = vadd.f32 %v3925_v31, %v3924_v49  ;;  %v9111_v57 = vld [vmem:[#allocation32_spill] sm:$0xff] }
 0x1a1   :  { %5165 = vmatpush3.bf16.msra.mxu0 %v5164_v52  ;;  %3275 = vmatprep.mubr.f32.mxu0 %v7700_v22  ;;  %v5186_v22 = vpack.c.bf16 %v7567_v8, %v7562_v26  ;;  %v5192_v8 = vpack.c.bf16 %v7625_v56, %v7618_v11  ;;  %v9108_v56 = vld [vmem:[#allocation16_spill] sm:$0xff]  ;;  %v9109_v11 = vld [vmem:[#allocation19_spill] sm:$0xff] }
 0x1a2   :  { %5167 = vmatprep.subr.bf16.mxu0 %v5166_v10  ;;  %5195 = vmatprep.subr.bf16.mxu1 %v7721_v7  ;;  %v1186_v50 = vadd.f32 %v3926_v33, %v1074_v4  ;;  %v9112_v35 = vld [vmem:[#allocation44_spill] sm:$0xff] }
 0x1a3   :  { %3140 = vmatmul.mubr.f32.vlgmr.msra.gmra.mrb[18].mxu1 %v7860_v12  ;;  %v3959_v18 = vpop.f32.mrb[6].mxu1  ;;  %v9119_v15 = vld [vmem:[#allocation68_spill] sm:$0xff] }
 0x1a4   :  { %5197 = vmatpush3.bf16.msra.mxu1 %v9092_v25  ;;  %3382 = vmatprep.mubr.f32.mxu1 %v9094_v44  ;;  %v3960_v26 = vpop.f32.mrb[7].mxu1  ;;  %v9120_v52 = vld [vmem:[#allocation48_spill] sm:$0xff] }
 0x1a5   :  { %5169 = vmatpush3.bf16.msra.mxu0 %v5168_v13  ;;  %5199 = vmatprep.subr.bf16.mxu1 %v9093_v48  ;;  %v3961_v28 = vadd.f32 %v3960_v26, %v3959_v18  ;;  %v9121_v6 = vld [vmem:[#allocation36_spill] sm:$0xff] }
 0x1a6   :  { %5171 = vmatprep.subr.bf16.mxu0 %v5170_v41 }
 0x1a7   :  { %v1418_v21 = vadd.f32 %v3961_v28, %v1186_v50 }
 0x1a8   :  { %5201 = vmatpush3.bf16.msra.mxu1 %v7776_v5 }
 0x1a9   :  { %5173 = vmatpush3.bf16.msra.mxu0 %v5172_v37  ;;  %5203 = vmatprep.subr.bf16.mxu1 %v7791_v20 }
 0x1aa   :  { %5175 = vmatprep.subr.bf16.mxu0 %v5174_v60 }
 0x1ac   :  { %5205 = vmatpush3.bf16.msra.mxu1 %v9095_v17 }
 0x1ad   :  { %5177 = vmatpush3.bf16.msra.mxu0 %v5176_v53  ;;  %5207 = vmatprep.subr.bf16.mxu1 %v9096_v32 }
 0x1ae   :  { %5179 = vmatprep.subr.bf16.mxu0 %v5178_v42 }
 0x1b0   :  { %5209 = vmatpush3.bf16.msra.mxu1 %v9099_v61 }
 0x1b1   :  { %5181 = vmatpush3.bf16.msra.mxu0 %v5180_v23  ;;  %5211 = vmatprep.subr.bf16.mxu1 %v9100_v24 }
 0x1b2   :  { %5183 = vmatprep.subr.bf16.mxu0 %v5182_v40 }
 0x1b4   :  { %5213 = vmatpush3.bf16.msra.mxu1 %v9101_v1 }
 0x1b5   :  { %5185 = vmatpush3.bf16.msra.mxu0 %v5184_v39  ;;  %5215 = vmatprep.subr.bf16.mxu1 %v9103_v59 }
 0x1b6   :  { %5187 = vmatprep.subr.bf16.mxu0 %v5186_v22 }
 0x1b8   :  { %5217 = vmatpush3.bf16.msra.mxu1 %v7886_v0 }
 0x1b9   :  { %5189 = vmatpush3.bf16.msra.mxu0 %v5188_v47  ;;  %5219 = vmatprep.subr.bf16.mxu1 %v9104_v3 }
 0x1ba   :  { %5191 = vmatprep.subr.bf16.mxu0 %v5190_v38 }
 0x1bc   :  { %5221 = vmatpush3.bf16.msra.mxu1 %v7918_v51 }
 0x1bd   :  { %5193 = vmatpush3.bf16.msra.mxu0 %v5192_v8  ;;  %5223 = vmatprep.subr.bf16.mxu1 %v7924_v29 }
 0x1be   :  { %5227 = vmatprep.subr.bf16.mxu0 %v9105_v46 }
 0x1c0   :  { %3278 = vmatmul.mubr.f32.vlgmr.msra.gmra.mrb[20].mxu0 %v7890_v27  ;;  %5225 = vmatpush3.bf16.msra.mxu1 %v7942_v2  ;;  %v9114_v27 = vld [vmem:[#allocation73_spill] sm:$0xff] }
 0x1c1   :  { %5229 = vmatpush3.bf16.msra.mxu0 %v9106_v30  ;;  %3552 = vmatprep.mubr.f32.mxu0 %v9107_v62 }
 0x1c2   :  { %5231 = vmatprep.subr.bf16.mxu0 %v9108_v56  ;;  %5259 = vmatprep.subr.bf16.mxu1 %v7721_v7  ;;  %v9113_v7 = vld [vmem:[#allocation45_spill] sm:$0xff] }
 0x1c3   :  { %3386 = vmatmul.mubr.f32.vlgmr.msra.gmra.mrb[20].mxu1 %v2905_v16  ;;  %v9115_v16 = vld [vmem:[#allocation38_spill] sm:$0xff] }
 0x1c4   :  { %5261 = vmatpush3.bf16.msra.mxu1 %v9092_v25  ;;  %3656 = vmatprep.mubr.f32.mxu1 %v9107_v62 }
 0x1c5   :  { %5233 = vmatpush3.bf16.msra.mxu0 %v9109_v11  ;;  %5263 = vmatprep.subr.bf16.mxu1 %v9093_v48  ;;  %v3994_v34 = vpop.f32.mrb[8].mxu0 }
 0x1c6   :  { %5235 = vmatprep.subr.bf16.mxu0 %v9110_v63 }
 0x1c7   :  { %v4029_v36 = vpop.f32.mrb[8].mxu1 }
 0x1c8   :  { %5265 = vmatpush3.bf16.msra.mxu1 %v7776_v5  ;;  %v3995_v5 = vpop.f32.mrb[9].mxu0  ;;  %v4030_v4 = vpop.f32.mrb[9].mxu1 }
 0x1c9   :  { %5237 = vmatpush3.bf16.msra.mxu0 %v9111_v57  ;;  %5267 = vmatprep.subr.bf16.mxu1 %v7791_v20  ;;  %v3996_v58 = vadd.f32 %v3995_v5, %v3994_v34  ;;  %v9117_v20 = vld [vmem:[#allocation65_spill] sm:$0xff]  ;;  %v4031_v43 = vadd.f32 %v4030_v4, %v4029_v36 }
 0x1ca   :  { %5239 = vmatprep.subr.bf16.mxu0 %v9112_v35 }
 0x1cb   :  { %v1556_v55 = vadd.f32 %v3996_v58, %v1418_v21 }
 0x1cc   :  { %5269 = vmatpush3.bf16.msra.mxu1 %v9095_v17 }
 0x1cd   :  { %5241 = vmatpush3.bf16.msra.mxu0 %v9113_v7  ;;  %5271 = vmatprep.subr.bf16.mxu1 %v9096_v32  ;;  %v1664_v10 = vadd.f32 %v4031_v43, %v1556_v55 }
 0x1ce   :  { %5243 = vmatprep.subr.bf16.mxu0 %v9114_v27 }
 0x1d0   :  { %5273 = vmatpush3.bf16.msra.mxu1 %v9099_v61 }
 0x1d1   :  { %5245 = vmatpush3.bf16.msra.mxu0 %v9115_v16  ;;  %5275 = vmatprep.subr.bf16.mxu1 %v9100_v24 }
 0x1d2   :  { %5247 = vmatprep.subr.bf16.mxu0 %v9116_v14 }
 0x1d4   :  { %5277 = vmatpush3.bf16.msra.mxu1 %v9101_v1 }
 0x1d5   :  { %5249 = vmatpush3.bf16.msra.mxu0 %v9117_v20  ;;  %5279 = vmatprep.subr.bf16.mxu1 %v9103_v59 }
 0x1d6   :  { %5251 = vmatprep.subr.bf16.mxu0 %v9118_v19  ;;  %v3663_v19 = vld [vmem:[%s8053_s1] sm:$0x3] }
 0x1d8   :  { %5281 = vmatpush3.bf16.msra.mxu1 %v7886_v0 }
 0x1d9   :  { %5253 = vmatpush3.bf16.msra.mxu0 %v9119_v15  ;;  %5283 = vmatprep.subr.bf16.mxu1 %v9104_v3 }
 0x1da   :  { %5255 = vmatprep.subr.bf16.mxu0 %v9120_v52 }
 0x1dc   :  { %5285 = vmatpush3.bf16.msra.mxu1 %v7918_v51 }
 0x1dd   :  { %5257 = vmatpush3.bf16.msra.mxu0 %v9121_v6  ;;  %5287 = vmatprep.subr.bf16.mxu1 %v7924_v29 }
 0x1e0   :  { %3554 = vmatmul.mubr.f32.vlgmr.msra.gmra.mrb[22].mxu0 %v7860_v12  ;;  %5289 = vmatpush3.bf16.msra.mxu1 %v7942_v2 }
 0x1e3   :  { %3658 = vmatmul.mubr.f32.vlgmr.msra.gmra.mrb[22].mxu1 %v7860_v12 }
 0x1e5   :  { %v4064_v13 = vpop.f32.mrb[10].mxu0 }
 0x1e6   :  { %v4065_v41 = vpop.f32.mrb[11].mxu0 }
 0x1e7   :  { %v4066_v37 = vadd.f32 %v4065_v41, %v4064_v13  ;;  %v4099_v0 = vpop.f32.mrb[10].mxu1 }
 0x1e8   :  { %v4100_v60 = vpop.f32.mrb[11].mxu1 }
 0x1e9   :  { %v1832_v25 = vadd.f32 %v4066_v37, %v1664_v10  ;;  %v4101_v48 = vadd.f32 %v4100_v60, %v4099_v0 }
 0x1eb   :  { %v1936_v44 = vadd.f32 %v4101_v48, %v1832_v25 }
 0x205   :  { %v4134_v53 = vpop.f32.mrb[12].mxu0 }
 0x206   :  { %v4135_v42 = vpop.f32.mrb[13].mxu0 }
 0x207   :  { %v4136_v23 = vadd.f32 %v4135_v42, %v4134_v53 }
 0x209   :  { %v2048_v51 = vadd.f32 %v4136_v23, %v1936_v44 }
 0x20c   :  { %v4169_v17 = vpop.f32.mrb[12].mxu1 }
 0x20d   :  { %v4170_v29 = vpop.f32.mrb[13].mxu1 }
 0x20e   :  { %v4171_v40 = vadd.f32 %v4170_v29, %v4169_v17 }
 0x210   :  { %v2280_v32 = vadd.f32 %v4171_v40, %v2048_v51 }
 0x22f   :  { %v4204_v9 = vpop.f32.mrb[14].mxu0 }
 0x230   :  { %v4205_v2 = vpop.f32.mrb[15].mxu0 }
 0x231   :  { %v4206_v54 = vadd.f32 %v4205_v2, %v4204_v9 }
 0x233   :  { %v2418_v12 = vadd.f32 %v4206_v54, %v2280_v32 }
 0x235   :  { %v4239_v39 = vpop.f32.mrb[14].mxu1 }
 0x236   :  { %v4240_v61 = vpop.f32.mrb[15].mxu1 }
 0x237   :  { %v4241_v22 = vadd.f32 %v4240_v61, %v4239_v39 }
 0x239   :  { %v2526_v49 = vadd.f32 %v4241_v22, %v2418_v12 }
 0x24f   :  { %v4274_v24 = vpop.f32.mrb[16].mxu0 }
 0x250   :  { %v4275_v31 = vpop.f32.mrb[17].mxu0 }
 0x251   :  { %v4276_v33 = vadd.f32 %v4275_v31, %v4274_v24 }
 0x253   :  { %v2694_v47 = vadd.f32 %v4276_v33, %v2526_v49 }
 0x255   :  { %v4309_v1 = vpop.f32.mrb[16].mxu1 }
 0x256   :  { %v4310_v45 = vpop.f32.mrb[17].mxu1 }
 0x257   :  { %v4311_v38 = vadd.f32 %v4310_v45, %v4309_v1 }
 0x259   :  { %v2798_v50 = vadd.f32 %v4311_v38, %v2694_v47 }
 0x273   :  { %v4344_v59 = vpop.f32.mrb[18].mxu0 }
 0x274   :  { %v4345_v18 = vpop.f32.mrb[19].mxu0 }
 0x275   :  { %v4346_v26 = vadd.f32 %v4345_v18, %v4344_v59 }
 0x276   :  { %v4379_v28 = vpop.f32.mrb[18].mxu1 }
 0x277   :  { %v2910_v8 = vadd.f32 %v4346_v26, %v2798_v50  ;;  %v4380_v3 = vpop.f32.mrb[19].mxu1 }
 0x278   :  { %v4381_v21 = vadd.f32 %v4380_v3, %v4379_v28 }
 0x27a   :  { %v3142_v46 = vadd.f32 %v4381_v21, %v2910_v8 }
 0x293   :  { %v4414_v30 = vpop.f32.mrb[20].mxu0 }
 0x294   :  { %v4415_v62 = vpop.f32.mrb[21].mxu0 }
 0x295   :  { %v4416_v56 = vadd.f32 %v4415_v62, %v4414_v30 }
 0x296   :  { %v4449_v63 = vpop.f32.mrb[20].mxu1 }
 0x297   :  { %v3280_v11 = vadd.f32 %v4416_v56, %v3142_v46  ;;  %v4450_v57 = vpop.f32.mrb[21].mxu1 }
 0x298   :  { %v4451_v35 = vadd.f32 %v4450_v57, %v4449_v63 }
 0x29a   :  { %v3388_v7 = vadd.f32 %v4451_v35, %v3280_v11 }
 0x2b3   :  { %v4484_v27 = vpop.f32.mrb[22].mxu0 }
 0x2b4   :  { %v4485_v16 = vpop.f32.mrb[23].mxu0 }
 0x2b5   :  { %v4486_v14 = vadd.f32 %v4485_v16, %v4484_v27 }
 0x2b6   :  { %v4519_v5 = vpop.f32.mrb[22].mxu1 }
 0x2b7   :  { %v3556_v34 = vadd.f32 %v4486_v14, %v3388_v7  ;;  %v4520_v58 = vpop.f32.mrb[23].mxu1 }
 0x2b8   :  { %v4521_v20 = vadd.f32 %v4520_v58, %v4519_v5 }
 0x2ba   :  { %v3660_v55 = vadd.f32 %v4521_v20, %v3556_v34 }
 0x2bc   :  { %v3664_v36 = vmul.f32 %v3663_v19, %v3660_v55 }
 0x2be   :  { %3665 = vst [vmem:[#allocation7] sm:$0x3] %v3664_v36 }
 0x2bf   :  { %5353 = shalt.err (!%p5350_p6)
}
 0x2c0   :  { %s5354_s16 = scalar_lea.hbm %s8055_s3, 32 }
 0x2c1   :  { %p5355_p7 = scmp.ne.s32.totalorder %s8055_s3, %s5354_s16  ;;  %p5358_p8 = scmp.lt.u32.totalorder %s5354_s16, %s8055_s3 }
 0x2c3   :  { %p5360_p9 = pnand %p5358_p8, %p5355_p7 }
 0x2c5   :  { %5363 = shalt.err (!%p5360_p9)
}
 0x2c6   :  { %3675 = dma.vmem_to_hbm [thread:$0]  %s3673_s12, 32, %s8055_s3, [#allocation4]  }
 0x2c7   :  { %5368 = dma.done.wait [#allocation4], 32  }
 0x2c8   :  { %5369 = vsyncadd [#allocation4], 4294967264 }
 0x2c9   :  { %3679 = vsyncpa [#allocation3], 1 }
 0x2ca   :  { %3680 = vsyncpa [#allocation6], 1 }
 0x2cb   :  { %3681 = vsyncpa [#allocation4], 1 }

</bundles_post_ra>
